<compile_context>
chip_gen: v5e
topology: v5e:2x2
jax: 0.10.0
libtpu: 0.0.40
codegen_flags: <defaults>
</compile_context>

<pallas_src>
import jax
import jax.numpy as jnp
from jax.experimental import pallas as pl
from jax.experimental.pallas import tpu as pltpu

EPS = 1e-5            # PNA std epsilon
BIG = 1e30            # sentinel for masked min / max
EDGE_TILE = 128       # edge-row tile (msg MLP rows and PNA reduction tile)
NODE_TILE = 128       # max node-row tile (PNA/update/head output axis)
VMEM_LIMIT = 32 * 1024 * 1024


def _round_up(x, m):
    return ((x + m - 1) // m) * m


def _pad_rows(a, rows, value=0):
    pad = rows - a.shape[0]
    if pad <= 0:
        return a
    return jnp.concatenate(
        [a, jnp.full((pad,) + a.shape[1:], value, a.dtype)], axis=0)


# ---------------------------------------------------------------------------
# Kernel 1: message MLP over edge-row tiles (split-K concat of [x_i, x_j, e])
# ---------------------------------------------------------------------------
def _msg_mlp_kernel(xi_ref, xj_ref, ea_ref, w1a_ref, w1b_ref, w1c_ref,
                    b1_ref, w2_ref, b2_ref, o_ref):
    h = (jnp.dot(xi_ref[...], w1a_ref[...], preferred_element_type=jnp.float32)
         + jnp.dot(xj_ref[...], w1b_ref[...], preferred_element_type=jnp.float32)
         + jnp.dot(ea_ref[...], w1c_ref[...], preferred_element_type=jnp.float32)
         + b1_ref[...])
    h = jnp.maximum(h, 0.0)
    o_ref[...] = jnp.dot(h, w2_ref[...], preferred_element_type=jnp.float32) + b2_ref[...]


def msg_mlp(x_i, x_j, ea, w1a, w1b, w1c, b1, w2, b2):
    e_pad, dv = x_i.shape
    de = ea.shape[1]
    hid = w1a.shape[1]
    f = w2.shape[1]
    te = EDGE_TILE
    row = lambda i: (i, 0)
    const = lambda i: (0, 0)
    return pl.pallas_call(
        _msg_mlp_kernel,
        out_shape=jax.ShapeDtypeStruct((e_pad, f), jnp.float32),
        grid=(e_pad // te,),
        in_specs=[
            pl.BlockSpec((te, dv), row),
            pl.BlockSpec((te, dv), row),
            pl.BlockSpec((te, de), row),
            pl.BlockSpec((dv, hid), const),
            pl.BlockSpec((dv, hid), const),
            pl.BlockSpec((de, hid), const),
            pl.BlockSpec((1, hid), const),
            pl.BlockSpec((hid, f), const),
            pl.BlockSpec((1, f), const),
        ],
        out_specs=pl.BlockSpec((te, f), row),
        compiler_params=pltpu.CompilerParams(
            dimension_semantics=("parallel",),
            vmem_limit_bytes=VMEM_LIMIT),
    )(x_i, x_j, ea, w1a, w1b, w1c, b1, w2, b2)


# ---------------------------------------------------------------------------
# Kernel 2: fused PNA aggregation (mean/min/max/std) + update MLP
#   grid = (node tiles [parallel], edge tiles [arbitrary reduction])
# ---------------------------------------------------------------------------
def _pna_update_kernel(dstr_ref, dstc_ref, msg_ref, x_ref,
                       uw1a_ref, uw1b_ref, ub1_ref, uw2_ref, ub2_ref,
                       o_ref,
                       sum_sc, sumsq_sc, min_sc, max_sc, cnt_sc):
    te, f = msg_ref.shape
    tn = o_ref.shape[0]
    k = pl.program_id(1)

    @pl.when(k == 0)
    def _init():
        sum_sc[...] = jnp.zeros_like(sum_sc)
        sumsq_sc[...] = jnp.zeros_like(sumsq_sc)
        cnt_sc[...] = jnp.zeros_like(cnt_sc)
        min_sc[...] = jnp.full_like(min_sc, BIG)
        max_sc[...] = jnp.full_like(max_sc, -BIG)

    msgs = msg_ref[...]            # (te, f)
    dst_row = dstr_ref[...]        # (1, te)  target node per edge (lane layout)
    dst_col = dstc_ref[...]        # (te, 1)  same, sublane layout
    node_base = pl.program_id(0) * tn

    node_ids = node_base + jax.lax.broadcasted_iota(jnp.int32, (tn, te), 0)
    maskf = (node_ids == dst_row).astype(jnp.float32)        # (tn, te)
    tile_hits = jnp.sum(maskf)

    @pl.when(tile_hits > 0.0)
    def _accumulate():
        # mean / std terms on the MXU
        sum_sc[...] += jnp.dot(maskf, msgs, preferred_element_type=jnp.float32)
        sumsq_sc[...] += jnp.dot(maskf, msgs * msgs,
                                 preferred_element_type=jnp.float32)
        cnt_sc[...] += jnp.sum(maskf, axis=-1, keepdims=True)

        # segment min / max: bounded runtime loop over the node tile
        # (NOT unrolled at trace time, all 2-D masked reductions).
        @pl.loop(0, tn)
        def _minmax(n_local):
            sel = dst_col == (node_base + n_local)           # (te, 1)
            mn = jnp.min(jnp.where(sel, msgs, BIG), axis=0, keepdims=True)
            mx = jnp.max(jnp.where(sel, msgs, -BIG), axis=0, keepdims=True)
            min_sc[pl.ds(n_local, 1), :] = jnp.minimum(
                min_sc[pl.ds(n_local, 1), :], mn)
            max_sc[pl.ds(n_local, 1), :] = jnp.maximum(
                max_sc[pl.ds(n_local, 1), :], mx)

    @pl.when(k == pl.num_programs(1) - 1)
    def _finalize():
        cnt = cnt_sc[...]                                     # (tn, 1)
        has = cnt > 0.0
        inv = 1.0 / jnp.maximum(cnt, 1.0)                     # one divide, reused
        mean = sum_sc[...] * inv
        var = sumsq_sc[...] * inv - mean * mean
        std = jnp.sqrt(jnp.maximum(var, 0.0) + EPS)
        mean = jnp.where(has, mean, 0.0)
        std = jnp.where(has, std, 0.0)
        minv = jnp.where(has, min_sc[...], 0.0)
        maxv = jnp.where(has, max_sc[...], 0.0)
        # fused update MLP: split-K over the [mean, min, max, std, x] concat
        hdn = (jnp.dot(mean, uw1a_ref[0:f, :], preferred_element_type=jnp.float32)
               + jnp.dot(minv, uw1a_ref[f:2 * f, :], preferred_element_type=jnp.float32)
               + jnp.dot(maxv, uw1a_ref[2 * f:3 * f, :], preferred_element_type=jnp.float32)
               + jnp.dot(std, uw1a_ref[3 * f:4 * f, :], preferred_element_type=jnp.float32)
               + jnp.dot(x_ref[...], uw1b_ref[...], preferred_element_type=jnp.float32)
               + ub1_ref[...])
        hdn = jnp.maximum(hdn, 0.0)
        o_ref[...] = jnp.dot(hdn, uw2_ref[...],
                             preferred_element_type=jnp.float32) + ub2_ref[...]


def pna_update(msgs, dst_row, dst_col, x, uw1a, uw1b, ub1, uw2, ub2, *, tn):
    e_pad, f = msgs.shape
    n_pad, dv = x.shape
    hid = uw2.shape[0]
    u = uw2.shape[1]
    te = EDGE_TILE
    const = lambda i, k: (0, 0)
    return pl.pallas_call(
        _pna_update_kernel,
        out_shape=jax.ShapeDtypeStruct((n_pad, u), jnp.float32),
        grid=(n_pad // tn, e_pad // te),
        in_specs=[
            pl.BlockSpec((1, te), lambda i, k: (0, k)),      # dst, row layout
            pl.BlockSpec((te, 1), lambda i, k: (k, 0)),      # dst, column layout
            pl.BlockSpec((te, f), lambda i, k: (k, 0)),      # messages
            pl.BlockSpec((tn, dv), lambda i, k: (i, 0)),     # node features
            pl.BlockSpec((4 * f, hid), const),
            pl.BlockSpec((dv, hid), const),
            pl.BlockSpec((1, hid), const),
            pl.BlockSpec((hid, u), const),
            pl.BlockSpec((1, u), const),
        ],
        out_specs=pl.BlockSpec((tn, u), lambda i, k: (i, 0)),
        scratch_shapes=[
            pltpu.VMEM((tn, f), jnp.float32),    # sum
            pltpu.VMEM((tn, f), jnp.float32),    # sum of squares
            pltpu.VMEM((tn, f), jnp.float32),    # running min
            pltpu.VMEM((tn, f), jnp.float32),    # running max
            pltpu.VMEM((tn, 1), jnp.float32),    # in-degree count
        ],
        compiler_params=pltpu.CompilerParams(
            dimension_semantics=("parallel", "arbitrary"),
            vmem_limit_bytes=VMEM_LIMIT),
    )(dst_row, dst_col, msgs, x, uw1a, uw1b, ub1, uw2, ub2)


# ---------------------------------------------------------------------------
# Kernel 3: FC head (Linear-ReLU-Linear-ReLU-Linear) over node-row tiles
# ---------------------------------------------------------------------------
def _head_kernel(e_ref, g_ref, w1a_ref, w1b_ref, b1_ref, w2_ref, b2_ref,
                 w3_ref, b3_ref, o_ref):
    h = (jnp.dot(e_ref[...], w1a_ref[...], preferred_element_type=jnp.float32)
         + jnp.dot(g_ref[...], w1b_ref[...], preferred_element_type=jnp.float32)
         + b1_ref[...])
    h = jnp.maximum(h, 0.0)
    h = jnp.maximum(
        jnp.dot(h, w2_ref[...], preferred_element_type=jnp.float32) + b2_ref[...], 0.0)
    o_ref[...] = jnp.dot(h, w3_ref[...], preferred_element_type=jnp.float32) + b3_ref[...]


def fc_head(emb, glob, w1a, w1b, b1, w2, b2, w3p, b3p, *, tn):
    n_pad, dv = emb.shape
    g = glob.shape[1]
    h1 = w1a.shape[1]
    h2 = w2.shape[1]
    op = w3p.shape[1]
    row = lambda i: (i, 0)
    const = lambda i: (0, 0)
    return pl.pallas_call(
        _head_kernel,
        out_shape=jax.ShapeDtypeStruct((n_pad, op), jnp.float32),
        grid=(n_pad // tn,),
        in_specs=[
            pl.BlockSpec((tn, dv), row),
            pl.BlockSpec((tn, g), row),
            pl.BlockSpec((dv, h1), const),
            pl.BlockSpec((g, h1), const),
            pl.BlockSpec((1, h1), const),
            pl.BlockSpec((h1, h2), const),
            pl.BlockSpec((1, h2), const),
            pl.BlockSpec((h2, op), const),
            pl.BlockSpec((1, op), const),
        ],
        out_specs=pl.BlockSpec((tn, op), row),
        compiler_params=pltpu.CompilerParams(
            dimension_semantics=("parallel",),
            vmem_limit_bytes=VMEM_LIMIT),
    )(emb, glob, w1a, w1b, b1, w2, b2, w3p, b3p)


# ---------------------------------------------------------------------------
# Parameters + forward
# ---------------------------------------------------------------------------
def _init_linear(key, in_dim, out_dim):
    k1, k2 = jax.random.split(key)
    bound = 1.0 / jnp.sqrt(jnp.float32(in_dim))
    w = jax.random.uniform(k1, (in_dim, out_dim), jnp.float32, -bound, bound)
    b = jax.random.uniform(k2, (1, out_dim), jnp.float32, -bound, bound)
    return w, b


def init_params(key, vertex_dim, edge_dim, global_dim):
    msg_hid = upd_hid = msg_out = upd_out = 64
    fc1_units = fc2_units = 64
    n_aggr = 4  # mean, min, max, std ; scalers = ['identity']

    params = {"blocks": []}
    in_v, in_e = vertex_dim, edge_dim
    for _ in range(5):
        msg_in = 2 * in_v + in_e
        upd_in = n_aggr * msg_out + in_v
        key, k1, k2, k3, k4 = jax.random.split(key, 5)
        mw1, mb1 = _init_linear(k1, msg_in, msg_hid)
        mw2, mb2 = _init_linear(k2, msg_hid, msg_out)
        uw1, ub1 = _init_linear(k3, upd_in, upd_hid)
        uw2, ub2 = _init_linear(k4, upd_hid, upd_out)
        params["blocks"].append(
            {"msg": (mw1, mb1, mw2, mb2), "upd": (uw1, ub1, uw2, ub2)})
        in_v, in_e = upd_out, msg_out

    key, k1, k2, k3 = jax.random.split(key, 4)
    params["fc1"] = _init_linear(k1, upd_out + global_dim, fc1_units)
    params["fc2"] = _init_linear(k2, fc1_units, fc2_units)
    params["fc3"] = _init_linear(k3, fc2_units, 1)
    return params


def gnn_forward(params, x, edge_index, edge_attr, global_features, vertex_batch_map):
    n = x.shape[0]
    e = edge_attr.shape[0]
    tn = min(NODE_TILE, _round_up(n, 8))
    n_pad = _round_up(n, tn)
    e_pad = _round_up(e, EDGE_TILE)

    src = edge_index[0].astype(jnp.int32)     # x_j
    dst = edge_index[1].astype(jnp.int32)     # x_i / aggregation index
    src_g = _pad_rows(src, e_pad, 0)          # safe gather indices for padding
    dst_g = _pad_rows(dst, e_pad, 0)
    dst_pad = _pad_rows(dst, e_pad, -1)       # -1 never matches a real node
    dst_row = dst_pad.reshape(1, e_pad)
    dst_col = dst_pad.reshape(e_pad, 1)

    ea = _pad_rows(edge_attr, e_pad)
    xp = _pad_rows(x, n_pad)

    for blk in params["blocks"]:
        dv = xp.shape[1]
        # TODO(synk): the per-edge gathers x[dst]/x[src] stay in XLA; in-kernel
        # gather via scalar-prefetched indices + manual DMA is the next step.
        x_i = xp[dst_g]
        x_j = xp[src_g]
        mw1, mb1, mw2, mb2 = blk["msg"]
        msg = msg_mlp(x_i, x_j, ea,
                      mw1[:dv], mw1[dv:2 * dv], mw1[2 * dv:], mb1, mw2, mb2)
        f = msg.shape[1]
        uw1, ub1, uw2, ub2 = blk["upd"]
        upd = pna_update(msg, dst_row, dst_col, xp,
                         uw1[:4 * f], uw1[4 * f:], ub1, uw2, ub2, tn=tn)
        ea, xp = msg, upd

    emb = xp                                                  # (n_pad, 64)
    vb = _pad_rows(vertex_batch_map.astype(jnp.int32), n_pad, 0)
    glob = global_features[vb]                                # (n_pad, G)
    w1, b1 = params["fc1"]
    w2, b2 = params["fc2"]
    w3, b3 = params["fc3"]
    dv = emb.shape[1]
    w3p = jnp.pad(w3, ((0, 0), (0, 8 - w3.shape[1])))         # lane-pad 1 -> 8
    b3p = jnp.pad(b3, ((0, 0), (0, 8 - b3.shape[1])))
    q_pad = fc_head(emb, glob, w1[:dv], w1[dv:], b1, w2, b2, w3p, b3p, tn=tn)
    return emb[:n], q_pad[:n, :1]


# ---------------------------------------------------------------------------
# Pure-JAX reference (same math, no Pallas) for a correctness check
# ---------------------------------------------------------------------------
def _ref_mlp2(x, w1, b1, w2, b2):
    return jnp.maximum(x @ w1 + b1, 0.0) @ w2 + b2


def _ref_aggregate(msgs, dst, num_nodes):
    onehot = (dst[None, :] == jnp.arange(num_nodes)[:, None]).astype(jnp.float32)
    cnt = onehot.sum(-1, keepdims=True)
    cnt_s = jnp.maximum(cnt, 1.0)
    mean = (onehot @ msgs) / cnt_s
    mean_sq = (onehot @ (msgs * msgs)) / cnt_s
    std = jnp.sqrt(jnp.maximum(mean_sq - mean * mean, 0.0) + EPS)
    big = jnp.float32(BIG)
    sel = onehot[:, :, None] > 0
    minv = jnp.min(jnp.where(sel, msgs[None], big), axis=1)
    maxv = jnp.max(jnp.where(sel, msgs[None], -big), axis=1)
    has = cnt > 0
    return jnp.concatenate(
        [jnp.where(has, mean, 0.0), jnp.where(has, minv, 0.0),
         jnp.where(has, maxv, 0.0), jnp.where(has, std, 0.0)], axis=-1)


def ref_forward(params, x, edge_index, edge_attr, global_features, vertex_batch_map):
    for blk in params["blocks"]:
        x_i, x_j = x[edge_index[1]], x[edge_index[0]]
        msg = _ref_mlp2(jnp.concatenate([x_i, x_j, edge_attr], axis=1), *blk["msg"])
        agg = _ref_aggregate(msg, edge_index[1], x.shape[0])
        upd = _ref_mlp2(jnp.concatenate([agg, x], axis=1), *blk["upd"])
        edge_attr, x = msg, upd
    y = jnp.concatenate([x, global_features[vertex_batch_map]], axis=1)
    w1, b1 = params["fc1"]
    w2, b2 = params["fc2"]
    w3, b3 = params["fc3"]
    h = jnp.maximum(y @ w1 + b1, 0.0)
    h = jnp.maximum(h @ w2 + b2, 0.0)
    return x, h @ w3 + b3


# ---------------------------------------------------------------------------
if __name__ == "__main__":
    VERTEX_DIM, EDGE_DIM, GLOBAL_DIM = 8, 4, 6
    N_NODES, N_EDGES, N_GRAPHS = 16, 32, 2

    key = jax.random.PRNGKey(0)
    kp, kx, ke, kg = jax.random.split(key, 4)

    params = init_params(kp, VERTEX_DIM, EDGE_DIM, GLOBAL_DIM)

    x = jax.random.normal(kx, (N_NODES, VERTEX_DIM), jnp.float32)
    edge_attr = jax.random.normal(ke, (N_EDGES, EDGE_DIM), jnp.float32)
    global_features = jax.random.normal(kg, (N_GRAPHS, GLOBAL_DIM), jnp.float32)

    # deterministic connectivity: every node receives exactly 2 edges
    dst = jnp.arange(N_EDGES, dtype=jnp.int32) % N_NODES
    src = (jnp.arange(N_EDGES, dtype=jnp.int32) * 7 + 3) % N_NODES
    edge_index = jnp.stack([src, dst], axis=0)          # (2, E)
    vertex_batch_map = (jnp.arange(N_NODES, dtype=jnp.int32) >= N_NODES // 2).astype(jnp.int32)

    fwd = jax.jit(gnn_forward)
    emb, q = fwd(params, x, edge_index, edge_attr, global_features, vertex_batch_map)
    emb = jax.block_until_ready(emb)
    q = jax.block_until_ready(q)

    emb_ref, q_ref = ref_forward(params, x, edge_index, edge_attr,
                                 global_features, vertex_batch_map)
    assert emb.shape == (N_NODES, 64) and q.shape == (N_NODES, 1)
    assert jnp.allclose(emb, emb_ref, atol=1e-3, rtol=1e-3)
    assert jnp.allclose(q, q_ref, atol=1e-3, rtol=1e-3)

    print("KERNEL_OK")
</pallas_src>

<mosaic_0001>
module attributes {stable_mosaic.version = 11 : i64} {
  func.func @_msg_mlp_kernel(%arg0: i32, %arg1: memref<128x8xf32, #tpu.memory_space<vmem>>, %arg2: memref<128x8xf32, #tpu.memory_space<vmem>>, %arg3: memref<128x4xf32, #tpu.memory_space<vmem>>, %arg4: memref<8x64xf32, #tpu.memory_space<vmem>>, %arg5: memref<8x64xf32, #tpu.memory_space<vmem>>, %arg6: memref<4x64xf32, #tpu.memory_space<vmem>>, %arg7: memref<1x64xf32, #tpu.memory_space<vmem>>, %arg8: memref<64x64xf32, #tpu.memory_space<vmem>>, %arg9: memref<1x64xf32, #tpu.memory_space<vmem>>, %arg10: memref<128x64xf32, #tpu.memory_space<vmem>>) attributes {dimension_semantics = [#tpu.dimension_semantics<parallel>], iteration_bounds = array<i64: 1>, scalar_prefetch = 0 : i64, scratch_operands = 0 : i64, tpu.core_type = #tpu.core_type<tc>, window_params = [{transform_indices = @transform_0, window_bounds = array<i64: 128, 8>}, {transform_indices = @transform_1, window_bounds = array<i64: 128, 8>}, {transform_indices = @transform_2, window_bounds = array<i64: 128, 4>}, {pipeline_mode = #tpu.pipeline_mode<synchronous>, transform_indices = @transform_3, window_bounds = array<i64: 8, 64>}, {pipeline_mode = #tpu.pipeline_mode<synchronous>, transform_indices = @transform_4, window_bounds = array<i64: 8, 64>}, {pipeline_mode = #tpu.pipeline_mode<synchronous>, transform_indices = @transform_5, window_bounds = array<i64: 4, 64>}, {pipeline_mode = #tpu.pipeline_mode<synchronous>, transform_indices = @transform_6, window_bounds = array<i64: 1, 64>}, {pipeline_mode = #tpu.pipeline_mode<synchronous>, transform_indices = @transform_7, window_bounds = array<i64: 64, 64>}, {pipeline_mode = #tpu.pipeline_mode<synchronous>, transform_indices = @transform_8, window_bounds = array<i64: 1, 64>}, {transform_indices = @transform_9, window_bounds = array<i64: 128, 64>}]} {
    %c0 = arith.constant 0 : index
    %c0_0 = arith.constant 0 : index
    %0 = vector.load %arg1[%c0, %c0_0] : memref<128x8xf32, #tpu.memory_space<vmem>>, vector<128x8xf32>
    %c0_1 = arith.constant 0 : index
    %c0_2 = arith.constant 0 : index
    %1 = vector.load %arg4[%c0_1, %c0_2] : memref<8x64xf32, #tpu.memory_space<vmem>>, vector<8x64xf32>
    %cst = arith.constant dense<0.000000e+00> : vector<128x64xf32>
    %2 = tpu.matmul %0, %1, %cst {dimension_numbers = #tpu.dot_dimension_numbers<[1], [0], [0], [1], [0, 0, 1, 1], [], []>} : vector<128x8xf32>, vector<8x64xf32>, vector<128x64xf32> -> vector<128x64xf32>
    %c0_3 = arith.constant 0 : index
    %c0_4 = arith.constant 0 : index
    %3 = vector.load %arg2[%c0_3, %c0_4] : memref<128x8xf32, #tpu.memory_space<vmem>>, vector<128x8xf32>
    %c0_5 = arith.constant 0 : index
    %c0_6 = arith.constant 0 : index
    %4 = vector.load %arg5[%c0_5, %c0_6] : memref<8x64xf32, #tpu.memory_space<vmem>>, vector<8x64xf32>
    %cst_7 = arith.constant dense<0.000000e+00> : vector<128x64xf32>
    %5 = tpu.matmul %3, %4, %cst_7 {dimension_numbers = #tpu.dot_dimension_numbers<[1], [0], [0], [1], [0, 0, 1, 1], [], []>} : vector<128x8xf32>, vector<8x64xf32>, vector<128x64xf32> -> vector<128x64xf32>
    %6 = arith.addf %2, %5 : vector<128x64xf32>
    %c0_8 = arith.constant 0 : index
    %c0_9 = arith.constant 0 : index
    %7 = vector.load %arg3[%c0_8, %c0_9] : memref<128x4xf32, #tpu.memory_space<vmem>>, vector<128x4xf32>
    %c0_10 = arith.constant 0 : index
    %c0_11 = arith.constant 0 : index
    %8 = vector.load %arg6[%c0_10, %c0_11] : memref<4x64xf32, #tpu.memory_space<vmem>>, vector<4x64xf32>
    %cst_12 = arith.constant dense<0.000000e+00> : vector<128x64xf32>
    %9 = tpu.matmul %7, %8, %cst_12 {dimension_numbers = #tpu.dot_dimension_numbers<[1], [0], [0], [1], [0, 0, 1, 1], [], []>} : vector<128x4xf32>, vector<4x64xf32>, vector<128x64xf32> -> vector<128x64xf32>
    %10 = arith.addf %6, %9 : vector<128x64xf32>
    %c0_13 = arith.constant 0 : index
    %c0_14 = arith.constant 0 : index
    %11 = vector.load %arg7[%c0_13, %c0_14] : memref<1x64xf32, #tpu.memory_space<vmem>>, vector<1x64xf32>
    %12 = vector.broadcast %11 : vector<1x64xf32> to vector<128x64xf32>
    %13 = arith.addf %10, %12 : vector<128x64xf32>
    %cst_15 = arith.constant 0.000000e+00 : f32
    %14 = vector.broadcast %cst_15 : f32 to vector<128x64xf32>
    %15 = arith.maximumf %13, %14 : vector<128x64xf32>
    %c0_16 = arith.constant 0 : index
    %c0_17 = arith.constant 0 : index
    %16 = vector.load %arg8[%c0_16, %c0_17] : memref<64x64xf32, #tpu.memory_space<vmem>>, vector<64x64xf32>
    %cst_18 = arith.constant dense<0.000000e+00> : vector<128x64xf32>
    %17 = tpu.matmul %15, %16, %cst_18 {dimension_numbers = #tpu.dot_dimension_numbers<[1], [0], [0], [1], [0, 0, 1, 1], [], []>} : vector<128x64xf32>, vector<64x64xf32>, vector<128x64xf32> -> vector<128x64xf32>
    %c0_19 = arith.constant 0 : index
    %c0_20 = arith.constant 0 : index
    %18 = vector.load %arg9[%c0_19, %c0_20] : memref<1x64xf32, #tpu.memory_space<vmem>>, vector<1x64xf32>
    %19 = vector.broadcast %18 : vector<1x64xf32> to vector<128x64xf32>
    %20 = arith.addf %17, %19 : vector<128x64xf32>
    %c0_21 = arith.constant 0 : index
    %c0_22 = arith.constant 0 : index
    %21 = vector.load %arg10[%c0_21, %c0_22] : memref<128x64xf32, #tpu.memory_space<vmem>>, vector<128x64xf32>
    tpu.vector_store %arg10[%c0_21, %c0_22], %20 {strides = array<i32>} : memref<128x64xf32, #tpu.memory_space<vmem>>, vector<128x64xf32>,
    return
  }
  func.func @transform_0(%arg0: i32) -> (i32, i32) {
    %c0_i32 = arith.constant 0 : i32
    %c0_i32_0 = arith.constant 0 : i32
    return %arg0, %c0_i32 : i32, i32
  }
  func.func @transform_1(%arg0: i32) -> (i32, i32) {
    %c0_i32 = arith.constant 0 : i32
    %c0_i32_0 = arith.constant 0 : i32
    return %arg0, %c0_i32 : i32, i32
  }
  func.func @transform_2(%arg0: i32) -> (i32, i32) {
    %c0_i32 = arith.constant 0 : i32
    %c0_i32_0 = arith.constant 0 : i32
    return %arg0, %c0_i32 : i32, i32
  }
  func.func @transform_3(%arg0: i32) -> (i32, i32) {
    %c0_i32 = arith.constant 0 : i32
    %c0_i32_0 = arith.constant 0 : i32
    %c0_i32_1 = arith.constant 0 : i32
    return %c0_i32, %c0_i32_0 : i32, i32
  }
  func.func @transform_4(%arg0: i32) -> (i32, i32) {
    %c0_i32 = arith.constant 0 : i32
    %c0_i32_0 = arith.constant 0 : i32
    %c0_i32_1 = arith.constant 0 : i32
    return %c0_i32, %c0_i32_0 : i32, i32
  }
  func.func @transform_5(%arg0: i32) -> (i32, i32) {
    %c0_i32 = arith.constant 0 : i32
    %c0_i32_0 = arith.constant 0 : i32
    %c0_i32_1 = arith.constant 0 : i32
    return %c0_i32, %c0_i32_0 : i32, i32
  }
  func.func @transform_6(%arg0: i32) -> (i32, i32) {
    %c0_i32 = arith.constant 0 : i32
    %c0_i32_0 = arith.constant 0 : i32
    %c0_i32_1 = arith.constant 0 : i32
    return %c0_i32, %c0_i32_0 : i32, i32
  }
  func.func @transform_7(%arg0: i32) -> (i32, i32) {
    %c0_i32 = arith.constant 0 : i32
    %c0_i32_0 = arith.constant 0 : i32
    %c0_i32_1 = arith.constant 0 : i32
    return %c0_i32, %c0_i32_0 : i32, i32
  }
  func.func @transform_8(%arg0: i32) -> (i32, i32) {
    %c0_i32 = arith.constant 0 : i32
    %c0_i32_0 = arith.constant 0 : i32
    %c0_i32_1 = arith.constant 0 : i32
    return %c0_i32, %c0_i32_0 : i32, i32
  }
  func.func @transform_9(%arg0: i32) -> (i32, i32) {
    %c0_i32 = arith.constant 0 : i32
    %c0_i32_0 = arith.constant 0 : i32
    return %arg0, %c0_i32 : i32, i32
  }
}

module attributes {stable_mosaic.version = 11 : i64} {
  func.func @_pna_update_kernel(%arg0: i32, %arg1: i32, %arg2: memref<1x128xi32, #tpu.memory_space<vmem>>, %arg3: memref<128x1xi32, #tpu.memory_space<vmem>>, %arg4: memref<128x64xf32, #tpu.memory_space<vmem>>, %arg5: memref<16x8xf32, #tpu.memory_space<vmem>>, %arg6: memref<256x64xf32, #tpu.memory_space<vmem>>, %arg7: memref<8x64xf32, #tpu.memory_space<vmem>>, %arg8: memref<1x64xf32, #tpu.memory_space<vmem>>, %arg9: memref<64x64xf32, #tpu.memory_space<vmem>>, %arg10: memref<1x64xf32, #tpu.memory_space<vmem>>, %arg11: memref<16x64xf32, #tpu.memory_space<vmem>>, %arg12: memref<16x64xf32, #tpu.memory_space<vmem>>, %arg13: memref<16x64xf32, #tpu.memory_space<vmem>>, %arg14: memref<16x64xf32, #tpu.memory_space<vmem>>, %arg15: memref<16x64xf32, #tpu.memory_space<vmem>>, %arg16: memref<16x1xf32, #tpu.memory_space<vmem>>) attributes {dimension_semantics = [#tpu.dimension_semantics<parallel>, #tpu.dimension_semantics<arbitrary>], iteration_bounds = array<i64: 1, 1>, scalar_prefetch = 0 : i64, scratch_operands = 5 : i64, tpu.core_type = #tpu.core_type<tc>, window_params = [{transform_indices = @transform_0, window_bounds = array<i64: 1, 128>}, {transform_indices = @transform_1, window_bounds = array<i64: 128, 1>}, {transform_indices = @transform_2, window_bounds = array<i64: 128, 64>}, {transform_indices = @transform_3, window_bounds = array<i64: 16, 8>}, {pipeline_mode = #tpu.pipeline_mode<synchronous>, transform_indices = @transform_4, window_bounds = array<i64: 256, 64>}, {pipeline_mode = #tpu.pipeline_mode<synchronous>, transform_indices = @transform_5, window_bounds = array<i64: 8, 64>}, {pipeline_mode = #tpu.pipeline_mode<synchronous>, transform_indices = @transform_6, window_bounds = array<i64: 1, 64>}, {pipeline_mode = #tpu.pipeline_mode<synchronous>, transform_indices = @transform_7, window_bounds = array<i64: 64, 64>}, {pipeline_mode = #tpu.pipeline_mode<synchronous>, transform_indices = @transform_8, window_bounds = array<i64: 1, 64>}, {transform_indices = @transform_9, window_bounds = array<i64: 16, 64>}]} {
    %c0_i32 = arith.constant 0 : i32
    %0 = arith.cmpi eq, %arg1, %c0_i32 : i32
    %1 = arith.extui %0 : i1 to i32
    %c0_i32_0 = arith.constant 0 : i32
    %2 = arith.cmpi ne, %1, %c0_i32_0 : i32
    scf.if %2 {
      %cst_10 = arith.constant 0.000000e+00 : f32
      %24 = vector.broadcast %cst_10 : f32 to vector<16x64xf32>
      %c0_11 = arith.constant 0 : index
      %c0_12 = arith.constant 0 : index
      %25 = vector.load %arg12[%c0_11, %c0_12] : memref<16x64xf32, #tpu.memory_space<vmem>>, vector<16x64xf32>
      tpu.vector_store %arg12[%c0_11, %c0_12], %24 {strides = array<i32>} : memref<16x64xf32, #tpu.memory_space<vmem>>, vector<16x64xf32>,
      %cst_13 = arith.constant 0.000000e+00 : f32
      %26 = vector.broadcast %cst_13 : f32 to vector<16x64xf32>
      %c0_14 = arith.constant 0 : index
      %c0_15 = arith.constant 0 : index
      %27 = vector.load %arg13[%c0_14, %c0_15] : memref<16x64xf32, #tpu.memory_space<vmem>>, vector<16x64xf32>
      tpu.vector_store %arg13[%c0_14, %c0_15], %26 {strides = array<i32>} : memref<16x64xf32, #tpu.memory_space<vmem>>, vector<16x64xf32>,
      %cst_16 = arith.constant 0.000000e+00 : f32
      %28 = vector.broadcast %cst_16 : f32 to vector<16x1xf32>
      %c0_17 = arith.constant 0 : index
      %c0_18 = arith.constant 0 : index
      %29 = vector.load %arg16[%c0_17, %c0_18] : memref<16x1xf32, #tpu.memory_space<vmem>>, vector<16x1xf32>
      tpu.vector_store %arg16[%c0_17, %c0_18], %28 {strides = array<i32>} : memref<16x1xf32, #tpu.memory_space<vmem>>, vector<16x1xf32>,
      %cst_19 = arith.constant 1.000000e+30 : f32
      %30 = vector.broadcast %cst_19 : f32 to vector<16x64xf32>
      %c0_20 = arith.constant 0 : index
      %c0_21 = arith.constant 0 : index
      %31 = vector.load %arg14[%c0_20, %c0_21] : memref<16x64xf32, #tpu.memory_space<vmem>>, vector<16x64xf32>
      tpu.vector_store %arg14[%c0_20, %c0_21], %30 {strides = array<i32>} : memref<16x64xf32, #tpu.memory_space<vmem>>, vector<16x64xf32>,
      %cst_22 = arith.constant -1.000000e+30 : f32
      %32 = vector.broadcast %cst_22 : f32 to vector<16x64xf32>
      %c0_23 = arith.constant 0 : index
      %c0_24 = arith.constant 0 : index
      %33 = vector.load %arg15[%c0_23, %c0_24] : memref<16x64xf32, #tpu.memory_space<vmem>>, vector<16x64xf32>
      tpu.vector_store %arg15[%c0_23, %c0_24], %32 {strides = array<i32>} : memref<16x64xf32, #tpu.memory_space<vmem>>, vector<16x64xf32>,
    } else {
    }
    %c0 = arith.constant 0 : index
    %c0_1 = arith.constant 0 : index
    %3 = vector.load %arg4[%c0, %c0_1] : memref<128x64xf32, #tpu.memory_space<vmem>>, vector<128x64xf32>
    %c0_2 = arith.constant 0 : index
    %c0_3 = arith.constant 0 : index
    %4 = vector.load %arg2[%c0_2, %c0_3] : memref<1x128xi32, #tpu.memory_space<vmem>>, vector<1x128xi32>
    %c0_4 = arith.constant 0 : index
    %c0_5 = arith.constant 0 : index
    %5 = vector.load %arg3[%c0_4, %c0_5] : memref<128x1xi32, #tpu.memory_space<vmem>>, vector<128x1xi32>
    %c16_i32 = arith.constant 16 : i32
    %6 = arith.muli %arg0, %c16_i32 : i32
    %7 = tpu.iota {dimensions = array<i32: 0>} : vector<16x128xi32>
    %8 = vector.broadcast %6 : i32 to vector<16x128xi32>
    %9 = arith.addi %8, %7 : vector<16x128xi32>
    %10 = vector.broadcast %4 : vector<1x128xi32> to vector<16x128xi32>
    %11 = arith.cmpi eq, %9, %10 : vector<16x128xi32>
    %12 = arith.extui %11 : vector<16x128xi1> to vector<16x128xi32>
    %13 = arith.sitofp %12 : vector<16x128xi32> to vector<16x128xf32>
    %14 = vector.shape_cast %13 : vector<16x128xf32> to vector<1x16x128xf32>
    %cst = arith.constant dense<0.000000e+00> : vector<1xf32>
    %15 = vector.multi_reduction <add>, %14, %cst [1, 2] : vector<1x16x128xf32> to vector<1xf32>
    %16 = vector.shape_cast %15 : vector<1xf32> to vector<1x1x1xf32>
    %17 = vector.extract %16[0, 0, 0] : f32 from vector<1x1x1xf32>
    %cst_6 = arith.constant 0.000000e+00 : f32
    %18 = arith.cmpf ogt, %17, %cst_6 : f32
    %19 = arith.extui %18 : i1 to i32
    %c0_i32_7 = arith.constant 0 : i32
    %20 = arith.cmpi ne, %19, %c0_i32_7 : i32
    scf.if %20 {
      %c0_10 = arith.constant 0 : index
      %c0_11 = arith.constant 0 : index
      %24 = vector.load %arg12[%c0_10, %c0_11] : memref<16x64xf32, #tpu.memory_space<vmem>>, vector<16x64xf32>
      %cst_12 = arith.constant dense<0.000000e+00> : vector<16x64xf32>
      %25 = tpu.matmul %13, %3, %cst_12 {dimension_numbers = #tpu.dot_dimension_numbers<[1], [0], [0], [1], [0, 0, 1, 1], [], []>} : vector<16x128xf32>, vector<128x64xf32>, vector<16x64xf32> -> vector<16x64xf32>
      %26 = arith.addf %24, %25 : vector<16x64xf32>
      %c0_13 = arith.constant 0 : index
      %c0_14 = arith.constant 0 : index
      %27 = vector.load %arg12[%c0_13, %c0_14] : memref<16x64xf32, #tpu.memory_space<vmem>>, vector<16x64xf32>
      tpu.vector_store %arg12[%c0_13, %c0_14], %26 {strides = array<i32>} : memref<16x64xf32, #tpu.memory_space<vmem>>, vector<16x64xf32>,
      %c0_15 = arith.constant 0 : index
      %c0_16 = arith.constant 0 : index
      %28 = vector.load %arg13[%c0_15, %c0_16] : memref<16x64xf32, #tpu.memory_space<vmem>>, vector<16x64xf32>
      %29 = arith.mulf %3, %3 : vector<128x64xf32>
      %cst_17 = arith.constant dense<0.000000e+00> : vector<16x64xf32>
      %30 = tpu.matmul %13, %29, %cst_17 {dimension_numbers = #tpu.dot_dimension_numbers<[1], [0], [0], [1], [0, 0, 1, 1], [], []>} : vector<16x128xf32>, vector<128x64xf32>, vector<16x64xf32> -> vector<16x64xf32>
      %31 = arith.addf %28, %30 : vector<16x64xf32>
      %c0_18 = arith.constant 0 : index
      %c0_19 = arith.constant 0 : index
      %32 = vector.load %arg13[%c0_18, %c0_19] : memref<16x64xf32, #tpu.memory_space<vmem>>, vector<16x64xf32>
      tpu.vector_store %arg13[%c0_18, %c0_19], %31 {strides = array<i32>} : memref<16x64xf32, #tpu.memory_space<vmem>>, vector<16x64xf32>,
      %c0_20 = arith.constant 0 : index
      %c0_21 = arith.constant 0 : index
      %33 = vector.load %arg16[%c0_20, %c0_21] : memref<16x1xf32, #tpu.memory_space<vmem>>, vector<16x1xf32>
      %cst_22 = arith.constant dense<0.000000e+00> : vector<16xf32>
      %34 = vector.multi_reduction <add>, %13, %cst_22 [1] : vector<16x128xf32> to vector<16xf32>
      %35 = vector.shape_cast %34 : vector<16xf32> to vector<16x1xf32>
      %36 = arith.addf %33, %35 : vector<16x1xf32>
      %c0_23 = arith.constant 0 : index
      %c0_24 = arith.constant 0 : index
      %37 = vector.load %arg16[%c0_23, %c0_24] : memref<16x1xf32, #tpu.memory_space<vmem>>, vector<16x1xf32>
      tpu.vector_store %arg16[%c0_23, %c0_24], %36 {strides = array<i32>} : memref<16x1xf32, #tpu.memory_space<vmem>>, vector<16x1xf32>,
      %c0_i32_25 = arith.constant 0 : i32
      %c16_i32_26 = arith.constant 16 : i32
      %38 = arith.addi %c0_i32_25, %c16_i32_26 : i32
      %c1_i32 = arith.constant 1 : i32
      scf.for %arg17 = %c0_i32_25 to %38 step %c1_i32  : i32 {
        %c1_i32_28 = arith.constant 1 : i32
        %39 = arith.muli %arg17, %c1_i32_28 : i32
        %c0_i32_29 = arith.constant 0 : i32
        %40 = arith.addi %c0_i32_29, %39 : i32
        %41 = arith.addi %6, %40 : i32
        %42 = vector.broadcast %41 : i32 to vector<128x1xi32>
        %43 = arith.cmpi eq, %5, %42 : vector<128x1xi32>
        %cst_30 = arith.constant 1.000000e+30 : f32
        %44 = vector.shape_cast %43 : vector<128x1xi1> to vector<128x1xi1>
        %45 = vector.broadcast %44 : vector<128x1xi1> to vector<128x64xi1>
        %46 = vector.broadcast %cst_30 : f32 to vector<128x64xf32>
        %47 = arith.select %45, %3, %46 : vector<128x64xi1>, vector<128x64xf32>
        %cst_31 = arith.constant dense<0x7F800000> : vector<64xf32>
        %48 = vector.multi_reduction <minimumf>, %47, %cst_31 [0] : vector<128x64xf32> to vector<64xf32>
        %49 = vector.shape_cast %48 : vector<64xf32> to vector<1x64xf32>
        %cst_32 = arith.constant -1.000000e+30 : f32
        %50 = vector.shape_cast %43 : vector<128x1xi1> to vector<128x1xi1>
        %51 = vector.broadcast %50 : vector<128x1xi1> to vector<128x64xi1>
        %52 = vector.broadcast %cst_32 : f32 to vector<128x64xf32>
        %53 = arith.select %51, %3, %52 : vector<128x64xi1>, vector<128x64xf32>
        %cst_33 = arith.constant dense<0xFF800000> : vector<64xf32>
        %54 = vector.multi_reduction <maximumf>, %53, %cst_33 [0] : vector<128x64xf32> to vector<64xf32>
        %55 = vector.shape_cast %54 : vector<64xf32> to vector<1x64xf32>
        %56 = arith.index_cast %40 : i32 to index
        %c0_34 = arith.constant 0 : index
        %57 = vector.load %arg14[%56, %c0_34] : memref<16x64xf32, #tpu.memory_space<vmem>>, vector<1x64xf32>
        %58 = arith.minimumf %57, %49 : vector<1x64xf32>
        %59 = arith.index_cast %40 : i32 to index
        %c0_35 = arith.constant 0 : index
        %60 = vector.load %arg14[%59, %c0_35] : memref<16x64xf32, #tpu.memory_space<vmem>>, vector<1x64xf32>
        tpu.vector_store %arg14[%59, %c0_35], %58 {strides = array<i32>} : memref<16x64xf32, #tpu.memory_space<vmem>>, vector<1x64xf32>,
        %61 = arith.index_cast %40 : i32 to index
        %c0_36 = arith.constant 0 : index
        %62 = vector.load %arg15[%61, %c0_36] : memref<16x64xf32, #tpu.memory_space<vmem>>, vector<1x64xf32>
        %63 = arith.maximumf %62, %55 : vector<1x64xf32>
        %64 = arith.index_cast %40 : i32 to index
        %c0_37 = arith.constant 0 : index
        %65 = vector.load %arg15[%64, %c0_37] : memref<16x64xf32, #tpu.memory_space<vmem>>, vector<1x64xf32>
        tpu.vector_store %arg15[%64, %c0_37], %63 {strides = array<i32>} : memref<16x64xf32, #tpu.memory_space<vmem>>, vector<1x64xf32>,
      }
      %c16_i32_27 = arith.constant 16 : i32
    } else {
    }
    %c0_i32_8 = arith.constant 0 : i32
    %21 = arith.cmpi eq, %arg1, %c0_i32_8 : i32
    %22 = arith.extui %21 : i1 to i32
    %c0_i32_9 = arith.constant 0 : i32
    %23 = arith.cmpi ne, %22, %c0_i32_9 : i32
    scf.if %23 {
      %c0_10 = arith.constant 0 : index
      %c0_11 = arith.constant 0 : index
      %24 = vector.load %arg16[%c0_10, %c0_11] : memref<16x1xf32, #tpu.memory_space<vmem>>, vector<16x1xf32>
      %cst_12 = arith.constant 0.000000e+00 : f32
      %25 = vector.broadcast %cst_12 : f32 to vector<16x1xf32>
      %26 = arith.cmpf ogt, %24, %25 : vector<16x1xf32>
      %cst_13 = arith.constant 1.000000e+00 : f32
      %27 = vector.broadcast %cst_13 : f32 to vector<16x1xf32>
      %28 = arith.maximumf %24, %27 : vector<16x1xf32>
      %cst_14 = arith.constant 1.000000e+00 : f32
      %29 = vector.broadcast %cst_14 : f32 to vector<16x1xf32>
      %30 = arith.divf %29, %28 : vector<16x1xf32>
      %c0_15 = arith.constant 0 : index
      %c0_16 = arith.constant 0 : index
      %31 = vector.load %arg12[%c0_15, %c0_16] : memref<16x64xf32, #tpu.memory_space<vmem>>, vector<16x64xf32>
      %32 = vector.broadcast %30 : vector<16x1xf32> to vector<16x64xf32>
      %33 = arith.mulf %31, %32 : vector<16x64xf32>
      %c0_17 = arith.constant 0 : index
      %c0_18 = arith.constant 0 : index
      %34 = vector.load %arg13[%c0_17, %c0_18] : memref<16x64xf32, #tpu.memory_space<vmem>>, vector<16x64xf32>
      %35 = vector.broadcast %30 : vector<16x1xf32> to vector<16x64xf32>
      %36 = arith.mulf %34, %35 : vector<16x64xf32>
      %37 = arith.mulf %33, %33 : vector<16x64xf32>
      %38 = arith.subf %36, %37 : vector<16x64xf32>
      %cst_19 = arith.constant 0.000000e+00 : f32
      %39 = vector.broadcast %cst_19 : f32 to vector<16x64xf32>
      %40 = arith.maximumf %38, %39 : vector<16x64xf32>
      %cst_20 = arith.constant 9.99999974E-6 : f32
      %41 = vector.broadcast %cst_20 : f32 to vector<16x64xf32>
      %42 = arith.addf %40, %41 : vector<16x64xf32>
      %43 = math.sqrt %42 : vector<16x64xf32>
      %cst_21 = arith.constant 0.000000e+00 : f32
      %44 = vector.shape_cast %26 : vector<16x1xi1> to vector<16x1xi1>
      %45 = vector.broadcast %44 : vector<16x1xi1> to vector<16x64xi1>
      %46 = vector.broadcast %cst_21 : f32 to vector<16x64xf32>
      %47 = arith.select %45, %33, %46 : vector<16x64xi1>, vector<16x64xf32>
      %cst_22 = arith.constant 0.000000e+00 : f32
      %48 = vector.shape_cast %26 : vector<16x1xi1> to vector<16x1xi1>
      %49 = vector.broadcast %48 : vector<16x1xi1> to vector<16x64xi1>
      %50 = vector.broadcast %cst_22 : f32 to vector<16x64xf32>
      %51 = arith.select %49, %43, %50 : vector<16x64xi1>, vector<16x64xf32>
      %c0_23 = arith.constant 0 : index
      %c0_24 = arith.constant 0 : index
      %52 = vector.load %arg14[%c0_23, %c0_24] : memref<16x64xf32, #tpu.memory_space<vmem>>, vector<16x64xf32>
      %cst_25 = arith.constant 0.000000e+00 : f32
      %53 = vector.shape_cast %26 : vector<16x1xi1> to vector<16x1xi1>
      %54 = vector.broadcast %53 : vector<16x1xi1> to vector<16x64xi1>
      %55 = vector.broadcast %cst_25 : f32 to vector<16x64xf32>
      %56 = arith.select %54, %52, %55 : vector<16x64xi1>, vector<16x64xf32>
      %c0_26 = arith.constant 0 : index
      %c0_27 = arith.constant 0 : index
      %57 = vector.load %arg15[%c0_26, %c0_27] : memref<16x64xf32, #tpu.memory_space<vmem>>, vector<16x64xf32>
      %cst_28 = arith.constant 0.000000e+00 : f32
      %58 = vector.shape_cast %26 : vector<16x1xi1> to vector<16x1xi1>
      %59 = vector.broadcast %58 : vector<16x1xi1> to vector<16x64xi1>
      %60 = vector.broadcast %cst_28 : f32 to vector<16x64xf32>
      %61 = arith.select %59, %57, %60 : vector<16x64xi1>, vector<16x64xf32>
      %c0_29 = arith.constant 0 : index
      %c0_30 = arith.constant 0 : index
      %62 = vector.load %arg6[%c0_29, %c0_30] : memref<256x64xf32, #tpu.memory_space<vmem>>, vector<64x64xf32>
      %cst_31 = arith.constant dense<0.000000e+00> : vector<16x64xf32>
      %63 = tpu.matmul %47, %62, %cst_31 {dimension_numbers = #tpu.dot_dimension_numbers<[1], [0], [0], [1], [0, 0, 1, 1], [], []>} : vector<16x64xf32>, vector<64x64xf32>, vector<16x64xf32> -> vector<16x64xf32>
      %c64 = arith.constant 64 : index
      %c0_32 = arith.constant 0 : index
      %64 = vector.load %arg6[%c64, %c0_32] : memref<256x64xf32, #tpu.memory_space<vmem>>, vector<64x64xf32>
      %cst_33 = arith.constant dense<0.000000e+00> : vector<16x64xf32>
      %65 = tpu.matmul %56, %64, %cst_33 {dimension_numbers = #tpu.dot_dimension_numbers<[1], [0], [0], [1], [0, 0, 1, 1], [], []>} : vector<16x64xf32>, vector<64x64xf32>, vector<16x64xf32> -> vector<16x64xf32>
      %66 = arith.addf %63, %65 : vector<16x64xf32>
      %c128 = arith.constant 128 : index
      %c0_34 = arith.constant 0 : index
      %67 = vector.load %arg6[%c128, %c0_34] : memref<256x64xf32, #tpu.memory_space<vmem>>, vector<64x64xf32>
      %cst_35 = arith.constant dense<0.000000e+00> : vector<16x64xf32>
      %68 = tpu.matmul %61, %67, %cst_35 {dimension_numbers = #tpu.dot_dimension_numbers<[1], [0], [0], [1], [0, 0, 1, 1], [], []>} : vector<16x64xf32>, vector<64x64xf32>, vector<16x64xf32> -> vector<16x64xf32>
      %69 = arith.addf %66, %68 : vector<16x64xf32>
      %c192 = arith.constant 192 : index
      %c0_36 = arith.constant 0 : index
      %70 = vector.load %arg6[%c192, %c0_36] : memref<256x64xf32, #tpu.memory_space<vmem>>, vector<64x64xf32>
      %cst_37 = arith.constant dense<0.000000e+00> : vector<16x64xf32>
      %71 = tpu.matmul %51, %70, %cst_37 {dimension_numbers = #tpu.dot_dimension_numbers<[1], [0], [0], [1], [0, 0, 1, 1], [], []>} : vector<16x64xf32>, vector<64x64xf32>, vector<16x64xf32> -> vector<16x64xf32>
      %72 = arith.addf %69, %71 : vector<16x64xf32>
      %c0_38 = arith.constant 0 : index
      %c0_39 = arith.constant 0 : index
      %73 = vector.load %arg5[%c0_38, %c0_39] : memref<16x8xf32, #tpu.memory_space<vmem>>, vector<16x8xf32>
      %c0_40 = arith.constant 0 : index
      %c0_41 = arith.constant 0 : index
      %74 = vector.load %arg7[%c0_40, %c0_41] : memref<8x64xf32, #tpu.memory_space<vmem>>, vector<8x64xf32>
      %cst_42 = arith.constant dense<0.000000e+00> : vector<16x64xf32>
      %75 = tpu.matmul %73, %74, %cst_42 {dimension_numbers = #tpu.dot_dimension_numbers<[1], [0], [0], [1], [0, 0, 1, 1], [], []>} : vector<16x8xf32>, vector<8x64xf32>, vector<16x64xf32> -> vector<16x64xf32>
      %76 = arith.addf %72, %75 : vector<16x64xf32>
      %c0_43 = arith.constant 0 : index
      %c0_44 = arith.constant 0 : index
      %77 = vector.load %arg8[%c0_43, %c0_44] : memref<1x64xf32, #tpu.memory_space<vmem>>, vector<1x64xf32>
      %78 = vector.broadcast %77 : vector<1x64xf32> to vector<16x64xf32>
      %79 = arith.addf %76, %78 : vector<16x64xf32>
      %cst_45 = arith.constant 0.000000e+00 : f32
      %80 = vector.broadcast %cst_45 : f32 to vector<16x64xf32>
      %81 = arith.maximumf %79, %80 : vector<16x64xf32>
      %c0_46 = arith.constant 0 : index
      %c0_47 = arith.constant 0 : index
      %82 = vector.load %arg9[%c0_46, %c0_47] : memref<64x64xf32, #tpu.memory_space<vmem>>, vector<64x64xf32>
      %cst_48 = arith.constant dense<0.000000e+00> : vector<16x64xf32>
      %83 = tpu.matmul %81, %82, %cst_48 {dimension_numbers = #tpu.dot_dimension_numbers<[1], [0], [0], [1], [0, 0, 1, 1], [], []>} : vector<16x64xf32>, vector<64x64xf32>, vector<16x64xf32> -> vector<16x64xf32>
      %c0_49 = arith.constant 0 : index
      %c0_50 = arith.constant 0 : index
      %84 = vector.load %arg10[%c0_49, %c0_50] : memref<1x64xf32, #tpu.memory_space<vmem>>, vector<1x64xf32>
      %85 = vector.broadcast %84 : vector<1x64xf32> to vector<16x64xf32>
      %86 = arith.addf %83, %85 : vector<16x64xf32>
      %c0_51 = arith.constant 0 : index
      %c0_52 = arith.constant 0 : index
      %87 = vector.load %arg11[%c0_51, %c0_52] : memref<16x64xf32, #tpu.memory_space<vmem>>, vector<16x64xf32>
      tpu.vector_store %arg11[%c0_51, %c0_52], %86 {strides = array<i32>} : memref<16x64xf32, #tpu.memory_space<vmem>>, vector<16x64xf32>,
    } else {
    }
    return
  }
  func.func @transform_0(%arg0: i32, %arg1: i32) -> (i32, i32) {
    %c0_i32 = arith.constant 0 : i32
    %c0_i32_0 = arith.constant 0 : i32
    return %c0_i32, %arg1 : i32, i32
  }
  func.func @transform_1(%arg0: i32, %arg1: i32) -> (i32, i32) {
    %c0_i32 = arith.constant 0 : i32
    %c0_i32_0 = arith.constant 0 : i32
    return %arg1, %c0_i32 : i32, i32
  }
  func.func @transform_2(%arg0: i32, %arg1: i32) -> (i32, i32) {
    %c0_i32 = arith.constant 0 : i32
    %c0_i32_0 = arith.constant 0 : i32
    return %arg1, %c0_i32 : i32, i32
  }
  func.func @transform_3(%arg0: i32, %arg1: i32) -> (i32, i32) {
    %c0_i32 = arith.constant 0 : i32
    %c0_i32_0 = arith.constant 0 : i32
    return %arg0, %c0_i32 : i32, i32
  }
  func.func @transform_4(%arg0: i32, %arg1: i32) -> (i32, i32) {
    %c0_i32 = arith.constant 0 : i32
    %c0_i32_0 = arith.constant 0 : i32
    %c0_i32_1 = arith.constant 0 : i32
    return %c0_i32, %c0_i32_0 : i32, i32
  }
  func.func @transform_5(%arg0: i32, %arg1: i32) -> (i32, i32) {
    %c0_i32 = arith.constant 0 : i32
    %c0_i32_0 = arith.constant 0 : i32
    %c0_i32_1 = arith.constant 0 : i32
    return %c0_i32, %c0_i32_0 : i32, i32
  }
  func.func @transform_6(%arg0: i32, %arg1: i32) -> (i32, i32) {
    %c0_i32 = arith.constant 0 : i32
    %c0_i32_0 = arith.constant 0 : i32
    %c0_i32_1 = arith.constant 0 : i32
    return %c0_i32, %c0_i32_0 : i32, i32
  }
  func.func @transform_7(%arg0: i32, %arg1: i32) -> (i32, i32) {
    %c0_i32 = arith.constant 0 : i32
    %c0_i32_0 = arith.constant 0 : i32
    %c0_i32_1 = arith.constant 0 : i32
    return %c0_i32, %c0_i32_0 : i32, i32
  }
  func.func @transform_8(%arg0: i32, %arg1: i32) -> (i32, i32) {
    %c0_i32 = arith.constant 0 : i32
    %c0_i32_0 = arith.constant 0 : i32
    %c0_i32_1 = arith.constant 0 : i32
    return %c0_i32, %c0_i32_0 : i32, i32
  }
  func.func @transform_9(%arg0: i32, %arg1: i32) -> (i32, i32) {
    %c0_i32 = arith.constant 0 : i32
    %c0_i32_0 = arith.constant 0 : i32
    return %arg0, %c0_i32 : i32, i32
  }
}

module attributes {stable_mosaic.version = 11 : i64} {
  func.func @_msg_mlp_kernel(%arg0: i32, %arg1: memref<128x64xf32, #tpu.memory_space<vmem>>, %arg2: memref<128x64xf32, #tpu.memory_space<vmem>>, %arg3: memref<128x64xf32, #tpu.memory_space<vmem>>, %arg4: memref<64x64xf32, #tpu.memory_space<vmem>>, %arg5: memref<64x64xf32, #tpu.memory_space<vmem>>, %arg6: memref<64x64xf32, #tpu.memory_space<vmem>>, %arg7: memref<1x64xf32, #tpu.memory_space<vmem>>, %arg8: memref<64x64xf32, #tpu.memory_space<vmem>>, %arg9: memref<1x64xf32, #tpu.memory_space<vmem>>, %arg10: memref<128x64xf32, #tpu.memory_space<vmem>>) attributes {dimension_semantics = [#tpu.dimension_semantics<parallel>], iteration_bounds = array<i64: 1>, scalar_prefetch = 0 : i64, scratch_operands = 0 : i64, tpu.core_type = #tpu.core_type<tc>, window_params = [{transform_indices = @transform_0, window_bounds = array<i64: 128, 64>}, {transform_indices = @transform_1, window_bounds = array<i64: 128, 64>}, {transform_indices = @transform_2, window_bounds = array<i64: 128, 64>}, {pipeline_mode = #tpu.pipeline_mode<synchronous>, transform_indices = @transform_3, window_bounds = array<i64: 64, 64>}, {pipeline_mode = #tpu.pipeline_mode<synchronous>, transform_indices = @transform_4, window_bounds = array<i64: 64, 64>}, {pipeline_mode = #tpu.pipeline_mode<synchronous>, transform_indices = @transform_5, window_bounds = array<i64: 64, 64>}, {pipeline_mode = #tpu.pipeline_mode<synchronous>, transform_indices = @transform_6, window_bounds = array<i64: 1, 64>}, {pipeline_mode = #tpu.pipeline_mode<synchronous>, transform_indices = @transform_7, window_bounds = array<i64: 64, 64>}, {pipeline_mode = #tpu.pipeline_mode<synchronous>, transform_indices = @transform_8, window_bounds = array<i64: 1, 64>}, {transform_indices = @transform_9, window_bounds = array<i64: 128, 64>}]} {
    %c0 = arith.constant 0 : index
    %c0_0 = arith.constant 0 : index
    %0 = vector.load %arg1[%c0, %c0_0] : memref<128x64xf32, #tpu.memory_space<vmem>>, vector<128x64xf32>
    %c0_1 = arith.constant 0 : index
    %c0_2 = arith.constant 0 : index
    %1 = vector.load %arg4[%c0_1, %c0_2] : memref<64x64xf32, #tpu.memory_space<vmem>>, vector<64x64xf32>
    %cst = arith.constant dense<0.000000e+00> : vector<128x64xf32>
    %2 = tpu.matmul %0, %1, %cst {dimension_numbers = #tpu.dot_dimension_numbers<[1], [0], [0], [1], [0, 0, 1, 1], [], []>} : vector<128x64xf32>, vector<64x64xf32>, vector<128x64xf32> -> vector<128x64xf32>
    %c0_3 = arith.constant 0 : index
    %c0_4 = arith.constant 0 : index
    %3 = vector.load %arg2[%c0_3, %c0_4] : memref<128x64xf32, #tpu.memory_space<vmem>>, vector<128x64xf32>
    %c0_5 = arith.constant 0 : index
    %c0_6 = arith.constant 0 : index
    %4 = vector.load %arg5[%c0_5, %c0_6] : memref<64x64xf32, #tpu.memory_space<vmem>>, vector<64x64xf32>
    %cst_7 = arith.constant dense<0.000000e+00> : vector<128x64xf32>
    %5 = tpu.matmul %3, %4, %cst_7 {dimension_numbers = #tpu.dot_dimension_numbers<[1], [0], [0], [1], [0, 0, 1, 1], [], []>} : vector<128x64xf32>, vector<64x64xf32>, vector<128x64xf32> -> vector<128x64xf32>
    %6 = arith.addf %2, %5 : vector<128x64xf32>
    %c0_8 = arith.constant 0 : index
    %c0_9 = arith.constant 0 : index
    %7 = vector.load %arg3[%c0_8, %c0_9] : memref<128x64xf32, #tpu.memory_space<vmem>>, vector<128x64xf32>
    %c0_10 = arith.constant 0 : index
    %c0_11 = arith.constant 0 : index
    %8 = vector.load %arg6[%c0_10, %c0_11] : memref<64x64xf32, #tpu.memory_space<vmem>>, vector<64x64xf32>
    %cst_12 = arith.constant dense<0.000000e+00> : vector<128x64xf32>
    %9 = tpu.matmul %7, %8, %cst_12 {dimension_numbers = #tpu.dot_dimension_numbers<[1], [0], [0], [1], [0, 0, 1, 1], [], []>} : vector<128x64xf32>, vector<64x64xf32>, vector<128x64xf32> -> vector<128x64xf32>
    %10 = arith.addf %6, %9 : vector<128x64xf32>
    %c0_13 = arith.constant 0 : index
    %c0_14 = arith.constant 0 : index
    %11 = vector.load %arg7[%c0_13, %c0_14] : memref<1x64xf32, #tpu.memory_space<vmem>>, vector<1x64xf32>
    %12 = vector.broadcast %11 : vector<1x64xf32> to vector<128x64xf32>
    %13 = arith.addf %10, %12 : vector<128x64xf32>
    %cst_15 = arith.constant 0.000000e+00 : f32
    %14 = vector.broadcast %cst_15 : f32 to vector<128x64xf32>
    %15 = arith.maximumf %13, %14 : vector<128x64xf32>
    %c0_16 = arith.constant 0 : index
    %c0_17 = arith.constant 0 : index
    %16 = vector.load %arg8[%c0_16, %c0_17] : memref<64x64xf32, #tpu.memory_space<vmem>>, vector<64x64xf32>
    %cst_18 = arith.constant dense<0.000000e+00> : vector<128x64xf32>
    %17 = tpu.matmul %15, %16, %cst_18 {dimension_numbers = #tpu.dot_dimension_numbers<[1], [0], [0], [1], [0, 0, 1, 1], [], []>} : vector<128x64xf32>, vector<64x64xf32>, vector<128x64xf32> -> vector<128x64xf32>
    %c0_19 = arith.constant 0 : index
    %c0_20 = arith.constant 0 : index
    %18 = vector.load %arg9[%c0_19, %c0_20] : memref<1x64xf32, #tpu.memory_space<vmem>>, vector<1x64xf32>
    %19 = vector.broadcast %18 : vector<1x64xf32> to vector<128x64xf32>
    %20 = arith.addf %17, %19 : vector<128x64xf32>
    %c0_21 = arith.constant 0 : index
    %c0_22 = arith.constant 0 : index
    %21 = vector.load %arg10[%c0_21, %c0_22] : memref<128x64xf32, #tpu.memory_space<vmem>>, vector<128x64xf32>
    tpu.vector_store %arg10[%c0_21, %c0_22], %20 {strides = array<i32>} : memref<128x64xf32, #tpu.memory_space<vmem>>, vector<128x64xf32>,
    return
  }
  func.func @transform_0(%arg0: i32) -> (i32, i32) {
    %c0_i32 = arith.constant 0 : i32
    %c0_i32_0 = arith.constant 0 : i32
    return %arg0, %c0_i32 : i32, i32
  }
  func.func @transform_1(%arg0: i32) -> (i32, i32) {
    %c0_i32 = arith.constant 0 : i32
    %c0_i32_0 = arith.constant 0 : i32
    return %arg0, %c0_i32 : i32, i32
  }
  func.func @transform_2(%arg0: i32) -> (i32, i32) {
    %c0_i32 = arith.constant 0 : i32
    %c0_i32_0 = arith.constant 0 : i32
    return %arg0, %c0_i32 : i32, i32
  }
  func.func @transform_3(%arg0: i32) -> (i32, i32) {
    %c0_i32 = arith.constant 0 : i32
    %c0_i32_0 = arith.constant 0 : i32
    %c0_i32_1 = arith.constant 0 : i32
    return %c0_i32, %c0_i32_0 : i32, i32
  }
  func.func @transform_4(%arg0: i32) -> (i32, i32) {
    %c0_i32 = arith.constant 0 : i32
    %c0_i32_0 = arith.constant 0 : i32
    %c0_i32_1 = arith.constant 0 : i32
    return %c0_i32, %c0_i32_0 : i32, i32
  }
  func.func @transform_5(%arg0: i32) -> (i32, i32) {
    %c0_i32 = arith.constant 0 : i32
    %c0_i32_0 = arith.constant 0 : i32
    %c0_i32_1 = arith.constant 0 : i32
    return %c0_i32, %c0_i32_0 : i32, i32
  }
  func.func @transform_6(%arg0: i32) -> (i32, i32) {
    %c0_i32 = arith.constant 0 : i32
    %c0_i32_0 = arith.constant 0 : i32
    %c0_i32_1 = arith.constant 0 : i32
    return %c0_i32, %c0_i32_0 : i32, i32
  }
  func.func @transform_7(%arg0: i32) -> (i32, i32) {
    %c0_i32 = arith.constant 0 : i32
    %c0_i32_0 = arith.constant 0 : i32
    %c0_i32_1 = arith.constant 0 : i32
    return %c0_i32, %c0_i32_0 : i32, i32
  }
  func.func @transform_8(%arg0: i32) -> (i32, i32) {
    %c0_i32 = arith.constant 0 : i32
    %c0_i32_0 = arith.constant 0 : i32
    %c0_i32_1 = arith.constant 0 : i32
    return %c0_i32, %c0_i32_0 : i32, i32
  }
  func.func @transform_9(%arg0: i32) -> (i32, i32) {
    %c0_i32 = arith.constant 0 : i32
    %c0_i32_0 = arith.constant 0 : i32
    return %arg0, %c0_i32 : i32, i32
  }
}

module attributes {stable_mosaic.version = 11 : i64} {
  func.func @_pna_update_kernel(%arg0: i32, %arg1: i32, %arg2: memref<1x128xi32, #tpu.memory_space<vmem>>, %arg3: memref<128x1xi32, #tpu.memory_space<vmem>>, %arg4: memref<128x64xf32, #tpu.memory_space<vmem>>, %arg5: memref<16x64xf32, #tpu.memory_space<vmem>>, %arg6: memref<256x64xf32, #tpu.memory_space<vmem>>, %arg7: memref<64x64xf32, #tpu.memory_space<vmem>>, %arg8: memref<1x64xf32, #tpu.memory_space<vmem>>, %arg9: memref<64x64xf32, #tpu.memory_space<vmem>>, %arg10: memref<1x64xf32, #tpu.memory_space<vmem>>, %arg11: memref<16x64xf32, #tpu.memory_space<vmem>>, %arg12: memref<16x64xf32, #tpu.memory_space<vmem>>, %arg13: memref<16x64xf32, #tpu.memory_space<vmem>>, %arg14: memref<16x64xf32, #tpu.memory_space<vmem>>, %arg15: memref<16x64xf32, #tpu.memory_space<vmem>>, %arg16: memref<16x1xf32, #tpu.memory_space<vmem>>) attributes {dimension_semantics = [#tpu.dimension_semantics<parallel>, #tpu.dimension_semantics<arbitrary>], iteration_bounds = array<i64: 1, 1>, scalar_prefetch = 0 : i64, scratch_operands = 5 : i64, tpu.core_type = #tpu.core_type<tc>, window_params = [{transform_indices = @transform_0, window_bounds = array<i64: 1, 128>}, {transform_indices = @transform_1, window_bounds = array<i64: 128, 1>}, {transform_indices = @transform_2, window_bounds = array<i64: 128, 64>}, {transform_indices = @transform_3, window_bounds = array<i64: 16, 64>}, {pipeline_mode = #tpu.pipeline_mode<synchronous>, transform_indices = @transform_4, window_bounds = array<i64: 256, 64>}, {pipeline_mode = #tpu.pipeline_mode<synchronous>, transform_indices = @transform_5, window_bounds = array<i64: 64, 64>}, {pipeline_mode = #tpu.pipeline_mode<synchronous>, transform_indices = @transform_6, window_bounds = array<i64: 1, 64>}, {pipeline_mode = #tpu.pipeline_mode<synchronous>, transform_indices = @transform_7, window_bounds = array<i64: 64, 64>}, {pipeline_mode = #tpu.pipeline_mode<synchronous>, transform_indices = @transform_8, window_bounds = array<i64: 1, 64>}, {transform_indices = @transform_9, window_bounds = array<i64: 16, 64>}]} {
    %c0_i32 = arith.constant 0 : i32
    %0 = arith.cmpi eq, %arg1, %c0_i32 : i32
    %1 = arith.extui %0 : i1 to i32
    %c0_i32_0 = arith.constant 0 : i32
    %2 = arith.cmpi ne, %1, %c0_i32_0 : i32
    scf.if %2 {
      %cst_10 = arith.constant 0.000000e+00 : f32
      %24 = vector.broadcast %cst_10 : f32 to vector<16x64xf32>
      %c0_11 = arith.constant 0 : index
      %c0_12 = arith.constant 0 : index
      %25 = vector.load %arg12[%c0_11, %c0_12] : memref<16x64xf32, #tpu.memory_space<vmem>>, vector<16x64xf32>
      tpu.vector_store %arg12[%c0_11, %c0_12], %24 {strides = array<i32>} : memref<16x64xf32, #tpu.memory_space<vmem>>, vector<16x64xf32>,
      %cst_13 = arith.constant 0.000000e+00 : f32
      %26 = vector.broadcast %cst_13 : f32 to vector<16x64xf32>
      %c0_14 = arith.constant 0 : index
      %c0_15 = arith.constant 0 : index
      %27 = vector.load %arg13[%c0_14, %c0_15] : memref<16x64xf32, #tpu.memory_space<vmem>>, vector<16x64xf32>
      tpu.vector_store %arg13[%c0_14, %c0_15], %26 {strides = array<i32>} : memref<16x64xf32, #tpu.memory_space<vmem>>, vector<16x64xf32>,
      %cst_16 = arith.constant 0.000000e+00 : f32
      %28 = vector.broadcast %cst_16 : f32 to vector<16x1xf32>
      %c0_17 = arith.constant 0 : index
      %c0_18 = arith.constant 0 : index
      %29 = vector.load %arg16[%c0_17, %c0_18] : memref<16x1xf32, #tpu.memory_space<vmem>>, vector<16x1xf32>
      tpu.vector_store %arg16[%c0_17, %c0_18], %28 {strides = array<i32>} : memref<16x1xf32, #tpu.memory_space<vmem>>, vector<16x1xf32>,
      %cst_19 = arith.constant 1.000000e+30 : f32
      %30 = vector.broadcast %cst_19 : f32 to vector<16x64xf32>
      %c0_20 = arith.constant 0 : index
      %c0_21 = arith.constant 0 : index
      %31 = vector.load %arg14[%c0_20, %c0_21] : memref<16x64xf32, #tpu.memory_space<vmem>>, vector<16x64xf32>
      tpu.vector_store %arg14[%c0_20, %c0_21], %30 {strides = array<i32>} : memref<16x64xf32, #tpu.memory_space<vmem>>, vector<16x64xf32>,
      %cst_22 = arith.constant -1.000000e+30 : f32
      %32 = vector.broadcast %cst_22 : f32 to vector<16x64xf32>
      %c0_23 = arith.constant 0 : index
      %c0_24 = arith.constant 0 : index
      %33 = vector.load %arg15[%c0_23, %c0_24] : memref<16x64xf32, #tpu.memory_space<vmem>>, vector<16x64xf32>
      tpu.vector_store %arg15[%c0_23, %c0_24], %32 {strides = array<i32>} : memref<16x64xf32, #tpu.memory_space<vmem>>, vector<16x64xf32>,
    } else {
    }
    %c0 = arith.constant 0 : index
    %c0_1 = arith.constant 0 : index
    %3 = vector.load %arg4[%c0, %c0_1] : memref<128x64xf32, #tpu.memory_space<vmem>>, vector<128x64xf32>
    %c0_2 = arith.constant 0 : index
    %c0_3 = arith.constant 0 : index
    %4 = vector.load %arg2[%c0_2, %c0_3] : memref<1x128xi32, #tpu.memory_space<vmem>>, vector<1x128xi32>
    %c0_4 = arith.constant 0 : index
    %c0_5 = arith.constant 0 : index
    %5 = vector.load %arg3[%c0_4, %c0_5] : memref<128x1xi32, #tpu.memory_space<vmem>>, vector<128x1xi32>
    %c16_i32 = arith.constant 16 : i32
    %6 = arith.muli %arg0, %c16_i32 : i32
    %7 = tpu.iota {dimensions = array<i32: 0>} : vector<16x128xi32>
    %8 = vector.broadcast %6 : i32 to vector<16x128xi32>
    %9 = arith.addi %8, %7 : vector<16x128xi32>
    %10 = vector.broadcast %4 : vector<1x128xi32> to vector<16x128xi32>
    %11 = arith.cmpi eq, %9, %10 : vector<16x128xi32>
    %12 = arith.extui %11 : vector<16x128xi1> to vector<16x128xi32>
    %13 = arith.sitofp %12 : vector<16x128xi32> to vector<16x128xf32>
    %14 = vector.shape_cast %13 : vector<16x128xf32> to vector<1x16x128xf32>
    %cst = arith.constant dense<0.000000e+00> : vector<1xf32>
    %15 = vector.multi_reduction <add>, %14, %cst [1, 2] : vector<1x16x128xf32> to vector<1xf32>
    %16 = vector.shape_cast %15 : vector<1xf32> to vector<1x1x1xf32>
    %17 = vector.extract %16[0, 0, 0] : f32 from vector<1x1x1xf32>
    %cst_6 = arith.constant 0.000000e+00 : f32
    %18 = arith.cmpf ogt, %17, %cst_6 : f32
    %19 = arith.extui %18 : i1 to i32
    %c0_i32_7 = arith.constant 0 : i32
    %20 = arith.cmpi ne, %19, %c0_i32_7 : i32
    scf.if %20 {
      %c0_10 = arith.constant 0 : index
      %c0_11 = arith.constant 0 : index
      %24 = vector.load %arg12[%c0_10, %c0_11] : memref<16x64xf32, #tpu.memory_space<vmem>>, vector<16x64xf32>
      %cst_12 = arith.constant dense<0.000000e+00> : vector<16x64xf32>
      %25 = tpu.matmul %13, %3, %cst_12 {dimension_numbers = #tpu.dot_dimension_numbers<[1], [0], [0], [1], [0, 0, 1, 1], [], []>} : vector<16x128xf32>, vector<128x64xf32>, vector<16x64xf32> -> vector<16x64xf32>
      %26 = arith.addf %24, %25 : vector<16x64xf32>
      %c0_13 = arith.constant 0 : index
      %c0_14 = arith.constant 0 : index
      %27 = vector.load %arg12[%c0_13, %c0_14] : memref<16x64xf32, #tpu.memory_space<vmem>>, vector<16x64xf32>
      tpu.vector_store %arg12[%c0_13, %c0_14], %26 {strides = array<i32>} : memref<16x64xf32, #tpu.memory_space<vmem>>, vector<16x64xf32>,
      %c0_15 = arith.constant 0 : index
      %c0_16 = arith.constant 0 : index
      %28 = vector.load %arg13[%c0_15, %c0_16] : memref<16x64xf32, #tpu.memory_space<vmem>>, vector<16x64xf32>
      %29 = arith.mulf %3, %3 : vector<128x64xf32>
      %cst_17 = arith.constant dense<0.000000e+00> : vector<16x64xf32>
      %30 = tpu.matmul %13, %29, %cst_17 {dimension_numbers = #tpu.dot_dimension_numbers<[1], [0], [0], [1], [0, 0, 1, 1], [], []>} : vector<16x128xf32>, vector<128x64xf32>, vector<16x64xf32> -> vector<16x64xf32>
      %31 = arith.addf %28, %30 : vector<16x64xf32>
      %c0_18 = arith.constant 0 : index
      %c0_19 = arith.constant 0 : index
      %32 = vector.load %arg13[%c0_18, %c0_19] : memref<16x64xf32, #tpu.memory_space<vmem>>, vector<16x64xf32>
      tpu.vector_store %arg13[%c0_18, %c0_19], %31 {strides = array<i32>} : memref<16x64xf32, #tpu.memory_space<vmem>>, vector<16x64xf32>,
      %c0_20 = arith.constant 0 : index
      %c0_21 = arith.constant 0 : index
      %33 = vector.load %arg16[%c0_20, %c0_21] : memref<16x1xf32, #tpu.memory_space<vmem>>, vector<16x1xf32>
      %cst_22 = arith.constant dense<0.000000e+00> : vector<16xf32>
      %34 = vector.multi_reduction <add>, %13, %cst_22 [1] : vector<16x128xf32> to vector<16xf32>
      %35 = vector.shape_cast %34 : vector<16xf32> to vector<16x1xf32>
      %36 = arith.addf %33, %35 : vector<16x1xf32>
      %c0_23 = arith.constant 0 : index
      %c0_24 = arith.constant 0 : index
      %37 = vector.load %arg16[%c0_23, %c0_24] : memref<16x1xf32, #tpu.memory_space<vmem>>, vector<16x1xf32>
      tpu.vector_store %arg16[%c0_23, %c0_24], %36 {strides = array<i32>} : memref<16x1xf32, #tpu.memory_space<vmem>>, vector<16x1xf32>,
      %c0_i32_25 = arith.constant 0 : i32
      %c16_i32_26 = arith.constant 16 : i32
      %38 = arith.addi %c0_i32_25, %c16_i32_26 : i32
      %c1_i32 = arith.constant 1 : i32
      scf.for %arg17 = %c0_i32_25 to %38 step %c1_i32  : i32 {
        %c1_i32_28 = arith.constant 1 : i32
        %39 = arith.muli %arg17, %c1_i32_28 : i32
        %c0_i32_29 = arith.constant 0 : i32
        %40 = arith.addi %c0_i32_29, %39 : i32
        %41 = arith.addi %6, %40 : i32
        %42 = vector.broadcast %41 : i32 to vector<128x1xi32>
        %43 = arith.cmpi eq, %5, %42 : vector<128x1xi32>
        %cst_30 = arith.constant 1.000000e+30 : f32
        %44 = vector.shape_cast %43 : vector<128x1xi1> to vector<128x1xi1>
        %45 = vector.broadcast %44 : vector<128x1xi1> to vector<128x64xi1>
        %46 = vector.broadcast %cst_30 : f32 to vector<128x64xf32>
        %47 = arith.select %45, %3, %46 : vector<128x64xi1>, vector<128x64xf32>
        %cst_31 = arith.constant dense<0x7F800000> : vector<64xf32>
        %48 = vector.multi_reduction <minimumf>, %47, %cst_31 [0] : vector<128x64xf32> to vector<64xf32>
        %49 = vector.shape_cast %48 : vector<64xf32> to vector<1x64xf32>
        %cst_32 = arith.constant -1.000000e+30 : f32
        %50 = vector.shape_cast %43 : vector<128x1xi1> to vector<128x1xi1>
        %51 = vector.broadcast %50 : vector<128x1xi1> to vector<128x64xi1>
        %52 = vector.broadcast %cst_32 : f32 to vector<128x64xf32>
        %53 = arith.select %51, %3, %52 : vector<128x64xi1>, vector<128x64xf32>
        %cst_33 = arith.constant dense<0xFF800000> : vector<64xf32>
        %54 = vector.multi_reduction <maximumf>, %53, %cst_33 [0] : vector<128x64xf32> to vector<64xf32>
        %55 = vector.shape_cast %54 : vector<64xf32> to vector<1x64xf32>
        %56 = arith.index_cast %40 : i32 to index
        %c0_34 = arith.constant 0 : index
        %57 = vector.load %arg14[%56, %c0_34] : memref<16x64xf32, #tpu.memory_space<vmem>>, vector<1x64xf32>
        %58 = arith.minimumf %57, %49 : vector<1x64xf32>
        %59 = arith.index_cast %40 : i32 to index
        %c0_35 = arith.constant 0 : index
        %60 = vector.load %arg14[%59, %c0_35] : memref<16x64xf32, #tpu.memory_space<vmem>>, vector<1x64xf32>
        tpu.vector_store %arg14[%59, %c0_35], %58 {strides = array<i32>} : memref<16x64xf32, #tpu.memory_space<vmem>>, vector<1x64xf32>,
        %61 = arith.index_cast %40 : i32 to index
        %c0_36 = arith.constant 0 : index
        %62 = vector.load %arg15[%61, %c0_36] : memref<16x64xf32, #tpu.memory_space<vmem>>, vector<1x64xf32>
        %63 = arith.maximumf %62, %55 : vector<1x64xf32>
        %64 = arith.index_cast %40 : i32 to index
        %c0_37 = arith.constant 0 : index
        %65 = vector.load %arg15[%64, %c0_37] : memref<16x64xf32, #tpu.memory_space<vmem>>, vector<1x64xf32>
        tpu.vector_store %arg15[%64, %c0_37], %63 {strides = array<i32>} : memref<16x64xf32, #tpu.memory_space<vmem>>, vector<1x64xf32>,
      }
      %c16_i32_27 = arith.constant 16 : i32
    } else {
    }
    %c0_i32_8 = arith.constant 0 : i32
    %21 = arith.cmpi eq, %arg1, %c0_i32_8 : i32
    %22 = arith.extui %21 : i1 to i32
    %c0_i32_9 = arith.constant 0 : i32
    %23 = arith.cmpi ne, %22, %c0_i32_9 : i32
    scf.if %23 {
      %c0_10 = arith.constant 0 : index
      %c0_11 = arith.constant 0 : index
      %24 = vector.load %arg16[%c0_10, %c0_11] : memref<16x1xf32, #tpu.memory_space<vmem>>, vector<16x1xf32>
      %cst_12 = arith.constant 0.000000e+00 : f32
      %25 = vector.broadcast %cst_12 : f32 to vector<16x1xf32>
      %26 = arith.cmpf ogt, %24, %25 : vector<16x1xf32>
      %cst_13 = arith.constant 1.000000e+00 : f32
      %27 = vector.broadcast %cst_13 : f32 to vector<16x1xf32>
      %28 = arith.maximumf %24, %27 : vector<16x1xf32>
      %cst_14 = arith.constant 1.000000e+00 : f32
      %29 = vector.broadcast %cst_14 : f32 to vector<16x1xf32>
      %30 = arith.divf %29, %28 : vector<16x1xf32>
      %c0_15 = arith.constant 0 : index
      %c0_16 = arith.constant 0 : index
      %31 = vector.load %arg12[%c0_15, %c0_16] : memref<16x64xf32, #tpu.memory_space<vmem>>, vector<16x64xf32>
      %32 = vector.broadcast %30 : vector<16x1xf32> to vector<16x64xf32>
      %33 = arith.mulf %31, %32 : vector<16x64xf32>
      %c0_17 = arith.constant 0 : index
      %c0_18 = arith.constant 0 : index
      %34 = vector.load %arg13[%c0_17, %c0_18] : memref<16x64xf32, #tpu.memory_space<vmem>>, vector<16x64xf32>
      %35 = vector.broadcast %30 : vector<16x1xf32> to vector<16x64xf32>
      %36 = arith.mulf %34, %35 : vector<16x64xf32>
      %37 = arith.mulf %33, %33 : vector<16x64xf32>
      %38 = arith.subf %36, %37 : vector<16x64xf32>
      %cst_19 = arith.constant 0.000000e+00 : f32
      %39 = vector.broadcast %cst_19 : f32 to vector<16x64xf32>
      %40 = arith.maximumf %38, %39 : vector<16x64xf32>
      %cst_20 = arith.constant 9.99999974E-6 : f32
      %41 = vector.broadcast %cst_20 : f32 to vector<16x64xf32>
      %42 = arith.addf %40, %41 : vector<16x64xf32>
      %43 = math.sqrt %42 : vector<16x64xf32>
      %cst_21 = arith.constant 0.000000e+00 : f32
      %44 = vector.shape_cast %26 : vector<16x1xi1> to vector<16x1xi1>
      %45 = vector.broadcast %44 : vector<16x1xi1> to vector<16x64xi1>
      %46 = vector.broadcast %cst_21 : f32 to vector<16x64xf32>
      %47 = arith.select %45, %33, %46 : vector<16x64xi1>, vector<16x64xf32>
      %cst_22 = arith.constant 0.000000e+00 : f32
      %48 = vector.shape_cast %26 : vector<16x1xi1> to vector<16x1xi1>
      %49 = vector.broadcast %48 : vector<16x1xi1> to vector<16x64xi1>
      %50 = vector.broadcast %cst_22 : f32 to vector<16x64xf32>
      %51 = arith.select %49, %43, %50 : vector<16x64xi1>, vector<16x64xf32>
      %c0_23 = arith.constant 0 : index
      %c0_24 = arith.constant 0 : index
      %52 = vector.load %arg14[%c0_23, %c0_24] : memref<16x64xf32, #tpu.memory_space<vmem>>, vector<16x64xf32>
      %cst_25 = arith.constant 0.000000e+00 : f32
      %53 = vector.shape_cast %26 : vector<16x1xi1> to vector<16x1xi1>
      %54 = vector.broadcast %53 : vector<16x1xi1> to vector<16x64xi1>
      %55 = vector.broadcast %cst_25 : f32 to vector<16x64xf32>
      %56 = arith.select %54, %52, %55 : vector<16x64xi1>, vector<16x64xf32>
      %c0_26 = arith.constant 0 : index
      %c0_27 = arith.constant 0 : index
      %57 = vector.load %arg15[%c0_26, %c0_27] : memref<16x64xf32, #tpu.memory_space<vmem>>, vector<16x64xf32>
      %cst_28 = arith.constant 0.000000e+00 : f32
      %58 = vector.shape_cast %26 : vector<16x1xi1> to vector<16x1xi1>
      %59 = vector.broadcast %58 : vector<16x1xi1> to vector<16x64xi1>
      %60 = vector.broadcast %cst_28 : f32 to vector<16x64xf32>
      %61 = arith.select %59, %57, %60 : vector<16x64xi1>, vector<16x64xf32>
      %c0_29 = arith.constant 0 : index
      %c0_30 = arith.constant 0 : index
      %62 = vector.load %arg6[%c0_29, %c0_30] : memref<256x64xf32, #tpu.memory_space<vmem>>, vector<64x64xf32>
      %cst_31 = arith.constant dense<0.000000e+00> : vector<16x64xf32>
      %63 = tpu.matmul %47, %62, %cst_31 {dimension_numbers = #tpu.dot_dimension_numbers<[1], [0], [0], [1], [0, 0, 1, 1], [], []>} : vector<16x64xf32>, vector<64x64xf32>, vector<16x64xf32> -> vector<16x64xf32>
      %c64 = arith.constant 64 : index
      %c0_32 = arith.constant 0 : index
      %64 = vector.load %arg6[%c64, %c0_32] : memref<256x64xf32, #tpu.memory_space<vmem>>, vector<64x64xf32>
      %cst_33 = arith.constant dense<0.000000e+00> : vector<16x64xf32>
      %65 = tpu.matmul %56, %64, %cst_33 {dimension_numbers = #tpu.dot_dimension_numbers<[1], [0], [0], [1], [0, 0, 1, 1], [], []>} : vector<16x64xf32>, vector<64x64xf32>, vector<16x64xf32> -> vector<16x64xf32>
      %66 = arith.addf %63, %65 : vector<16x64xf32>
      %c128 = arith.constant 128 : index
      %c0_34 = arith.constant 0 : index
      %67 = vector.load %arg6[%c128, %c0_34] : memref<256x64xf32, #tpu.memory_space<vmem>>, vector<64x64xf32>
      %cst_35 = arith.constant dense<0.000000e+00> : vector<16x64xf32>
      %68 = tpu.matmul %61, %67, %cst_35 {dimension_numbers = #tpu.dot_dimension_numbers<[1], [0], [0], [1], [0, 0, 1, 1], [], []>} : vector<16x64xf32>, vector<64x64xf32>, vector<16x64xf32> -> vector<16x64xf32>
      %69 = arith.addf %66, %68 : vector<16x64xf32>
      %c192 = arith.constant 192 : index
      %c0_36 = arith.constant 0 : index
      %70 = vector.load %arg6[%c192, %c0_36] : memref<256x64xf32, #tpu.memory_space<vmem>>, vector<64x64xf32>
      %cst_37 = arith.constant dense<0.000000e+00> : vector<16x64xf32>
      %71 = tpu.matmul %51, %70, %cst_37 {dimension_numbers = #tpu.dot_dimension_numbers<[1], [0], [0], [1], [0, 0, 1, 1], [], []>} : vector<16x64xf32>, vector<64x64xf32>, vector<16x64xf32> -> vector<16x64xf32>
      %72 = arith.addf %69, %71 : vector<16x64xf32>
      %c0_38 = arith.constant 0 : index
      %c0_39 = arith.constant 0 : index
      %73 = vector.load %arg5[%c0_38, %c0_39] : memref<16x64xf32, #tpu.memory_space<vmem>>, vector<16x64xf32>
      %c0_40 = arith.constant 0 : index
      %c0_41 = arith.constant 0 : index
      %74 = vector.load %arg7[%c0_40, %c0_41] : memref<64x64xf32, #tpu.memory_space<vmem>>, vector<64x64xf32>
      %cst_42 = arith.constant dense<0.000000e+00> : vector<16x64xf32>
      %75 = tpu.matmul %73, %74, %cst_42 {dimension_numbers = #tpu.dot_dimension_numbers<[1], [0], [0], [1], [0, 0, 1, 1], [], []>} : vector<16x64xf32>, vector<64x64xf32>, vector<16x64xf32> -> vector<16x64xf32>
      %76 = arith.addf %72, %75 : vector<16x64xf32>
      %c0_43 = arith.constant 0 : index
      %c0_44 = arith.constant 0 : index
      %77 = vector.load %arg8[%c0_43, %c0_44] : memref<1x64xf32, #tpu.memory_space<vmem>>, vector<1x64xf32>
      %78 = vector.broadcast %77 : vector<1x64xf32> to vector<16x64xf32>
      %79 = arith.addf %76, %78 : vector<16x64xf32>
      %cst_45 = arith.constant 0.000000e+00 : f32
      %80 = vector.broadcast %cst_45 : f32 to vector<16x64xf32>
      %81 = arith.maximumf %79, %80 : vector<16x64xf32>
      %c0_46 = arith.constant 0 : index
      %c0_47 = arith.constant 0 : index
      %82 = vector.load %arg9[%c0_46, %c0_47] : memref<64x64xf32, #tpu.memory_space<vmem>>, vector<64x64xf32>
      %cst_48 = arith.constant dense<0.000000e+00> : vector<16x64xf32>
      %83 = tpu.matmul %81, %82, %cst_48 {dimension_numbers = #tpu.dot_dimension_numbers<[1], [0], [0], [1], [0, 0, 1, 1], [], []>} : vector<16x64xf32>, vector<64x64xf32>, vector<16x64xf32> -> vector<16x64xf32>
      %c0_49 = arith.constant 0 : index
      %c0_50 = arith.constant 0 : index
      %84 = vector.load %arg10[%c0_49, %c0_50] : memref<1x64xf32, #tpu.memory_space<vmem>>, vector<1x64xf32>
      %85 = vector.broadcast %84 : vector<1x64xf32> to vector<16x64xf32>
      %86 = arith.addf %83, %85 : vector<16x64xf32>
      %c0_51 = arith.constant 0 : index
      %c0_52 = arith.constant 0 : index
      %87 = vector.load %arg11[%c0_51, %c0_52] : memref<16x64xf32, #tpu.memory_space<vmem>>, vector<16x64xf32>
      tpu.vector_store %arg11[%c0_51, %c0_52], %86 {strides = array<i32>} : memref<16x64xf32, #tpu.memory_space<vmem>>, vector<16x64xf32>,
    } else {
    }
    return
  }
  func.func @transform_0(%arg0: i32, %arg1: i32) -> (i32, i32) {
    %c0_i32 = arith.constant 0 : i32
    %c0_i32_0 = arith.constant 0 : i32
    return %c0_i32, %arg1 : i32, i32
  }
  func.func @transform_1(%arg0: i32, %arg1: i32) -> (i32, i32) {
    %c0_i32 = arith.constant 0 : i32
    %c0_i32_0 = arith.constant 0 : i32
    return %arg1, %c0_i32 : i32, i32
  }
  func.func @transform_2(%arg0: i32, %arg1: i32) -> (i32, i32) {
    %c0_i32 = arith.constant 0 : i32
    %c0_i32_0 = arith.constant 0 : i32
    return %arg1, %c0_i32 : i32, i32
  }
  func.func @transform_3(%arg0: i32, %arg1: i32) -> (i32, i32) {
    %c0_i32 = arith.constant 0 : i32
    %c0_i32_0 = arith.constant 0 : i32
    return %arg0, %c0_i32 : i32, i32
  }
  func.func @transform_4(%arg0: i32, %arg1: i32) -> (i32, i32) {
    %c0_i32 = arith.constant 0 : i32
    %c0_i32_0 = arith.constant 0 : i32
    %c0_i32_1 = arith.constant 0 : i32
    return %c0_i32, %c0_i32_0 : i32, i32
  }
  func.func @transform_5(%arg0: i32, %arg1: i32) -> (i32, i32) {
    %c0_i32 = arith.constant 0 : i32
    %c0_i32_0 = arith.constant 0 : i32
    %c0_i32_1 = arith.constant 0 : i32
    return %c0_i32, %c0_i32_0 : i32, i32
  }
  func.func @transform_6(%arg0: i32, %arg1: i32) -> (i32, i32) {
    %c0_i32 = arith.constant 0 : i32
    %c0_i32_0 = arith.constant 0 : i32
    %c0_i32_1 = arith.constant 0 : i32
    return %c0_i32, %c0_i32_0 : i32, i32
  }
  func.func @transform_7(%arg0: i32, %arg1: i32) -> (i32, i32) {
    %c0_i32 = arith.constant 0 : i32
    %c0_i32_0 = arith.constant 0 : i32
    %c0_i32_1 = arith.constant 0 : i32
    return %c0_i32, %c0_i32_0 : i32, i32
  }
  func.func @transform_8(%arg0: i32, %arg1: i32) -> (i32, i32) {
    %c0_i32 = arith.constant 0 : i32
    %c0_i32_0 = arith.constant 0 : i32
    %c0_i32_1 = arith.constant 0 : i32
    return %c0_i32, %c0_i32_0 : i32, i32
  }
  func.func @transform_9(%arg0: i32, %arg1: i32) -> (i32, i32) {
    %c0_i32 = arith.constant 0 : i32
    %c0_i32_0 = arith.constant 0 : i32
    return %arg0, %c0_i32 : i32, i32
  }
}

module attributes {stable_mosaic.version = 11 : i64} {
  func.func @_head_kernel(%arg0: i32, %arg1: memref<16x64xf32, #tpu.memory_space<vmem>>, %arg2: memref<16x6xf32, #tpu.memory_space<vmem>>, %arg3: memref<64x64xf32, #tpu.memory_space<vmem>>, %arg4: memref<6x64xf32, #tpu.memory_space<vmem>>, %arg5: memref<1x64xf32, #tpu.memory_space<vmem>>, %arg6: memref<64x64xf32, #tpu.memory_space<vmem>>, %arg7: memref<1x64xf32, #tpu.memory_space<vmem>>, %arg8: memref<64x8xf32, #tpu.memory_space<vmem>>, %arg9: memref<1x8xf32, #tpu.memory_space<vmem>>, %arg10: memref<16x8xf32, #tpu.memory_space<vmem>>) attributes {dimension_semantics = [#tpu.dimension_semantics<parallel>], iteration_bounds = array<i64: 1>, scalar_prefetch = 0 : i64, scratch_operands = 0 : i64, tpu.core_type = #tpu.core_type<tc>, window_params = [{transform_indices = @transform_0, window_bounds = array<i64: 16, 64>}, {transform_indices = @transform_1, window_bounds = array<i64: 16, 6>}, {pipeline_mode = #tpu.pipeline_mode<synchronous>, transform_indices = @transform_2, window_bounds = array<i64: 64, 64>}, {pipeline_mode = #tpu.pipeline_mode<synchronous>, transform_indices = @transform_3, window_bounds = array<i64: 6, 64>}, {pipeline_mode = #tpu.pipeline_mode<synchronous>, transform_indices = @transform_4, window_bounds = array<i64: 1, 64>}, {pipeline_mode = #tpu.pipeline_mode<synchronous>, transform_indices = @transform_5, window_bounds = array<i64: 64, 64>}, {pipeline_mode = #tpu.pipeline_mode<synchronous>, transform_indices = @transform_6, window_bounds = array<i64: 1, 64>}, {pipeline_mode = #tpu.pipeline_mode<synchronous>, transform_indices = @transform_7, window_bounds = array<i64: 64, 8>}, {pipeline_mode = #tpu.pipeline_mode<synchronous>, transform_indices = @transform_8, window_bounds = array<i64: 1, 8>}, {transform_indices = @transform_9, window_bounds = array<i64: 16, 8>}]} {
    %c0 = arith.constant 0 : index
    %c0_0 = arith.constant 0 : index
    %0 = vector.load %arg1[%c0, %c0_0] : memref<16x64xf32, #tpu.memory_space<vmem>>, vector<16x64xf32>
    %c0_1 = arith.constant 0 : index
    %c0_2 = arith.constant 0 : index
    %1 = vector.load %arg3[%c0_1, %c0_2] : memref<64x64xf32, #tpu.memory_space<vmem>>, vector<64x64xf32>
    %cst = arith.constant dense<0.000000e+00> : vector<16x64xf32>
    %2 = tpu.matmul %0, %1, %cst {dimension_numbers = #tpu.dot_dimension_numbers<[1], [0], [0], [1], [0, 0, 1, 1], [], []>} : vector<16x64xf32>, vector<64x64xf32>, vector<16x64xf32> -> vector<16x64xf32>
    %c0_3 = arith.constant 0 : index
    %c0_4 = arith.constant 0 : index
    %3 = vector.load %arg2[%c0_3, %c0_4] : memref<16x6xf32, #tpu.memory_space<vmem>>, vector<16x6xf32>
    %c0_5 = arith.constant 0 : index
    %c0_6 = arith.constant 0 : index
    %4 = vector.load %arg4[%c0_5, %c0_6] : memref<6x64xf32, #tpu.memory_space<vmem>>, vector<6x64xf32>
    %cst_7 = arith.constant dense<0.000000e+00> : vector<16x64xf32>
    %5 = tpu.matmul %3, %4, %cst_7 {dimension_numbers = #tpu.dot_dimension_numbers<[1], [0], [0], [1], [0, 0, 1, 1], [], []>} : vector<16x6xf32>, vector<6x64xf32>, vector<16x64xf32> -> vector<16x64xf32>
    %6 = arith.addf %2, %5 : vector<16x64xf32>
    %c0_8 = arith.constant 0 : index
    %c0_9 = arith.constant 0 : index
    %7 = vector.load %arg5[%c0_8, %c0_9] : memref<1x64xf32, #tpu.memory_space<vmem>>, vector<1x64xf32>
    %8 = vector.broadcast %7 : vector<1x64xf32> to vector<16x64xf32>
    %9 = arith.addf %6, %8 : vector<16x64xf32>
    %cst_10 = arith.constant 0.000000e+00 : f32
    %10 = vector.broadcast %cst_10 : f32 to vector<16x64xf32>
    %11 = arith.maximumf %9, %10 : vector<16x64xf32>
    %c0_11 = arith.constant 0 : index
    %c0_12 = arith.constant 0 : index
    %12 = vector.load %arg6[%c0_11, %c0_12] : memref<64x64xf32, #tpu.memory_space<vmem>>, vector<64x64xf32>
    %cst_13 = arith.constant dense<0.000000e+00> : vector<16x64xf32>
    %13 = tpu.matmul %11, %12, %cst_13 {dimension_numbers = #tpu.dot_dimension_numbers<[1], [0], [0], [1], [0, 0, 1, 1], [], []>} : vector<16x64xf32>, vector<64x64xf32>, vector<16x64xf32> -> vector<16x64xf32>
    %c0_14 = arith.constant 0 : index
    %c0_15 = arith.constant 0 : index
    %14 = vector.load %arg7[%c0_14, %c0_15] : memref<1x64xf32, #tpu.memory_space<vmem>>, vector<1x64xf32>
    %15 = vector.broadcast %14 : vector<1x64xf32> to vector<16x64xf32>
    %16 = arith.addf %13, %15 : vector<16x64xf32>
    %cst_16 = arith.constant 0.000000e+00 : f32
    %17 = vector.broadcast %cst_16 : f32 to vector<16x64xf32>
    %18 = arith.maximumf %16, %17 : vector<16x64xf32>
    %c0_17 = arith.constant 0 : index
    %c0_18 = arith.constant 0 : index
    %19 = vector.load %arg8[%c0_17, %c0_18] : memref<64x8xf32, #tpu.memory_space<vmem>>, vector<64x8xf32>
    %cst_19 = arith.constant dense<0.000000e+00> : vector<16x8xf32>
    %20 = tpu.matmul %18, %19, %cst_19 {dimension_numbers = #tpu.dot_dimension_numbers<[1], [0], [0], [1], [0, 0, 1, 1], [], []>} : vector<16x64xf32>, vector<64x8xf32>, vector<16x8xf32> -> vector<16x8xf32>
    %c0_20 = arith.constant 0 : index
    %c0_21 = arith.constant 0 : index
    %21 = vector.load %arg9[%c0_20, %c0_21] : memref<1x8xf32, #tpu.memory_space<vmem>>, vector<1x8xf32>
    %22 = vector.broadcast %21 : vector<1x8xf32> to vector<16x8xf32>
    %23 = arith.addf %20, %22 : vector<16x8xf32>
    %c0_22 = arith.constant 0 : index
    %c0_23 = arith.constant 0 : index
    %24 = vector.load %arg10[%c0_22, %c0_23] : memref<16x8xf32, #tpu.memory_space<vmem>>, vector<16x8xf32>
    tpu.vector_store %arg10[%c0_22, %c0_23], %23 {strides = array<i32>} : memref<16x8xf32, #tpu.memory_space<vmem>>, vector<16x8xf32>,
    return
  }
  func.func @transform_0(%arg0: i32) -> (i32, i32) {
    %c0_i32 = arith.constant 0 : i32
    %c0_i32_0 = arith.constant 0 : i32
    return %arg0, %c0_i32 : i32, i32
  }
  func.func @transform_1(%arg0: i32) -> (i32, i32) {
    %c0_i32 = arith.constant 0 : i32
    %c0_i32_0 = arith.constant 0 : i32
    return %arg0, %c0_i32 : i32, i32
  }
  func.func @transform_2(%arg0: i32) -> (i32, i32) {
    %c0_i32 = arith.constant 0 : i32
    %c0_i32_0 = arith.constant 0 : i32
    %c0_i32_1 = arith.constant 0 : i32
    return %c0_i32, %c0_i32_0 : i32, i32
  }
  func.func @transform_3(%arg0: i32) -> (i32, i32) {
    %c0_i32 = arith.constant 0 : i32
    %c0_i32_0 = arith.constant 0 : i32
    %c0_i32_1 = arith.constant 0 : i32
    return %c0_i32, %c0_i32_0 : i32, i32
  }
  func.func @transform_4(%arg0: i32) -> (i32, i32) {
    %c0_i32 = arith.constant 0 : i32
    %c0_i32_0 = arith.constant 0 : i32
    %c0_i32_1 = arith.constant 0 : i32
    return %c0_i32, %c0_i32_0 : i32, i32
  }
  func.func @transform_5(%arg0: i32) -> (i32, i32) {
    %c0_i32 = arith.constant 0 : i32
    %c0_i32_0 = arith.constant 0 : i32
    %c0_i32_1 = arith.constant 0 : i32
    return %c0_i32, %c0_i32_0 : i32, i32
  }
  func.func @transform_6(%arg0: i32) -> (i32, i32) {
    %c0_i32 = arith.constant 0 : i32
    %c0_i32_0 = arith.constant 0 : i32
    %c0_i32_1 = arith.constant 0 : i32
    return %c0_i32, %c0_i32_0 : i32, i32
  }
  func.func @transform_7(%arg0: i32) -> (i32, i32) {
    %c0_i32 = arith.constant 0 : i32
    %c0_i32_0 = arith.constant 0 : i32
    %c0_i32_1 = arith.constant 0 : i32
    return %c0_i32, %c0_i32_0 : i32, i32
  }
  func.func @transform_8(%arg0: i32) -> (i32, i32) {
    %c0_i32 = arith.constant 0 : i32
    %c0_i32_0 = arith.constant 0 : i32
    %c0_i32_1 = arith.constant 0 : i32
    return %c0_i32, %c0_i32_0 : i32, i32
  }
  func.func @transform_9(%arg0: i32) -> (i32, i32) {
    %c0_i32 = arith.constant 0 : i32
    %c0_i32_0 = arith.constant 0 : i32
    return %arg0, %c0_i32 : i32, i32
  }
}

</mosaic_0001>

<bundles_post_ra>
// kernel: gnn_forward.11
= control target key start
LH: loop header
LB: loop body
LE: loop exit
PB: predicated region body
PF: predicated region fallthrough
CT: control target
= control target key end

     0   :  { %vm359_vm0 = vcmask 1043456   ;;  %vm310_vm1 = vcmask 31744   ;;  %vm66_vm2 = vcmask 64512   ;;  %vm492_vm3 = vcmask 523264   ;;  %s1080_s5 = inlined_call_operand.vmem [shape: f32[4,64], index: 5, kind: input, shape index: {}]   ;;  %s1081_s2 = inlined_call_operand.vmem [shape: f32[128,4], index: 2, kind: input, shape index: {}]   ;;  %s1082_s4 = inlined_call_operand.vmem [shape: f32[8,64], index: 4, kind: input, shape index: {}]   ;;  %s1083_s3 = inlined_call_operand.vmem [shape: f32[8,64], index: 3, kind: input, shape index: {}]   ;;  %s1084_s1 = inlined_call_operand.vmem [shape: f32[128,8], index: 1, kind: input, shape index: {}]   ;;  %s1085_s0 = inlined_call_operand.vmem [shape: f32[128,8], index: 0, kind: input, shape index: {}]   ;;  %s1086_s6 = inlined_call_operand.vmem [shape: f32[1,64], index: 6, kind: input, shape index: {}]   ;;  %s1087_s7 = inlined_call_operand.vmem [shape: f32[64,64], index: 7, kind: input, shape index: {}]   ;;  %s1088_s8 = inlined_call_operand.vmem [shape: f32[1,64], index: 8, kind: input, shape index: {}]   ;;  %s1089_s9 = inlined_call_operand.vmem [shape: f32[128,64], index: 9, kind: output, shape index: {}]  }
   0x1   :  { %v309_v0 = vld [vmem:[%s1080_s5] sm:$0xf]  ;;  %v294_v6 = vld [vmem:[%s1081_s2 + $0x8] sm:$0xff]  ;;  %v295_v9 = vld [vmem:[%s1081_s2 + $0x10] sm:$0xff] }
   0x2   :  { %v293_v1 = vld [vmem:[%s1081_s2] sm:$0xff]  ;;  %658 = vmatpush.msk.msra.mxu2 %vm359_vm0, %v309_v0  ;;  %v50_v7 = vld [vmem:[%s1084_s1 + $0x8] sm:$0xff]  ;;  %v51_v10 = vld [vmem:[%s1084_s1 + $0x10] sm:$0xff] }
   0x3   :  { %v65_v2 = vld [vmem:[%s1082_s4] sm:$0xff]  ;;  %659 = vmatmul.msk.f32.vlgmr.msra.gmra.mxu2 %vm310_vm1, %v293_v1  ;;  %v33_v8 = vld [vmem:[%s1085_s0 + $0x8] sm:$0xff]  ;;  %v34_v11 = vld [vmem:[%s1085_s0 + $0x10] sm:$0xff] }
   0x4   :  { %130 = vmatpush.msra.mxu0 %v65_v2  ;;  %v48_v3 = vld [vmem:[%s1083_s3] sm:$0xff]  ;;  %v296_v12 = vld [vmem:[%s1081_s2 + $0x18] sm:$0xff]  ;;  %v298_v18 = vld [vmem:[%s1081_s2 + $0x28] sm:$0xff] }
   0x5   :  { %v49_v4 = vld [vmem:[%s1084_s1] sm:$0xff]  ;;  %243 = vmatpush.msra.mxu1 %v48_v3  ;;  %v52_v13 = vld [vmem:[%s1084_s1 + $0x18] sm:$0xff]  ;;  %v54_v19 = vld [vmem:[%s1084_s1 + $0x28] sm:$0xff] }
   0x6   :  { %v32_v5 = vld [vmem:[%s1085_s0] sm:$0xff]  ;;  %626 = vmatmul.msk.f32.vlgmr.msra.gmra.mxu0 %vm66_vm2, %v49_v4  ;;  %v35_v14 = vld [vmem:[%s1085_s0 + $0x18] sm:$0xff]  ;;  %v37_v20 = vld [vmem:[%s1085_s0 + $0x28] sm:$0xff] }
   0x7   :  { %642 = vmatmul.msk.f32.vlgmr.msra.gmra.mxu1 %vm66_vm2, %v32_v5  ;;  %v297_v15 = vld [vmem:[%s1081_s2 + $0x20] sm:$0xff]  ;;  %v299_v21 = vld [vmem:[%s1081_s2 + $0x30] sm:$0xff]  ;;  %v300_v24 = vld [vmem:[%s1081_s2 + $0x38] sm:$0xff] }
   0x8   :  { %v53_v16 = vld [vmem:[%s1084_s1 + $0x20] sm:$0xff]  ;;  %v55_v22 = vld [vmem:[%s1084_s1 + $0x30] sm:$0xff]  ;;  %v56_v25 = vld [vmem:[%s1084_s1 + $0x38] sm:$0xff] }
   0x9   :  { %v36_v17 = vld [vmem:[%s1085_s0 + $0x20] sm:$0xff]  ;;  %v38_v23 = vld [vmem:[%s1085_s0 + $0x30] sm:$0xff]  ;;  %v39_v26 = vld [vmem:[%s1085_s0 + $0x38] sm:$0xff] }
   0xa   :  { %v301_v27 = vld [vmem:[%s1081_s2 + $0x40] sm:$0xff]  ;;  %v302_v30 = vld [vmem:[%s1081_s2 + $0x48] sm:$0xff]  ;;  %v303_v33 = vld [vmem:[%s1081_s2 + $0x50] sm:$0xff] }
   0xb   :  { %660 = vmatmul.msk.f32.gmra.mxu2 %vm310_vm1, %v294_v6  ;;  %v57_v28 = vld [vmem:[%s1084_s1 + $0x40] sm:$0xff]  ;;  %v58_v31 = vld [vmem:[%s1084_s1 + $0x48] sm:$0xff]  ;;  %v59_v34 = vld [vmem:[%s1084_s1 + $0x50] sm:$0xff] }
   0xc   :  { %v40_v29 = vld [vmem:[%s1085_s0 + $0x40] sm:$0xff]  ;;  %v41_v32 = vld [vmem:[%s1085_s0 + $0x48] sm:$0xff]  ;;  %v42_v35 = vld [vmem:[%s1085_s0 + $0x50] sm:$0xff] }
   0xd   :  { %v304_v36 = vld [vmem:[%s1081_s2 + $0x58] sm:$0xff]  ;;  %v486_v40 = vld [vmem:[%s1087_s7 + $0x30] sm:$0xff]  ;;  %v485_v41 = vld [vmem:[%s1087_s7 + $0x28] sm:$0xff] }
   0xe   :  { %627 = vmatmul.msk.f32.gmra.mxu0 %vm66_vm2, %v50_v7  ;;  %v60_v37 = vld [vmem:[%s1084_s1 + $0x58] sm:$0xff]  ;;  %v305_v42 = vld [vmem:[%s1081_s2 + $0x60] sm:$0xff]  ;;  %v482_v47 = vld [vmem:[%s1087_s7 + $0x10] sm:$0xff] }
   0xf   :  { %643 = vmatmul.msk.f32.gmra.mxu1 %vm66_vm2, %v33_v8  ;;  %v43_v38 = vld [vmem:[%s1085_s0 + $0x58] sm:$0xff]  ;;  %v61_v43 = vld [vmem:[%s1084_s1 + $0x60] sm:$0xff]  ;;  %v306_v48 = vld [vmem:[%s1081_s2 + $0x68] sm:$0xff] }
  0x10   :  { %v487_v39 = vld [vmem:[%s1087_s7 + $0x38] sm:$0xff]  ;;  %v44_v44 = vld [vmem:[%s1085_s0 + $0x60] sm:$0xff]  ;;  %v62_v49 = vld [vmem:[%s1084_s1 + $0x68] sm:$0xff] }
  0x11   :  { %549 = vmatpush.msrb.mxu0 %v487_v39  ;;  %691 = vmatpush.msra.mxu3 %v487_v39  ;;  %v484_v45 = vld [vmem:[%s1087_s7 + $0x20] sm:$0xff]  ;;  %v483_v46 = vld [vmem:[%s1087_s7 + $0x18] sm:$0xff]  ;;  %v45_v50 = vld [vmem:[%s1085_s0 + $0x68] sm:$0xff] }
  0x12   :  { %v481_v51 = vld [vmem:[%s1087_s7 + $0x8] sm:$0xff]  ;;  %v480_v52 = vld [vmem:[%s1087_s7] sm:$0xff]  ;;  %v307_v53 = vld [vmem:[%s1081_s2 + $0x70] sm:$0xff] }
  0x13   :  { %661 = vmatmul.msk.f32.gmra.mxu2 %vm310_vm1, %v295_v9  ;;  %550 = vmatpush.msrb.mxu0 %v486_v40  ;;  %v63_v54 = vld [vmem:[%s1084_s1 + $0x70] sm:$0xff]  ;;  %v308_v56 = vld [vmem:[%s1081_s2 + $0x78] sm:$0xff]  ;;  %v979_v62 = vld [vmem:[%s1086_s6] ss:$0 sm:$0xff] }
  0x14   :  { %692 = vmatpush.msra.mxu3 %v486_v40  ;;  %v46_v55 = vld [vmem:[%s1085_s0 + $0x70] sm:$0xff]  ;;  %v64_v57 = vld [vmem:[%s1084_s1 + $0x78] sm:$0xff] }
  0x15   :  { %551 = vmatpush.msrb.mxu0 %v485_v41  ;;  %v47_v58 = vld [vmem:[%s1085_s0 + $0x78] sm:$0xff] }
  0x16   :  { %628 = vmatmul.msk.f32.gmra.mxu0 %vm66_vm2, %v51_v10  ;;  %693 = vmatpush.msra.mxu3 %v485_v41 }
  0x17   :  { %644 = vmatmul.msk.f32.gmra.mxu1 %vm66_vm2, %v34_v11  ;;  %552 = vmatpush.msrb.mxu0 %v484_v45 }
  0x18   :  { %694 = vmatpush.msra.mxu3 %v484_v45 }
  0x19   :  { %553 = vmatpush.msrb.mxu0 %v483_v46 }
  0x1a   :  { %695 = vmatpush.msra.mxu3 %v483_v46 }
  0x1b   :  { %662 = vmatmul.msk.f32.gmra.mxu2 %vm310_vm1, %v296_v12  ;;  %554 = vmatpush.msrb.mxu0 %v482_v47 }
  0x1c   :  { %696 = vmatpush.msra.mxu3 %v482_v47 }
  0x1d   :  { %555 = vmatpush.msrb.mxu0 %v481_v51 }
  0x1e   :  { %629 = vmatmul.msk.f32.gmra.mxu0 %vm66_vm2, %v52_v13  ;;  %697 = vmatpush.msra.mxu3 %v481_v51 }
  0x1f   :  { %645 = vmatmul.msk.f32.gmra.mxu1 %vm66_vm2, %v35_v14  ;;  %556 = vmatpush.msrb.mxu0 %v480_v52 }
  0x20   :  { %698 = vmatpush.msra.mxu3 %v480_v52 }
  0x23   :  { %663 = vmatmul.msk.f32.gmra.mxu2 %vm310_vm1, %v297_v15 }
  0x26   :  { %630 = vmatmul.msk.f32.gmra.mxu0 %vm66_vm2, %v53_v16 }
  0x27   :  { %646 = vmatmul.msk.f32.gmra.mxu1 %vm66_vm2, %v36_v17 }
  0x2b   :  { %664 = vmatmul.msk.f32.gmra.mxu2 %vm310_vm1, %v298_v18 }
  0x2e   :  { %631 = vmatmul.msk.f32.gmra.mxu0 %vm66_vm2, %v54_v19 }
  0x2f   :  { %647 = vmatmul.msk.f32.gmra.mxu1 %vm66_vm2, %v37_v20 }
  0x33   :  { %665 = vmatmul.msk.f32.gmra.mxu2 %vm310_vm1, %v299_v21 }
  0x36   :  { %632 = vmatmul.msk.f32.gmra.mxu0 %vm66_vm2, %v55_v22 }
  0x37   :  { %648 = vmatmul.msk.f32.gmra.mxu1 %vm66_vm2, %v38_v23 }
  0x3b   :  { %666 = vmatmul.msk.f32.gmra.mxu2 %vm310_vm1, %v300_v24 }
  0x3e   :  { %633 = vmatmul.msk.f32.gmra.mxu0 %vm66_vm2, %v56_v25 }
  0x3f   :  { %649 = vmatmul.msk.f32.gmra.mxu1 %vm66_vm2, %v39_v26 }
  0x43   :  { %667 = vmatmul.msk.f32.gmra.mxu2 %vm310_vm1, %v301_v27 }
  0x46   :  { %634 = vmatmul.msk.f32.gmra.mxu0 %vm66_vm2, %v57_v28 }
  0x47   :  { %650 = vmatmul.msk.f32.gmra.mxu1 %vm66_vm2, %v40_v29 }
  0x4b   :  { %668 = vmatmul.msk.f32.gmra.mxu2 %vm310_vm1, %v302_v30 }
  0x4e   :  { %635 = vmatmul.msk.f32.gmra.mxu0 %vm66_vm2, %v58_v31 }
  0x4f   :  { %651 = vmatmul.msk.f32.gmra.mxu1 %vm66_vm2, %v41_v32 }
  0x53   :  { %669 = vmatmul.msk.f32.gmra.mxu2 %vm310_vm1, %v303_v33 }
  0x56   :  { %636 = vmatmul.msk.f32.gmra.mxu0 %vm66_vm2, %v59_v34 }
  0x57   :  { %652 = vmatmul.msk.f32.gmra.mxu1 %vm66_vm2, %v42_v35 }
  0x5b   :  { %670 = vmatmul.msk.f32.gmra.mxu2 %vm310_vm1, %v304_v36 }
  0x5e   :  { %637 = vmatmul.msk.f32.gmra.mxu0 %vm66_vm2, %v60_v37 }
  0x5f   :  { %653 = vmatmul.msk.f32.gmra.mxu1 %vm66_vm2, %v43_v38 }
  0x63   :  { %671 = vmatmul.msk.f32.gmra.mxu2 %vm310_vm1, %v305_v42 }
  0x66   :  { %638 = vmatmul.msk.f32.gmra.mxu0 %vm66_vm2, %v61_v43 }
  0x67   :  { %654 = vmatmul.msk.f32.gmra.mxu1 %vm66_vm2, %v44_v44 }
  0x6b   :  { %672 = vmatmul.msk.f32.gmra.mxu2 %vm310_vm1, %v306_v48 }
  0x6e   :  { %639 = vmatmul.msk.f32.gmra.mxu0 %vm66_vm2, %v62_v49 }
  0x6f   :  { %655 = vmatmul.msk.f32.gmra.mxu1 %vm66_vm2, %v45_v50 }
  0x73   :  { %673 = vmatmul.msk.f32.gmra.mxu2 %vm310_vm1, %v307_v53 }
  0x76   :  { %640 = vmatmul.msk.f32.gmra.mxu0 %vm66_vm2, %v63_v54 }
  0x77   :  { %656 = vmatmul.msk.f32.gmra.mxu1 %vm66_vm2, %v46_v55 }
  0x7b   :  { %674 = vmatmul.msk.f32.gmra.mxu2 %vm310_vm1, %v308_v56 }
  0x7e   :  { %641 = vmatmul.msk.f32.gmra.mxu0 %vm66_vm2, %v64_v57 }
  0x7f   :  { %657 = vmatmul.msk.f32.gmra.mxu1 %vm66_vm2, %v47_v58 }
  0x83   :  { %v132_v59 = vpop.f32.mrf.mxu0 }
  0x84   :  { %v245_v60 = vpop.f32.mrf.mxu1 }
  0x85   :  { %v246_v61 = vadd.f32 %v245_v60, %v132_v59 }
  0x86   :  { %v380_v63 = vpop.f32.mrf.mxu2 }
  0x87   :  { %v428_v0 = vadd.f32 %v380_v63, %v246_v61 }
  0x89   :  { %v448_v1 = vadd.f32 %v979_v62, %v428_v0 }
  0x8b   :  { %v135_v2 = vpop.f32.mrf.mxu0  ;;  %v464_v4 = vmax.f32 %v448_v1, 0.0 }
  0x8c   :  { %v248_v3 = vpop.f32.mrf.mxu1 }
  0x8d   :  { %v249_v5 = vadd.f32 %v248_v3, %v135_v2  ;;  %675 = vmatmul.msk.f32.vlgmr.msrb.gmra.mxu0 %vm492_vm3, %v464_v4 }
  0x8e   :  { %v383_v6 = vpop.f32.mrf.mxu2 }
  0x8f   :  { %v429_v7 = vadd.f32 %v383_v6, %v249_v5 }
  0x91   :  { %v449_v8 = vadd.f32 %v979_v62, %v429_v7 }
  0x93   :  { %v138_v9 = vpop.f32.mrf.mxu0  ;;  %v465_v11 = vmax.f32 %v449_v8, 0.0 }
  0x94   :  { %v251_v10 = vpop.f32.mrf.mxu1 }
  0x95   :  { %v252_v12 = vadd.f32 %v251_v10, %v138_v9  ;;  %676 = vmatmul.msk.f32.vlgmr.msra.gmra.mxu3 %vm492_vm3, %v465_v11 }
  0x96   :  { %v386_v13 = vpop.f32.mrf.mxu2 }
  0x97   :  { %v430_v14 = vadd.f32 %v386_v13, %v252_v12 }
  0x99   :  { %v450_v15 = vadd.f32 %v979_v62, %v430_v14 }
  0x9b   :  { %v141_v16 = vpop.f32.mrf.mxu0  ;;  %v466_v18 = vmax.f32 %v450_v15, 0.0 }
  0x9c   :  { %v254_v17 = vpop.f32.mrf.mxu1 }
  0x9d   :  { %v255_v19 = vadd.f32 %v254_v17, %v141_v16  ;;  %677 = vmatmul.msk.f32.gmra.mxu3 %vm492_vm3, %v466_v18 }
  0x9e   :  { %v389_v20 = vpop.f32.mrf.mxu2 }
  0x9f   :  { %v431_v21 = vadd.f32 %v389_v20, %v255_v19 }
  0xa1   :  { %v451_v22 = vadd.f32 %v979_v62, %v431_v21 }
  0xa3   :  { %v144_v23 = vpop.f32.mrf.mxu0  ;;  %v467_v25 = vmax.f32 %v451_v22, 0.0 }
  0xa4   :  { %v257_v24 = vpop.f32.mrf.mxu1 }
  0xa5   :  { %v258_v26 = vadd.f32 %v257_v24, %v144_v23  ;;  %678 = vmatmul.msk.f32.gmra.mxu3 %vm492_vm3, %v467_v25 }
  0xa6   :  { %v392_v27 = vpop.f32.mrf.mxu2 }
  0xa7   :  { %v432_v28 = vadd.f32 %v392_v27, %v258_v26 }
  0xa9   :  { %v452_v29 = vadd.f32 %v979_v62, %v432_v28 }
  0xab   :  { %v147_v30 = vpop.f32.mrf.mxu0  ;;  %v468_v32 = vmax.f32 %v452_v29, 0.0 }
  0xac   :  { %v260_v31 = vpop.f32.mrf.mxu1 }
  0xad   :  { %v261_v33 = vadd.f32 %v260_v31, %v147_v30  ;;  %679 = vmatmul.msk.f32.gmra.mxu3 %vm492_vm3, %v468_v32 }
  0xae   :  { %v395_v34 = vpop.f32.mrf.mxu2 }
  0xaf   :  { %v433_v35 = vadd.f32 %v395_v34, %v261_v33 }
  0xb1   :  { %v453_v36 = vadd.f32 %v979_v62, %v433_v35 }
  0xb3   :  { %v150_v37 = vpop.f32.mrf.mxu0  ;;  %v469_v39 = vmax.f32 %v453_v36, 0.0 }
  0xb4   :  { %v263_v38 = vpop.f32.mrf.mxu1 }
  0xb5   :  { %v264_v40 = vadd.f32 %v263_v38, %v150_v37  ;;  %680 = vmatmul.msk.f32.gmra.mxu3 %vm492_vm3, %v469_v39 }
  0xb6   :  { %v398_v41 = vpop.f32.mrf.mxu2 }
  0xb7   :  { %v434_v42 = vadd.f32 %v398_v41, %v264_v40 }
  0xb9   :  { %v454_v43 = vadd.f32 %v979_v62, %v434_v42 }
  0xbb   :  { %v153_v44 = vpop.f32.mrf.mxu0  ;;  %v470_v46 = vmax.f32 %v454_v43, 0.0 }
  0xbc   :  { %v266_v45 = vpop.f32.mrf.mxu1 }
  0xbd   :  { %v267_v47 = vadd.f32 %v266_v45, %v153_v44  ;;  %681 = vmatmul.msk.f32.gmra.mxu3 %vm492_vm3, %v470_v46  ;;  %v700_v45 = vld [vmem:[%s1088_s8] ss:$0 sm:$0xff] }
  0xbe   :  { %v401_v48 = vpop.f32.mrf.mxu2 }
  0xbf   :  { %v435_v49 = vadd.f32 %v401_v48, %v267_v47 }
  0xc1   :  { %v455_v50 = vadd.f32 %v979_v62, %v435_v49 }
  0xc3   :  { %v156_v51 = vpop.f32.mrf.mxu0  ;;  %v471_v53 = vmax.f32 %v455_v50, 0.0 }
  0xc4   :  { %v269_v52 = vpop.f32.mrf.mxu1 }
  0xc5   :  { %v270_v54 = vadd.f32 %v269_v52, %v156_v51  ;;  %682 = vmatmul.msk.f32.gmra.mxu3 %vm492_vm3, %v471_v53 }
  0xc6   :  { %v404_v55 = vpop.f32.mrf.mxu2 }
  0xc7   :  { %v436_v56 = vadd.f32 %v404_v55, %v270_v54 }
  0xc9   :  { %v456_v57 = vadd.f32 %v979_v62, %v436_v56 }
  0xcb   :  { %v159_v58 = vpop.f32.mrf.mxu0  ;;  %v472_v60 = vmax.f32 %v456_v57, 0.0 }
  0xcc   :  { %v272_v59 = vpop.f32.mrf.mxu1 }
  0xcd   :  { %v273_v61 = vadd.f32 %v272_v59, %v159_v58  ;;  %683 = vmatmul.msk.f32.gmra.mxu3 %vm492_vm3, %v472_v60 }
  0xce   :  { %v407_v63 = vpop.f32.mrf.mxu2 }
  0xcf   :  { %v437_v0 = vadd.f32 %v407_v63, %v273_v61 }
  0xd1   :  { %v457_v1 = vadd.f32 %v979_v62, %v437_v0 }
  0xd3   :  { %v162_v2 = vpop.f32.mrf.mxu0  ;;  %v473_v4 = vmax.f32 %v457_v1, 0.0 }
  0xd4   :  { %v275_v3 = vpop.f32.mrf.mxu1 }
  0xd5   :  { %v276_v5 = vadd.f32 %v275_v3, %v162_v2  ;;  %684 = vmatmul.msk.f32.gmra.mxu3 %vm492_vm3, %v473_v4 }
  0xd6   :  { %v410_v6 = vpop.f32.mrf.mxu2 }
  0xd7   :  { %v438_v7 = vadd.f32 %v410_v6, %v276_v5 }
  0xd9   :  { %v458_v8 = vadd.f32 %v979_v62, %v438_v7 }
  0xdb   :  { %v165_v9 = vpop.f32.mrf.mxu0  ;;  %v474_v11 = vmax.f32 %v458_v8, 0.0 }
  0xdc   :  { %v278_v10 = vpop.f32.mrf.mxu1 }
  0xdd   :  { %v279_v12 = vadd.f32 %v278_v10, %v165_v9  ;;  %685 = vmatmul.msk.f32.gmra.mxu3 %vm492_vm3, %v474_v11 }
  0xde   :  { %v413_v13 = vpop.f32.mrf.mxu2 }
  0xdf   :  { %v439_v14 = vadd.f32 %v413_v13, %v279_v12 }
  0xe1   :  { %v459_v15 = vadd.f32 %v979_v62, %v439_v14 }
  0xe3   :  { %v168_v16 = vpop.f32.mrf.mxu0  ;;  %v475_v18 = vmax.f32 %v459_v15, 0.0 }
  0xe4   :  { %v281_v17 = vpop.f32.mrf.mxu1 }
  0xe5   :  { %v282_v19 = vadd.f32 %v281_v17, %v168_v16  ;;  %686 = vmatmul.msk.f32.gmra.mxu3 %vm492_vm3, %v475_v18 }
  0xe6   :  { %v416_v20 = vpop.f32.mrf.mxu2 }
  0xe7   :  { %v440_v21 = vadd.f32 %v416_v20, %v282_v19 }
  0xe9   :  { %v460_v22 = vadd.f32 %v979_v62, %v440_v21 }
  0xeb   :  { %v171_v23 = vpop.f32.mrf.mxu0  ;;  %v476_v25 = vmax.f32 %v460_v22, 0.0 }
  0xec   :  { %v284_v24 = vpop.f32.mrf.mxu1 }
  0xed   :  { %v285_v26 = vadd.f32 %v284_v24, %v171_v23  ;;  %687 = vmatmul.msk.f32.gmra.mxu3 %vm492_vm3, %v476_v25 }
  0xee   :  { %v419_v27 = vpop.f32.mrf.mxu2 }
  0xef   :  { %v441_v28 = vadd.f32 %v419_v27, %v285_v26 }
  0xf1   :  { %v461_v29 = vadd.f32 %v979_v62, %v441_v28 }
  0xf3   :  { %v174_v30 = vpop.f32.mrf.mxu0  ;;  %v477_v32 = vmax.f32 %v461_v29, 0.0 }
  0xf4   :  { %v287_v31 = vpop.f32.mrf.mxu1 }
  0xf5   :  { %v288_v33 = vadd.f32 %v287_v31, %v174_v30  ;;  %688 = vmatmul.msk.f32.gmra.mxu3 %vm492_vm3, %v477_v32 }
  0xf6   :  { %v422_v34 = vpop.f32.mrf.mxu2 }
  0xf7   :  { %v442_v35 = vadd.f32 %v422_v34, %v288_v33 }
  0xf9   :  { %v462_v36 = vadd.f32 %v979_v62, %v442_v35 }
  0xfb   :  { %v177_v37 = vpop.f32.mrf.mxu0  ;;  %v478_v39 = vmax.f32 %v462_v36, 0.0 }
  0xfc   :  { %v290_v38 = vpop.f32.mrf.mxu1 }
  0xfd   :  { %v291_v40 = vadd.f32 %v290_v38, %v177_v37  ;;  %689 = vmatmul.msk.f32.gmra.mxu3 %vm492_vm3, %v478_v39 }
  0xfe   :  { %v425_v41 = vpop.f32.mrf.mxu2 }
  0xff   :  { %v443_v42 = vadd.f32 %v425_v41, %v291_v40 }
 0x101   :  { %v463_v43 = vadd.f32 %v979_v62, %v443_v42 }
 0x103   :  { %v479_v44 = vmax.f32 %v463_v43, 0.0 }
 0x105   :  { %690 = vmatmul.msk.f32.gmra.mxu3 %vm492_vm3, %v479_v44 }
 0x10a   :  { %v558_v46 = vpop.f32.mrf.mxu0 }
 0x10b   :  { %v559_v47 = vadd.f32 %v700_v45, %v558_v46 }
 0x10d   :  { %606 = vst.msk [vmem:[%s1089_s9] sm:$0xff] %vm492_vm3, %v559_v47 }
 0x118   :  { %v561_v48 = vpop.f32.mrf.mxu3 }
 0x119   :  { %v562_v49 = vadd.f32 %v700_v45, %v561_v48 }
 0x11b   :  { %607 = vst.msk [vmem:[%s1089_s9 + $0x8] sm:$0xff] %vm492_vm3, %v562_v49 }
 0x120   :  { %v564_v62 = vpop.f32.mrf.mxu3 }
 0x121   :  { %v565_v50 = vadd.f32 %v700_v45, %v564_v62 }
 0x123   :  { %608 = vst.msk [vmem:[%s1089_s9 + $0x10] sm:$0xff] %vm492_vm3, %v565_v50 }
 0x128   :  { %v567_v51 = vpop.f32.mrf.mxu3 }
 0x129   :  { %v568_v52 = vadd.f32 %v700_v45, %v567_v51 }
 0x12b   :  { %609 = vst.msk [vmem:[%s1089_s9 + $0x18] sm:$0xff] %vm492_vm3, %v568_v52 }
 0x130   :  { %v570_v53 = vpop.f32.mrf.mxu3 }
 0x131   :  { %v571_v54 = vadd.f32 %v700_v45, %v570_v53 }
 0x133   :  { %610 = vst.msk [vmem:[%s1089_s9 + $0x20] sm:$0xff] %vm492_vm3, %v571_v54 }
 0x138   :  { %v573_v55 = vpop.f32.mrf.mxu3 }
 0x139   :  { %v574_v56 = vadd.f32 %v700_v45, %v573_v55 }
 0x13b   :  { %611 = vst.msk [vmem:[%s1089_s9 + $0x28] sm:$0xff] %vm492_vm3, %v574_v56 }
 0x140   :  { %v576_v57 = vpop.f32.mrf.mxu3 }
 0x141   :  { %v577_v58 = vadd.f32 %v700_v45, %v576_v57 }
 0x143   :  { %612 = vst.msk [vmem:[%s1089_s9 + $0x30] sm:$0xff] %vm492_vm3, %v577_v58 }
 0x148   :  { %v579_v59 = vpop.f32.mrf.mxu3 }
 0x149   :  { %v580_v60 = vadd.f32 %v700_v45, %v579_v59 }
 0x14b   :  { %613 = vst.msk [vmem:[%s1089_s9 + $0x38] sm:$0xff] %vm492_vm3, %v580_v60 }
 0x150   :  { %v582_v61 = vpop.f32.mrf.mxu3 }
 0x151   :  { %v583_v63 = vadd.f32 %v700_v45, %v582_v61 }
 0x153   :  { %614 = vst.msk [vmem:[%s1089_s9 + $0x40] sm:$0xff] %vm492_vm3, %v583_v63 }
 0x158   :  { %v585_v0 = vpop.f32.mrf.mxu3 }
 0x159   :  { %v586_v1 = vadd.f32 %v700_v45, %v585_v0 }
 0x15b   :  { %615 = vst.msk [vmem:[%s1089_s9 + $0x48] sm:$0xff] %vm492_vm3, %v586_v1 }
 0x160   :  { %v588_v2 = vpop.f32.mrf.mxu3 }
 0x161   :  { %v589_v3 = vadd.f32 %v700_v45, %v588_v2 }
 0x163   :  { %616 = vst.msk [vmem:[%s1089_s9 + $0x50] sm:$0xff] %vm492_vm3, %v589_v3 }
 0x168   :  { %v591_v4 = vpop.f32.mrf.mxu3 }
 0x169   :  { %v592_v5 = vadd.f32 %v700_v45, %v591_v4 }
 0x16b   :  { %617 = vst.msk [vmem:[%s1089_s9 + $0x58] sm:$0xff] %vm492_vm3, %v592_v5 }
 0x170   :  { %v594_v6 = vpop.f32.mrf.mxu3 }
 0x171   :  { %v595_v7 = vadd.f32 %v700_v45, %v594_v6 }
 0x173   :  { %618 = vst.msk [vmem:[%s1089_s9 + $0x60] sm:$0xff] %vm492_vm3, %v595_v7 }
 0x178   :  { %v597_v8 = vpop.f32.mrf.mxu3 }
 0x179   :  { %v598_v9 = vadd.f32 %v700_v45, %v597_v8 }
 0x17b   :  { %619 = vst.msk [vmem:[%s1089_s9 + $0x68] sm:$0xff] %vm492_vm3, %v598_v9 }
 0x180   :  { %v600_v10 = vpop.f32.mrf.mxu3 }
 0x181   :  { %v601_v11 = vadd.f32 %v700_v45, %v600_v10 }
 0x183   :  { %620 = vst.msk [vmem:[%s1089_s9 + $0x70] sm:$0xff] %vm492_vm3, %v601_v11 }
 0x188   :  { %v603_v12 = vpop.f32.mrf.mxu3 }
 0x189   :  { %v604_v13 = vadd.f32 %v700_v45, %v603_v12 }
 0x18b   :  { %621 = vst.msk [vmem:[%s1089_s9 + $0x78] sm:$0xff] %vm492_vm3, %v604_v13 }

// kernel: gnn_forward.13
= control target key start
LH: loop header
LB: loop body
LE: loop exit
PB: predicated region body
PF: predicated region fallthrough
CT: control target
= control target key end

     0   :  { %vm80_vm0 = vcmask 523264   ;;  %s1149_s5 = inlined_call_operand.vmem [shape: f32[64,64], index: 5, kind: input, shape index: {}]   ;;  %s1150_s4 = inlined_call_operand.vmem [shape: f32[64,64], index: 4, kind: input, shape index: {}]   ;;  %s1151_s3 = inlined_call_operand.vmem [shape: f32[64,64], index: 3, kind: input, shape index: {}]   ;;  %s1152_s2 = inlined_call_operand.vmem [shape: f32[128,64], index: 2, kind: input, shape index: {}]   ;;  %s1153_s1 = inlined_call_operand.vmem [shape: f32[128,64], index: 1, kind: input, shape index: {}]   ;;  %s1154_s0 = inlined_call_operand.vmem [shape: f32[128,64], index: 0, kind: input, shape index: {}]   ;;  %s1155_s6 = inlined_call_operand.vmem [shape: f32[1,64], index: 6, kind: input, shape index: {}]   ;;  %s1156_s7 = inlined_call_operand.vmem [shape: f32[64,64], index: 7, kind: input, shape index: {}]   ;;  %s1157_s8 = inlined_call_operand.vmem [shape: f32[1,64], index: 8, kind: input, shape index: {}]   ;;  %s1158_s9 = inlined_call_operand.vmem [shape: f32[128,64], index: 9, kind: output, shape index: {}]  }
   0x1   :  { %v330_v0 = vld [vmem:[%s1149_s5 + $0x38] sm:$0xff]  ;;  %v329_v1 = vld [vmem:[%s1149_s5 + $0x30] sm:$0xff]  ;;  %v328_v5 = vld [vmem:[%s1149_s5 + $0x28] sm:$0xff] }
   0x2   :  { %v79_v2 = vld [vmem:[%s1150_s4 + $0x38] sm:$0xff]  ;;  %387 = vmatpush.msra.mxu2 %v330_v0  ;;  %v78_v4 = vld [vmem:[%s1150_s4 + $0x30] sm:$0xff]  ;;  %v77_v7 = vld [vmem:[%s1150_s4 + $0x28] sm:$0xff] }
   0x3   :  { %137 = vmatpush.msra.mxu0 %v79_v2  ;;  %v55_v3 = vld [vmem:[%s1151_s3 + $0x38] sm:$0xff]  ;;  %v54_v6 = vld [vmem:[%s1151_s3 + $0x30] sm:$0xff]  ;;  %v53_v8 = vld [vmem:[%s1151_s3 + $0x28] sm:$0xff] }
   0x4   :  { %250 = vmatpush.msra.mxu1 %v55_v3  ;;  %388 = vmatpush.msra.mxu2 %v329_v1  ;;  %v327_v9 = vld [vmem:[%s1149_s5 + $0x20] sm:$0xff]  ;;  %v326_v12 = vld [vmem:[%s1149_s5 + $0x18] sm:$0xff]  ;;  %v325_v15 = vld [vmem:[%s1149_s5 + $0x10] sm:$0xff] }
   0x5   :  { %138 = vmatpush.msra.mxu0 %v78_v4  ;;  %v76_v10 = vld [vmem:[%s1150_s4 + $0x20] sm:$0xff]  ;;  %v75_v13 = vld [vmem:[%s1150_s4 + $0x18] sm:$0xff]  ;;  %v74_v16 = vld [vmem:[%s1150_s4 + $0x10] sm:$0xff] }
   0x6   :  { %251 = vmatpush.msra.mxu1 %v54_v6  ;;  %389 = vmatpush.msra.mxu2 %v328_v5  ;;  %v52_v11 = vld [vmem:[%s1151_s3 + $0x20] sm:$0xff]  ;;  %v51_v14 = vld [vmem:[%s1151_s3 + $0x18] sm:$0xff]  ;;  %v50_v17 = vld [vmem:[%s1151_s3 + $0x10] sm:$0xff] }
   0x7   :  { %139 = vmatpush.msra.mxu0 %v77_v7  ;;  %v324_v18 = vld [vmem:[%s1149_s5 + $0x8] sm:$0xff]  ;;  %v323_v21 = vld [vmem:[%s1149_s5] sm:$0xff]  ;;  %v309_v30 = vld [vmem:[%s1152_s2 + $0x10] sm:$0xff] }
   0x8   :  { %252 = vmatpush.msra.mxu1 %v53_v8  ;;  %390 = vmatpush.msra.mxu2 %v327_v9  ;;  %v73_v19 = vld [vmem:[%s1150_s4 + $0x8] sm:$0xff]  ;;  %v72_v22 = vld [vmem:[%s1150_s4] sm:$0xff]  ;;  %v58_v31 = vld [vmem:[%s1153_s1 + $0x10] sm:$0xff] }
   0x9   :  { %140 = vmatpush.msra.mxu0 %v76_v10  ;;  %v49_v20 = vld [vmem:[%s1151_s3 + $0x8] sm:$0xff]  ;;  %v307_v23 = vld [vmem:[%s1152_s2] sm:$0xff]  ;;  %v34_v32 = vld [vmem:[%s1154_s0 + $0x10] sm:$0xff] }
   0xa   :  { %253 = vmatpush.msra.mxu1 %v52_v11  ;;  %391 = vmatpush.msra.mxu2 %v326_v12  ;;  %v48_v24 = vld [vmem:[%s1151_s3] sm:$0xff]  ;;  %v308_v27 = vld [vmem:[%s1152_s2 + $0x8] sm:$0xff]  ;;  %v310_v33 = vld [vmem:[%s1152_s2 + $0x18] sm:$0xff] }
   0xb   :  { %141 = vmatpush.msra.mxu0 %v75_v13  ;;  %v56_v25 = vld [vmem:[%s1153_s1] sm:$0xff]  ;;  %v57_v28 = vld [vmem:[%s1153_s1 + $0x8] sm:$0xff]  ;;  %v59_v34 = vld [vmem:[%s1153_s1 + $0x18] sm:$0xff] }
   0xc   :  { %254 = vmatpush.msra.mxu1 %v51_v14  ;;  %392 = vmatpush.msra.mxu2 %v325_v15  ;;  %v32_v26 = vld [vmem:[%s1154_s0] sm:$0xff]  ;;  %v33_v29 = vld [vmem:[%s1154_s0 + $0x8] sm:$0xff]  ;;  %v35_v35 = vld [vmem:[%s1154_s0 + $0x18] sm:$0xff] }
   0xd   :  { %142 = vmatpush.msra.mxu0 %v74_v16  ;;  %v311_v36 = vld [vmem:[%s1152_s2 + $0x20] sm:$0xff]  ;;  %v312_v39 = vld [vmem:[%s1152_s2 + $0x28] sm:$0xff]  ;;  %v313_v42 = vld [vmem:[%s1152_s2 + $0x30] sm:$0xff] }
   0xe   :  { %255 = vmatpush.msra.mxu1 %v50_v17  ;;  %393 = vmatpush.msra.mxu2 %v324_v18  ;;  %v60_v37 = vld [vmem:[%s1153_s1 + $0x20] sm:$0xff]  ;;  %v61_v40 = vld [vmem:[%s1153_s1 + $0x28] sm:$0xff]  ;;  %v62_v43 = vld [vmem:[%s1153_s1 + $0x30] sm:$0xff] }
   0xf   :  { %143 = vmatpush.msra.mxu0 %v73_v19  ;;  %v36_v38 = vld [vmem:[%s1154_s0 + $0x20] sm:$0xff]  ;;  %v37_v41 = vld [vmem:[%s1154_s0 + $0x28] sm:$0xff]  ;;  %v38_v44 = vld [vmem:[%s1154_s0 + $0x30] sm:$0xff] }
  0x10   :  { %256 = vmatpush.msra.mxu1 %v49_v20  ;;  %394 = vmatpush.msra.mxu2 %v323_v21  ;;  %v314_v45 = vld [vmem:[%s1152_s2 + $0x38] sm:$0xff]  ;;  %v315_v48 = vld [vmem:[%s1152_s2 + $0x40] sm:$0xff]  ;;  %v316_v51 = vld [vmem:[%s1152_s2 + $0x48] sm:$0xff] }
  0x11   :  { %144 = vmatpush.msra.mxu0 %v72_v22  ;;  %673 = vmatmul.msk.f32.vlgmr.msra.gmra.mxu2 %vm80_vm0, %v307_v23  ;;  %v63_v46 = vld [vmem:[%s1153_s1 + $0x38] sm:$0xff]  ;;  %v64_v49 = vld [vmem:[%s1153_s1 + $0x40] sm:$0xff]  ;;  %v65_v52 = vld [vmem:[%s1153_s1 + $0x48] sm:$0xff] }
  0x12   :  { %257 = vmatpush.msra.mxu1 %v48_v24  ;;  %641 = vmatmul.msk.f32.vlgmr.msra.gmra.mxu0 %vm80_vm0, %v56_v25  ;;  %v39_v47 = vld [vmem:[%s1154_s0 + $0x38] sm:$0xff]  ;;  %v40_v50 = vld [vmem:[%s1154_s0 + $0x40] sm:$0xff]  ;;  %v41_v53 = vld [vmem:[%s1154_s0 + $0x48] sm:$0xff] }
  0x13   :  { %657 = vmatmul.msk.f32.vlgmr.msra.gmra.mxu1 %vm80_vm0, %v32_v26  ;;  %v317_v54 = vld [vmem:[%s1152_s2 + $0x50] sm:$0xff]  ;;  %v318_v57 = vld [vmem:[%s1152_s2 + $0x58] sm:$0xff]  ;;  %v501_v62 = vld [vmem:[%s1156_s7 + $0x28] sm:$0xff] }
  0x14   :  { %v66_v55 = vld [vmem:[%s1153_s1 + $0x50] sm:$0xff]  ;;  %v67_v58 = vld [vmem:[%s1153_s1 + $0x58] sm:$0xff]  ;;  %v319_v63 = vld [vmem:[%s1152_s2 + $0x60] sm:$0xff] }
  0x15   :  { %v42_v56 = vld [vmem:[%s1154_s0 + $0x50] sm:$0xff]  ;;  %v43_v59 = vld [vmem:[%s1154_s0 + $0x58] sm:$0xff]  ;;  %v68_v0 = vld [vmem:[%s1153_s1 + $0x60] sm:$0xff] }
  0x16   :  { %v503_v60 = vld [vmem:[%s1156_s7 + $0x38] sm:$0xff]  ;;  %v502_v61 = vld [vmem:[%s1156_s7 + $0x30] sm:$0xff]  ;;  %v44_v1 = vld [vmem:[%s1154_s0 + $0x60] sm:$0xff] }
  0x17   :  { %564 = vmatpush.msra.mxu3 %v503_v60  ;;  %v500_v2 = vld [vmem:[%s1156_s7 + $0x20] sm:$0xff]  ;;  %v499_v3 = vld [vmem:[%s1156_s7 + $0x18] sm:$0xff]  ;;  %v498_v4 = vld [vmem:[%s1156_s7 + $0x10] sm:$0xff] }
  0x18   :  { %v320_v5 = vld [vmem:[%s1152_s2 + $0x68] sm:$0xff]  ;;  %v496_v9 = vld [vmem:[%s1156_s7] sm:$0xff]  ;;  %v321_v10 = vld [vmem:[%s1152_s2 + $0x70] sm:$0xff] }
  0x19   :  { %674 = vmatmul.msk.f32.gmra.mxu2 %vm80_vm0, %v308_v27  ;;  %565 = vmatpush.msra.mxu3 %v502_v61  ;;  %v69_v6 = vld [vmem:[%s1153_s1 + $0x68] sm:$0xff]  ;;  %v70_v11 = vld [vmem:[%s1153_s1 + $0x70] sm:$0xff]  ;;  %v322_v13 = vld [vmem:[%s1152_s2 + $0x78] sm:$0xff] }
  0x1a   :  { %642 = vmatmul.msk.f32.gmra.mxu0 %vm80_vm0, %v57_v28  ;;  %v45_v7 = vld [vmem:[%s1154_s0 + $0x68] sm:$0xff]  ;;  %v46_v12 = vld [vmem:[%s1154_s0 + $0x70] sm:$0xff]  ;;  %v71_v14 = vld [vmem:[%s1153_s1 + $0x78] sm:$0xff] }
  0x1b   :  { %658 = vmatmul.msk.f32.gmra.mxu1 %vm80_vm0, %v33_v29  ;;  %566 = vmatpush.msra.mxu3 %v501_v62  ;;  %v497_v8 = vld [vmem:[%s1156_s7 + $0x8] sm:$0xff]  ;;  %v47_v15 = vld [vmem:[%s1154_s0 + $0x78] sm:$0xff]  ;;  %v1048_v19 = vld [vmem:[%s1155_s6] ss:$0 sm:$0xff] }
  0x1d   :  { %567 = vmatpush.msra.mxu3 %v500_v2 }
  0x1f   :  { %568 = vmatpush.msra.mxu3 %v499_v3 }
  0x21   :  { %675 = vmatmul.msk.f32.gmra.mxu2 %vm80_vm0, %v309_v30  ;;  %569 = vmatpush.msra.mxu3 %v498_v4 }
  0x22   :  { %643 = vmatmul.msk.f32.gmra.mxu0 %vm80_vm0, %v58_v31 }
  0x23   :  { %659 = vmatmul.msk.f32.gmra.mxu1 %vm80_vm0, %v34_v32  ;;  %570 = vmatpush.msra.mxu3 %v497_v8 }
  0x25   :  { %571 = vmatpush.msra.mxu3 %v496_v9 }
  0x29   :  { %676 = vmatmul.msk.f32.gmra.mxu2 %vm80_vm0, %v310_v33 }
  0x2a   :  { %644 = vmatmul.msk.f32.gmra.mxu0 %vm80_vm0, %v59_v34 }
  0x2b   :  { %660 = vmatmul.msk.f32.gmra.mxu1 %vm80_vm0, %v35_v35 }
  0x31   :  { %677 = vmatmul.msk.f32.gmra.mxu2 %vm80_vm0, %v311_v36 }
  0x32   :  { %645 = vmatmul.msk.f32.gmra.mxu0 %vm80_vm0, %v60_v37 }
  0x33   :  { %661 = vmatmul.msk.f32.gmra.mxu1 %vm80_vm0, %v36_v38 }
  0x39   :  { %678 = vmatmul.msk.f32.gmra.mxu2 %vm80_vm0, %v312_v39 }
  0x3a   :  { %646 = vmatmul.msk.f32.gmra.mxu0 %vm80_vm0, %v61_v40 }
  0x3b   :  { %662 = vmatmul.msk.f32.gmra.mxu1 %vm80_vm0, %v37_v41 }
  0x41   :  { %679 = vmatmul.msk.f32.gmra.mxu2 %vm80_vm0, %v313_v42 }
  0x42   :  { %647 = vmatmul.msk.f32.gmra.mxu0 %vm80_vm0, %v62_v43 }
  0x43   :  { %663 = vmatmul.msk.f32.gmra.mxu1 %vm80_vm0, %v38_v44 }
  0x49   :  { %680 = vmatmul.msk.f32.gmra.mxu2 %vm80_vm0, %v314_v45 }
  0x4a   :  { %648 = vmatmul.msk.f32.gmra.mxu0 %vm80_vm0, %v63_v46 }
  0x4b   :  { %664 = vmatmul.msk.f32.gmra.mxu1 %vm80_vm0, %v39_v47 }
  0x51   :  { %681 = vmatmul.msk.f32.gmra.mxu2 %vm80_vm0, %v315_v48 }
  0x52   :  { %649 = vmatmul.msk.f32.gmra.mxu0 %vm80_vm0, %v64_v49 }
  0x53   :  { %665 = vmatmul.msk.f32.gmra.mxu1 %vm80_vm0, %v40_v50 }
  0x59   :  { %682 = vmatmul.msk.f32.gmra.mxu2 %vm80_vm0, %v316_v51 }
  0x5a   :  { %650 = vmatmul.msk.f32.gmra.mxu0 %vm80_vm0, %v65_v52 }
  0x5b   :  { %666 = vmatmul.msk.f32.gmra.mxu1 %vm80_vm0, %v41_v53 }
  0x61   :  { %683 = vmatmul.msk.f32.gmra.mxu2 %vm80_vm0, %v317_v54 }
  0x62   :  { %651 = vmatmul.msk.f32.gmra.mxu0 %vm80_vm0, %v66_v55 }
  0x63   :  { %667 = vmatmul.msk.f32.gmra.mxu1 %vm80_vm0, %v42_v56 }
  0x69   :  { %684 = vmatmul.msk.f32.gmra.mxu2 %vm80_vm0, %v318_v57 }
  0x6a   :  { %652 = vmatmul.msk.f32.gmra.mxu0 %vm80_vm0, %v67_v58 }
  0x6b   :  { %668 = vmatmul.msk.f32.gmra.mxu1 %vm80_vm0, %v43_v59 }
  0x71   :  { %685 = vmatmul.msk.f32.gmra.mxu2 %vm80_vm0, %v319_v63 }
  0x72   :  { %653 = vmatmul.msk.f32.gmra.mxu0 %vm80_vm0, %v68_v0 }
  0x73   :  { %669 = vmatmul.msk.f32.gmra.mxu1 %vm80_vm0, %v44_v1 }
  0x79   :  { %686 = vmatmul.msk.f32.gmra.mxu2 %vm80_vm0, %v320_v5 }
  0x7a   :  { %654 = vmatmul.msk.f32.gmra.mxu0 %vm80_vm0, %v69_v6 }
  0x7b   :  { %670 = vmatmul.msk.f32.gmra.mxu1 %vm80_vm0, %v45_v7 }
  0x81   :  { %687 = vmatmul.msk.f32.gmra.mxu2 %vm80_vm0, %v321_v10 }
  0x82   :  { %655 = vmatmul.msk.f32.gmra.mxu0 %vm80_vm0, %v70_v11 }
  0x83   :  { %671 = vmatmul.msk.f32.gmra.mxu1 %vm80_vm0, %v46_v12 }
  0x89   :  { %688 = vmatmul.msk.f32.gmra.mxu2 %vm80_vm0, %v322_v13 }
  0x8a   :  { %656 = vmatmul.msk.f32.gmra.mxu0 %vm80_vm0, %v71_v14 }
  0x8b   :  { %672 = vmatmul.msk.f32.gmra.mxu1 %vm80_vm0, %v47_v15 }
  0x8f   :  { %v146_v16 = vpop.f32.mrf.mxu0 }
  0x90   :  { %v259_v17 = vpop.f32.mrf.mxu1 }
  0x91   :  { %v260_v18 = vadd.f32 %v259_v17, %v146_v16 }
  0x94   :  { %v396_v20 = vpop.f32.mrf.mxu2 }
  0x95   :  { %v444_v21 = vadd.f32 %v396_v20, %v260_v18 }
  0x97   :  { %v464_v22 = vadd.f32 %v1048_v19, %v444_v21  ;;  %v149_v23 = vpop.f32.mrf.mxu0 }
  0x98   :  { %v262_v24 = vpop.f32.mrf.mxu1 }
  0x99   :  { %v480_v25 = vmax.f32 %v464_v22, 0.0  ;;  %v263_v26 = vadd.f32 %v262_v24, %v149_v23 }
  0x9b   :  { %689 = vmatmul.msk.f32.vlgmr.msra.gmra.mxu3 %vm80_vm0, %v480_v25 }
  0x9c   :  { %v399_v27 = vpop.f32.mrf.mxu2 }
  0x9d   :  { %v445_v28 = vadd.f32 %v399_v27, %v263_v26 }
  0x9f   :  { %v465_v29 = vadd.f32 %v1048_v19, %v445_v28  ;;  %v152_v30 = vpop.f32.mrf.mxu0 }
  0xa0   :  { %v265_v31 = vpop.f32.mrf.mxu1 }
  0xa1   :  { %v481_v32 = vmax.f32 %v465_v29, 0.0  ;;  %v266_v33 = vadd.f32 %v265_v31, %v152_v30 }
  0xa3   :  { %690 = vmatmul.msk.f32.gmra.mxu3 %vm80_vm0, %v481_v32 }
  0xa4   :  { %v402_v34 = vpop.f32.mrf.mxu2 }
  0xa5   :  { %v446_v35 = vadd.f32 %v402_v34, %v266_v33 }
  0xa7   :  { %v466_v36 = vadd.f32 %v1048_v19, %v446_v35  ;;  %v155_v37 = vpop.f32.mrf.mxu0 }
  0xa8   :  { %v268_v38 = vpop.f32.mrf.mxu1 }
  0xa9   :  { %v482_v39 = vmax.f32 %v466_v36, 0.0  ;;  %v269_v40 = vadd.f32 %v268_v38, %v155_v37 }
  0xab   :  { %691 = vmatmul.msk.f32.gmra.mxu3 %vm80_vm0, %v482_v39 }
  0xac   :  { %v405_v41 = vpop.f32.mrf.mxu2 }
  0xad   :  { %v447_v42 = vadd.f32 %v405_v41, %v269_v40 }
  0xaf   :  { %v467_v43 = vadd.f32 %v1048_v19, %v447_v42  ;;  %v158_v44 = vpop.f32.mrf.mxu0 }
  0xb0   :  { %v271_v45 = vpop.f32.mrf.mxu1 }
  0xb1   :  { %v483_v46 = vmax.f32 %v467_v43, 0.0  ;;  %v272_v47 = vadd.f32 %v271_v45, %v158_v44 }
  0xb3   :  { %692 = vmatmul.msk.f32.gmra.mxu3 %vm80_vm0, %v483_v46 }
  0xb4   :  { %v408_v48 = vpop.f32.mrf.mxu2 }
  0xb5   :  { %v448_v49 = vadd.f32 %v408_v48, %v272_v47 }
  0xb7   :  { %v468_v50 = vadd.f32 %v1048_v19, %v448_v49  ;;  %v161_v51 = vpop.f32.mrf.mxu0 }
  0xb8   :  { %v274_v52 = vpop.f32.mrf.mxu1 }
  0xb9   :  { %v484_v53 = vmax.f32 %v468_v50, 0.0  ;;  %v275_v54 = vadd.f32 %v274_v52, %v161_v51 }
  0xbb   :  { %693 = vmatmul.msk.f32.gmra.mxu3 %vm80_vm0, %v484_v53 }
  0xbc   :  { %v411_v55 = vpop.f32.mrf.mxu2 }
  0xbd   :  { %v449_v56 = vadd.f32 %v411_v55, %v275_v54 }
  0xbf   :  { %v469_v57 = vadd.f32 %v1048_v19, %v449_v56  ;;  %v164_v58 = vpop.f32.mrf.mxu0 }
  0xc0   :  { %v277_v59 = vpop.f32.mrf.mxu1 }
  0xc1   :  { %v485_v60 = vmax.f32 %v469_v57, 0.0  ;;  %v278_v61 = vadd.f32 %v277_v59, %v164_v58 }
  0xc3   :  { %694 = vmatmul.msk.f32.gmra.mxu3 %vm80_vm0, %v485_v60 }
  0xc4   :  { %v414_v62 = vpop.f32.mrf.mxu2 }
  0xc5   :  { %v450_v63 = vadd.f32 %v414_v62, %v278_v61 }
  0xc7   :  { %v470_v0 = vadd.f32 %v1048_v19, %v450_v63  ;;  %v167_v1 = vpop.f32.mrf.mxu0 }
  0xc8   :  { %v280_v2 = vpop.f32.mrf.mxu1 }
  0xc9   :  { %v486_v3 = vmax.f32 %v470_v0, 0.0  ;;  %v281_v4 = vadd.f32 %v280_v2, %v167_v1  ;;  %v706_v2 = vld [vmem:[%s1157_s8] ss:$0 sm:$0xff] }
  0xcb   :  { %695 = vmatmul.msk.f32.gmra.mxu3 %vm80_vm0, %v486_v3 }
  0xcc   :  { %v417_v5 = vpop.f32.mrf.mxu2 }
  0xcd   :  { %v451_v6 = vadd.f32 %v417_v5, %v281_v4 }
  0xcf   :  { %v471_v7 = vadd.f32 %v1048_v19, %v451_v6  ;;  %v170_v8 = vpop.f32.mrf.mxu0 }
  0xd0   :  { %v283_v9 = vpop.f32.mrf.mxu1 }
  0xd1   :  { %v487_v10 = vmax.f32 %v471_v7, 0.0  ;;  %v284_v11 = vadd.f32 %v283_v9, %v170_v8 }
  0xd3   :  { %696 = vmatmul.msk.f32.gmra.mxu3 %vm80_vm0, %v487_v10 }
  0xd4   :  { %v420_v12 = vpop.f32.mrf.mxu2 }
  0xd5   :  { %v452_v13 = vadd.f32 %v420_v12, %v284_v11 }
  0xd7   :  { %v472_v14 = vadd.f32 %v1048_v19, %v452_v13  ;;  %v173_v15 = vpop.f32.mrf.mxu0 }
  0xd8   :  { %v286_v16 = vpop.f32.mrf.mxu1 }
  0xd9   :  { %v488_v17 = vmax.f32 %v472_v14, 0.0  ;;  %v287_v18 = vadd.f32 %v286_v16, %v173_v15 }
  0xdb   :  { %697 = vmatmul.msk.f32.gmra.mxu3 %vm80_vm0, %v488_v17 }
  0xdc   :  { %v423_v20 = vpop.f32.mrf.mxu2 }
  0xdd   :  { %v453_v21 = vadd.f32 %v423_v20, %v287_v18 }
  0xdf   :  { %v473_v22 = vadd.f32 %v1048_v19, %v453_v21  ;;  %v176_v23 = vpop.f32.mrf.mxu0 }
  0xe0   :  { %v289_v24 = vpop.f32.mrf.mxu1 }
  0xe1   :  { %v489_v25 = vmax.f32 %v473_v22, 0.0  ;;  %v290_v26 = vadd.f32 %v289_v24, %v176_v23 }
  0xe3   :  { %698 = vmatmul.msk.f32.gmra.mxu3 %vm80_vm0, %v489_v25 }
  0xe4   :  { %v426_v27 = vpop.f32.mrf.mxu2 }
  0xe5   :  { %v454_v28 = vadd.f32 %v426_v27, %v290_v26 }
  0xe7   :  { %v474_v29 = vadd.f32 %v1048_v19, %v454_v28  ;;  %v179_v30 = vpop.f32.mrf.mxu0 }
  0xe8   :  { %v292_v31 = vpop.f32.mrf.mxu1 }
  0xe9   :  { %v490_v32 = vmax.f32 %v474_v29, 0.0  ;;  %v293_v33 = vadd.f32 %v292_v31, %v179_v30 }
  0xeb   :  { %699 = vmatmul.msk.f32.gmra.mxu3 %vm80_vm0, %v490_v32 }
  0xec   :  { %v429_v34 = vpop.f32.mrf.mxu2 }
  0xed   :  { %v455_v35 = vadd.f32 %v429_v34, %v293_v33 }
  0xef   :  { %v475_v36 = vadd.f32 %v1048_v19, %v455_v35  ;;  %v182_v37 = vpop.f32.mrf.mxu0 }
  0xf0   :  { %v295_v38 = vpop.f32.mrf.mxu1 }
  0xf1   :  { %v491_v39 = vmax.f32 %v475_v36, 0.0  ;;  %v296_v40 = vadd.f32 %v295_v38, %v182_v37 }
  0xf3   :  { %700 = vmatmul.msk.f32.gmra.mxu3 %vm80_vm0, %v491_v39 }
  0xf4   :  { %v432_v41 = vpop.f32.mrf.mxu2 }
  0xf5   :  { %v456_v42 = vadd.f32 %v432_v41, %v296_v40 }
  0xf7   :  { %v476_v43 = vadd.f32 %v1048_v19, %v456_v42  ;;  %v185_v44 = vpop.f32.mrf.mxu0 }
  0xf8   :  { %v298_v45 = vpop.f32.mrf.mxu1 }
  0xf9   :  { %v492_v46 = vmax.f32 %v476_v43, 0.0  ;;  %v299_v47 = vadd.f32 %v298_v45, %v185_v44 }
  0xfb   :  { %701 = vmatmul.msk.f32.gmra.mxu3 %vm80_vm0, %v492_v46 }
  0xfc   :  { %v435_v48 = vpop.f32.mrf.mxu2 }
  0xfd   :  { %v457_v49 = vadd.f32 %v435_v48, %v299_v47 }
  0xff   :  { %v477_v50 = vadd.f32 %v1048_v19, %v457_v49  ;;  %v188_v51 = vpop.f32.mrf.mxu0 }
 0x100   :  { %v301_v52 = vpop.f32.mrf.mxu1 }
 0x101   :  { %v493_v53 = vmax.f32 %v477_v50, 0.0  ;;  %v302_v54 = vadd.f32 %v301_v52, %v188_v51 }
 0x103   :  { %702 = vmatmul.msk.f32.gmra.mxu3 %vm80_vm0, %v493_v53 }
 0x104   :  { %v438_v55 = vpop.f32.mrf.mxu2 }
 0x105   :  { %v458_v56 = vadd.f32 %v438_v55, %v302_v54 }
 0x107   :  { %v478_v57 = vadd.f32 %v1048_v19, %v458_v56  ;;  %v191_v58 = vpop.f32.mrf.mxu0 }
 0x108   :  { %v304_v59 = vpop.f32.mrf.mxu1 }
 0x109   :  { %v494_v60 = vmax.f32 %v478_v57, 0.0  ;;  %v305_v61 = vadd.f32 %v304_v59, %v191_v58 }
 0x10b   :  { %703 = vmatmul.msk.f32.gmra.mxu3 %vm80_vm0, %v494_v60 }
 0x10c   :  { %v441_v62 = vpop.f32.mrf.mxu2 }
 0x10d   :  { %v459_v63 = vadd.f32 %v441_v62, %v305_v61 }
 0x10f   :  { %v479_v0 = vadd.f32 %v1048_v19, %v459_v63 }
 0x111   :  { %v495_v1 = vmax.f32 %v479_v0, 0.0 }
 0x113   :  { %704 = vmatmul.msk.f32.gmra.mxu3 %vm80_vm0, %v495_v1 }
 0x11e   :  { %v573_v3 = vpop.f32.mrf.mxu3 }
 0x11f   :  { %v574_v4 = vadd.f32 %v706_v2, %v573_v3 }
 0x121   :  { %621 = vst.msk [vmem:[%s1158_s9] sm:$0xff] %vm80_vm0, %v574_v4 }
 0x126   :  { %v576_v5 = vpop.f32.mrf.mxu3 }
 0x127   :  { %v577_v6 = vadd.f32 %v706_v2, %v576_v5 }
 0x129   :  { %622 = vst.msk [vmem:[%s1158_s9 + $0x8] sm:$0xff] %vm80_vm0, %v577_v6 }
 0x12e   :  { %v579_v19 = vpop.f32.mrf.mxu3 }
 0x12f   :  { %v580_v7 = vadd.f32 %v706_v2, %v579_v19 }
 0x131   :  { %623 = vst.msk [vmem:[%s1158_s9 + $0x10] sm:$0xff] %vm80_vm0, %v580_v7 }
 0x136   :  { %v582_v8 = vpop.f32.mrf.mxu3 }
 0x137   :  { %v583_v9 = vadd.f32 %v706_v2, %v582_v8 }
 0x139   :  { %624 = vst.msk [vmem:[%s1158_s9 + $0x18] sm:$0xff] %vm80_vm0, %v583_v9 }
 0x13e   :  { %v585_v10 = vpop.f32.mrf.mxu3 }
 0x13f   :  { %v586_v11 = vadd.f32 %v706_v2, %v585_v10 }
 0x141   :  { %625 = vst.msk [vmem:[%s1158_s9 + $0x20] sm:$0xff] %vm80_vm0, %v586_v11 }
 0x146   :  { %v588_v12 = vpop.f32.mrf.mxu3 }
 0x147   :  { %v589_v13 = vadd.f32 %v706_v2, %v588_v12 }
 0x149   :  { %626 = vst.msk [vmem:[%s1158_s9 + $0x28] sm:$0xff] %vm80_vm0, %v589_v13 }
 0x14e   :  { %v591_v14 = vpop.f32.mrf.mxu3 }
 0x14f   :  { %v592_v15 = vadd.f32 %v706_v2, %v591_v14 }
 0x151   :  { %627 = vst.msk [vmem:[%s1158_s9 + $0x30] sm:$0xff] %vm80_vm0, %v592_v15 }
 0x156   :  { %v594_v16 = vpop.f32.mrf.mxu3 }
 0x157   :  { %v595_v17 = vadd.f32 %v706_v2, %v594_v16 }
 0x159   :  { %628 = vst.msk [vmem:[%s1158_s9 + $0x38] sm:$0xff] %vm80_vm0, %v595_v17 }
 0x15e   :  { %v597_v18 = vpop.f32.mrf.mxu3 }
 0x15f   :  { %v598_v20 = vadd.f32 %v706_v2, %v597_v18 }
 0x161   :  { %629 = vst.msk [vmem:[%s1158_s9 + $0x40] sm:$0xff] %vm80_vm0, %v598_v20 }
 0x166   :  { %v600_v21 = vpop.f32.mrf.mxu3 }
 0x167   :  { %v601_v22 = vadd.f32 %v706_v2, %v600_v21 }
 0x169   :  { %630 = vst.msk [vmem:[%s1158_s9 + $0x48] sm:$0xff] %vm80_vm0, %v601_v22 }
 0x16e   :  { %v603_v23 = vpop.f32.mrf.mxu3 }
 0x16f   :  { %v604_v24 = vadd.f32 %v706_v2, %v603_v23 }
 0x171   :  { %631 = vst.msk [vmem:[%s1158_s9 + $0x50] sm:$0xff] %vm80_vm0, %v604_v24 }
 0x176   :  { %v606_v25 = vpop.f32.mrf.mxu3 }
 0x177   :  { %v607_v26 = vadd.f32 %v706_v2, %v606_v25 }
 0x179   :  { %632 = vst.msk [vmem:[%s1158_s9 + $0x58] sm:$0xff] %vm80_vm0, %v607_v26 }
 0x17e   :  { %v609_v27 = vpop.f32.mrf.mxu3 }
 0x17f   :  { %v610_v28 = vadd.f32 %v706_v2, %v609_v27 }
 0x181   :  { %633 = vst.msk [vmem:[%s1158_s9 + $0x60] sm:$0xff] %vm80_vm0, %v610_v28 }
 0x186   :  { %v612_v29 = vpop.f32.mrf.mxu3 }
 0x187   :  { %v613_v30 = vadd.f32 %v706_v2, %v612_v29 }
 0x189   :  { %634 = vst.msk [vmem:[%s1158_s9 + $0x68] sm:$0xff] %vm80_vm0, %v613_v30 }
 0x18e   :  { %v615_v31 = vpop.f32.mrf.mxu3 }
 0x18f   :  { %v616_v32 = vadd.f32 %v706_v2, %v615_v31 }
 0x191   :  { %635 = vst.msk [vmem:[%s1158_s9 + $0x70] sm:$0xff] %vm80_vm0, %v616_v32 }
 0x196   :  { %v618_v33 = vpop.f32.mrf.mxu3 }
 0x197   :  { %v619_v34 = vadd.f32 %v706_v2, %v618_v33 }
 0x199   :  { %636 = vst.msk [vmem:[%s1158_s9 + $0x78] sm:$0xff] %vm80_vm0, %v619_v34 }

// kernel: gnn_forward.12
= control target key start
LH: loop header
LB: loop body
LE: loop exit
PB: predicated region body
PF: predicated region fallthrough
CT: control target
= control target key end

     0   :  { %vm36_vm0 = vcmask 523264   ;;  %v874_v0 = vmov 0.0   ;;  %vm41_vm1 = vcmask 7168   ;;  %v82_v7 = vlaneseq  ;;  %s1501_s2 = inlined_call_operand.vmem [shape: f32[128,64], index: 2, kind: input, shape index: {}]   ;;  %s1502_s3 = inlined_call_operand.vmem [shape: f32[16,8], index: 3, kind: input, shape index: {}]   ;;  %s1503_s4 = inlined_call_operand.vmem [shape: f32[256,64], index: 4, kind: input, shape index: {}]   ;;  %s1504_s5 = inlined_call_operand.vmem [shape: f32[8,64], index: 5, kind: input, shape index: {}]   ;;  %s1505_s6 = inlined_call_operand.vmem [shape: f32[1,64], index: 6, kind: input, shape index: {}]   ;;  %s1506_s7 = inlined_call_operand.vmem [shape: f32[64,64], index: 7, kind: input, shape index: {}]   ;;  %s1507_s8 = inlined_call_operand.vmem [shape: f32[1,64], index: 8, kind: input, shape index: {}]   ;;  %s1508_s9 = inlined_call_operand.vmem [shape: f32[16,64], index: 9, kind: output, shape index: {}]   ;;  %s1509_s1 = inlined_call_operand.vmem [shape: s32[128,1], index: 1, kind: input, shape index: {}]   ;;  %s1510_s0 = inlined_call_operand.vmem [shape: s32[1,128], index: 0, kind: input, shape index: {}]  }
   0x1   :  { %37 = vst.msk [vmem:[#allocation2] sm:$0xff] %vm36_vm0, %v874_v0  ;;  %v934_v1 = vld [vmem:[%s1501_s2] sm:$0xff]  ;;  %v939_v2 = vld [vmem:[%s1501_s2 + $0x8] sm:$0xff]  ;;  %v944_v3 = vld [vmem:[%s1501_s2 + $0x10] sm:$0xff]  ;;  %v875_v20 = vmov 1e+30  }
   0x2   :  { %1519 = vst [vmem:[#allocation7_spill] sm:$0xff] %v934_v1  ;;  %v950_v4 = vld [vmem:[%s1501_s2 + $0x18] sm:$0xff]  ;;  %v955_v5 = vld [vmem:[%s1501_s2 + $0x20] sm:$0xff]  ;;  %v960_v6 = vld [vmem:[%s1501_s2 + $0x28] sm:$0xff]  ;;  %v1021_v19 = vshrl.u32 %v82_v7, 7 }
   0x3   :  { %1520 = vst [vmem:[#allocation8_spill] sm:$0xff] %v939_v2  ;;  %v966_v8 = vld [vmem:[%s1501_s2 + $0x30] sm:$0xff]  ;;  %v971_v9 = vld [vmem:[%s1501_s2 + $0x38] sm:$0xff]  ;;  %v976_v10 = vld [vmem:[%s1501_s2 + $0x40] sm:$0xff]  ;;  %v876_v27 = vmov -1e+30  }
   0x4   :  { %1521 = vst [vmem:[#allocation9_spill] sm:$0xff] %v944_v3  ;;  %v982_v11 = vld [vmem:[%s1501_s2 + $0x48] sm:$0xff]  ;;  %v987_v12 = vld [vmem:[%s1501_s2 + $0x50] sm:$0xff]  ;;  %v992_v13 = vld [vmem:[%s1501_s2 + $0x58] sm:$0xff]  ;;  %v1088_v34 = vadd.s32 8, %v1021_v19 }
   0x5   :  { %38 = vst.msk [vmem:[#allocation2 + $0x8] sm:$0xff] %vm36_vm0, %v874_v0  ;;  %v998_v14 = vld [vmem:[%s1501_s2 + $0x60] sm:$0xff]  ;;  %v1003_v15 = vld [vmem:[%s1501_s2 + $0x68] sm:$0xff]  ;;  %v1008_v16 = vld [vmem:[%s1501_s2 + $0x70] sm:$0xff] }
   0x6   :  { %1522 = vst [vmem:[#allocation10_spill] sm:$0xff] %v950_v4  ;;  %v1014_v17 = vld [vmem:[%s1501_s2 + $0x78] sm:$0xff]  ;;  %v1019_v18 = vld [vmem:[%s1509_s1] sm:$0xff]  ;;  %v1027_v21 = vld [vmem:[%s1509_s1 + $0x8] sm:$0xff] }
   0x7   :  { %39 = vst.msk [vmem:[#allocation3] sm:$0xff] %vm36_vm0, %v874_v0  ;;  %v1032_v22 = vld [vmem:[%s1509_s1 + $0x10] sm:$0xff]  ;;  %v1037_v23 = vld [vmem:[%s1509_s1 + $0x18] sm:$0xff]  ;;  %v1043_v24 = vld [vmem:[%s1509_s1 + $0x20] sm:$0xff] }
   0x8   :  { %40 = vst.msk [vmem:[#allocation3 + $0x8] sm:$0xff] %vm36_vm0, %v874_v0  ;;  %v1048_v25 = vld [vmem:[%s1509_s1 + $0x28] sm:$0xff]  ;;  %v1053_v26 = vld [vmem:[%s1509_s1 + $0x30] sm:$0xff]  ;;  %v1059_v28 = vld [vmem:[%s1509_s1 + $0x38] sm:$0xff] }
   0x9   :  { %42 = vst.msk [vmem:[#allocation6] sm:$0xff] %vm41_vm1, %v874_v0  ;;  %v1064_v29 = vld [vmem:[%s1509_s1 + $0x40] sm:$0xff]  ;;  %v1069_v30 = vld [vmem:[%s1509_s1 + $0x48] sm:$0xff]  ;;  %v1075_v31 = vld [vmem:[%s1509_s1 + $0x50] sm:$0xff] }
   0xa   :  { %43 = vst.msk [vmem:[#allocation6 + $0x8] sm:$0xff] %vm41_vm1, %v874_v0  ;;  %v1080_v32 = vld [vmem:[%s1509_s1 + $0x58] sm:$0xff]  ;;  %v1085_v33 = vld [vmem:[%s1509_s1 + $0x60] sm:$0xff]  ;;  %v1093_v35 = vld [vmem:[%s1509_s1 + $0x68] sm:$0xff] }
   0xb   :  { %44 = vst.msk [vmem:[#allocation4] sm:$0xff] %vm36_vm0, %v875_v20  ;;  %v1098_v36 = vld [vmem:[%s1509_s1 + $0x70] sm:$0xff]  ;;  %v1103_v37 = vld [vmem:[%s1509_s1 + $0x78] sm:$0xff]  ;;  %v1108_v38 = vld [vmem:[%s1510_s0] ss:$0 sm:$0xff] }
   0xc   :  { %45 = vst.msk [vmem:[#allocation4 + $0x8] sm:$0xff] %vm36_vm0, %v875_v20  ;;  %vm89_vm2 = vcmp.eq.s32.totalorder %v1021_v19, %v1108_v38  ;;  %vm90_vm3 = vcmp.eq.s32.totalorder %v1088_v34, %v1108_v38 }
   0xd   :  { %46 = vst.msk [vmem:[#allocation5] sm:$0xff] %vm36_vm0, %v876_v27  ;;  %v775_v39 = vsel %vm89_vm2, 1.0, %v874_v0  ;;  %v1120_v40 = vsel %vm90_vm3, 1.0, %v874_v0 }
   0xe   :  { %47 = vst.msk [vmem:[#allocation5 + $0x8] sm:$0xff] %vm36_vm0, %v876_v27  ;;  %v95_v41 = vadd.f32 %v1120_v40, %v775_v39 }
  0x10   :  { %96 = vadd.xlane.f32.xlu0 %v95_v41 }
  0x83   :  { %v97_v42 = vpop.xlane.xlu0 %96 }
  0x84   :  { %v98_v43 = vrot.slane %v97_v42, 4 }
  0x86   :  { %v99_v44 = vadd.f32 %v98_v43, %v97_v42 }
  0x88   :  { %v100_v45 = vrot.slane %v99_v44, 2 }
  0x8a   :  { %v101_v46 = vadd.f32 %v100_v45, %v99_v44 }
  0x8c   :  { %v102_v47 = vrot.slane %v101_v46, 1 }
  0x8e   :  { %v103_v48 = vadd.f32 %v102_v47, %v101_v46 }
  0x90   :  { %834 = vpush %v103_v48 }
  0xc1   :  { %s835_s0 = spop %834 }
  0xc2   :  { %p105_p0 = scmp.gt.f32.partialorder %s835_s0, 0.0 }
  0xc3   :  { %793 = vmatpush.msra.mxu2 (%p105_p0), %v1014_v17  ;;  %v156_v49 = vmul.f32 (%p105_p0), %v1014_v17, %v1014_v17  ;;  %v155_v50 = vmul.f32 (%p105_p0), %v1008_v16, %v1008_v16  ;;  %111 = vmatpush.msra.mxu0 (%p105_p0), %v1014_v17  ;;  %v154_v51 = vmul.f32 (%p105_p0), %v1003_v15, %v1003_v15  ;;  %v877_v7 = vmov (%p105_p0), 1.0   ;;  %v184_v20 = vld [vmem:[#allocation6] sm:$0xff] (%p105_p0)  ;;  %v185_v41 = vld [vmem:[#allocation6 + $0x8] sm:$0xff] (%p105_p0)  ;;  %v139_v44 = vld [vmem:[#allocation3] sm:$0xff] (%p105_p0)  ;;  %s1206_s1 = smov (%p105_p0), 0  }
  0xc4   :  { %108 = sbr.rel (!%p105_p0) target bundleno = 547 (0x223), region = 45  ;;  %186 = vadd.xlane.f32.xlu0 (%p105_p0), %v775_v39  ;;  %v153_v52 = vmul.f32 (%p105_p0), %v998_v14, %v998_v14  ;;  %v152_v53 = vmul.f32 (%p105_p0), %v992_v13, %v992_v13  ;;  %v151_v54 = vmul.f32 (%p105_p0), %v987_v12, %v987_v12  ;;  %v150_v55 = vmul.f32 (%p105_p0), %v982_v11, %v982_v11  ;;  %v109_v43 = vld [vmem:[#allocation2] sm:$0xff] (%p105_p0)  ;;  %v110_v48 = vld [vmem:[#allocation2 + $0x8] sm:$0xff] (%p105_p0) }
  0xc5   :  { %809 = vmatpush.msra.mxu3 (%p105_p0), %v156_v49  ;;  %794 = vmatpush.msra.mxu2 (%p105_p0), %v1008_v16  ;;  %v149_v56 = vmul.f32 (%p105_p0), %v976_v10, %v976_v10  ;;  %v148_v57 = vmul.f32 (%p105_p0), %v971_v9, %v971_v9  ;;  %v147_v58 = vmul.f32 (%p105_p0), %v966_v8, %v966_v8 }
  0xc6   :  { %157 = vmatpush.msra.mxu1 (%p105_p0), %v156_v49  ;;  %112 = vmatpush.msra.mxu0 (%p105_p0), %v1008_v16  ;;  %v146_v59 = vmul.f32 (%p105_p0), %v960_v6, %v960_v6  ;;  %v145_v60 = vmul.f32 (%p105_p0), %v955_v5, %v955_v5  ;;  %v144_v61 = vmul.f32 (%p105_p0), %v950_v4, %v950_v4 }
  0xc7   :  { %810 = vmatpush.msra.mxu3 (%p105_p0), %v155_v50  ;;  %795 = vmatpush.msra.mxu2 (%p105_p0), %v1003_v15  ;;  %v143_v62 = vmul.f32 (%p105_p0), %v944_v3, %v944_v3  ;;  %v142_v63 = vmul.f32 (%p105_p0), %v939_v2, %v939_v2  ;;  %v141_v0 = vmul.f32 (%p105_p0), %v934_v1, %v934_v1 }
  0xc8   :  { %158 = vmatpush.msra.mxu1 (%p105_p0), %v155_v50  ;;  %113 = vmatpush.msra.mxu0 (%p105_p0), %v1003_v15 }
  0xc9   :  { %811 = vmatpush.msra.mxu3 %v154_v51  ;;  %796 = vmatpush.msra.mxu2 %v998_v14 }
  0xca   :  { %159 = vmatpush.msra.mxu1 %v154_v51  ;;  %114 = vmatpush.msra.mxu0 %v998_v14 }
  0xcb   :  { %812 = vmatpush.msra.mxu3 %v153_v52  ;;  %797 = vmatpush.msra.mxu2 %v992_v13 }
  0xcc   :  { %160 = vmatpush.msra.mxu1 %v153_v52  ;;  %115 = vmatpush.msra.mxu0 %v992_v13 }
  0xcd   :  { %813 = vmatpush.msra.mxu3 %v152_v53  ;;  %798 = vmatpush.msra.mxu2 %v987_v12 }
  0xce   :  { %161 = vmatpush.msra.mxu1 %v152_v53  ;;  %116 = vmatpush.msra.mxu0 %v987_v12 }
  0xcf   :  { %814 = vmatpush.msra.mxu3 %v151_v54  ;;  %799 = vmatpush.msra.mxu2 %v982_v11 }
  0xd0   :  { %162 = vmatpush.msra.mxu1 %v151_v54  ;;  %117 = vmatpush.msra.mxu0 %v982_v11 }
  0xd1   :  { %815 = vmatpush.msra.mxu3 %v150_v55  ;;  %800 = vmatpush.msra.mxu2 %v976_v10 }
  0xd2   :  { %163 = vmatpush.msra.mxu1 %v150_v55  ;;  %118 = vmatpush.msra.mxu0 %v976_v10 }
  0xd3   :  { %816 = vmatpush.msra.mxu3 %v149_v56  ;;  %801 = vmatpush.msra.mxu2 %v971_v9 }
  0xd4   :  { %164 = vmatpush.msra.mxu1 %v149_v56  ;;  %119 = vmatpush.msra.mxu0 %v971_v9 }
  0xd5   :  { %817 = vmatpush.msra.mxu3 %v148_v57  ;;  %802 = vmatpush.msra.mxu2 %v966_v8 }
  0xd6   :  { %165 = vmatpush.msra.mxu1 %v148_v57  ;;  %120 = vmatpush.msra.mxu0 %v966_v8 }
  0xd7   :  { %818 = vmatpush.msra.mxu3 %v147_v58  ;;  %803 = vmatpush.msra.mxu2 %v960_v6 }
  0xd8   :  { %166 = vmatpush.msra.mxu1 %v147_v58  ;;  %121 = vmatpush.msra.mxu0 %v960_v6 }
  0xd9   :  { %819 = vmatpush.msra.mxu3 %v146_v59  ;;  %804 = vmatpush.msra.mxu2 %v955_v5 }
  0xda   :  { %167 = vmatpush.msra.mxu1 %v146_v59  ;;  %122 = vmatpush.msra.mxu0 %v955_v5 }
  0xdb   :  { %820 = vmatpush.msra.mxu3 %v145_v60  ;;  %805 = vmatpush.msra.mxu2 %v950_v4 }
  0xdc   :  { %168 = vmatpush.msra.mxu1 %v145_v60  ;;  %123 = vmatpush.msra.mxu0 %v950_v4 }
  0xdd   :  { %821 = vmatpush.msra.mxu3 %v144_v61  ;;  %806 = vmatpush.msra.mxu2 %v944_v3 }
  0xde   :  { %169 = vmatpush.msra.mxu1 %v144_v61  ;;  %124 = vmatpush.msra.mxu0 %v944_v3 }
  0xdf   :  { %822 = vmatpush.msra.mxu3 %v143_v62  ;;  %807 = vmatpush.msra.mxu2 %v939_v2 }
  0xe0   :  { %170 = vmatpush.msra.mxu1 %v143_v62  ;;  %125 = vmatpush.msra.mxu0 %v939_v2 }
  0xe1   :  { %823 = vmatpush.msra.mxu3 %v142_v63  ;;  %808 = vmatpush.msra.mxu2 %v934_v1 }
  0xe2   :  { %778 = vmatmul.msk.f32.vlgmr.msra.gmra.mxu2 %vm90_vm3, %v877_v7  ;;  %171 = vmatpush.msra.mxu1 %v142_v63 }
  0xe3   :  { %824 = vmatpush.msra.mxu3 %v141_v0  ;;  %126 = vmatpush.msra.mxu0 %v934_v1 }
  0xe4   :  { %780 = vmatmul.msk.f32.vlgmr.msra.gmra.mxu3 %vm90_vm3, %v877_v7  ;;  %172 = vmatpush.msra.mxu1 %v141_v0 }
  0xe5   :  { %777 = vmatmul.msk.f32.vlgmr.msra.gmra.mxu0 %vm89_vm2, %v877_v7  ;;  %779 = vmatmul.msk.f32.vlgmr.msra.gmra.mxu1 %vm89_vm2, %v877_v7 }
  0xe6   :  { %188 = vadd.xlane.f32.xlu0 %v1120_v40  ;;  %v140_v40 = vld [vmem:[#allocation3 + $0x8] sm:$0xff] }
 0x137   :  { %v187_v27 = vpop.xlane.xlu0 %186 }
 0x138   :  { %v190_v39 = vadd.f32 %v187_v27, %v184_v20 }
 0x13a   :  { %193 = vst.msk [vmem:[#allocation6] sm:$0xff] %vm41_vm1, %v190_v39 }
 0x159   :  { %v189_v42 = vpop.xlane.xlu0 %188 }
 0x15a   :  { %v191_v34 = vadd.f32 %v189_v42, %v185_v41 }
 0x15c   :  { %194 = vst.msk [vmem:[#allocation6 + $0x8] sm:$0xff] %vm41_vm1, %v191_v34 }
 0x162   :  { %v128_v45 = vpop.f32.mrf.mxu0  ;;  %v174_v46 = vpop.f32.mrf.mxu1 }
 0x163   :  { %v134_v47 = vadd.f32 %v128_v45, %v109_v43  ;;  %v180_v19 = vadd.f32 %v174_v46, %v139_v44 }
 0x165   :  { %137 = vst.msk [vmem:[#allocation2] sm:$0xff] %vm36_vm0, %v134_v47  ;;  %v131_v38 = vpop.f32.mrf.mxu2 }
 0x166   :  { %v135_v49 = vadd.f32 %v131_v38, %v110_v48  ;;  %182 = vst.msk [vmem:[#allocation3] sm:$0xff] %vm36_vm0, %v180_v19 }
 0x167   :  { %v177_v50 = vpop.f32.mrf.mxu3 }
 0x168   :  { %138 = vst.msk [vmem:[#allocation2 + $0x8] sm:$0xff] %vm36_vm0, %v135_v49  ;;  %v181_v51 = vadd.f32 %v177_v50, %v140_v40 }
 0x16a   :  { %183 = vst.msk [vmem:[#allocation3 + $0x8] sm:$0xff] %vm36_vm0, %v181_v51 }
 0x16b LB: > { %v1523_v4 = vld [vmem:[#allocation10_spill] sm:$0xff]  ;;  %v1524_v3 = vld [vmem:[#allocation9_spill] sm:$0xff]  ;;  %v1525_v2 = vld [vmem:[#allocation8_spill] sm:$0xff]  ;;  %v878_v52 = vmov 0   ;;  %v202_v53 = vstv %s872_s1  ;;  %s405_s10 = scalar_lea.vmem [#allocation4], %s872_s1  ;;  %s410_s11 = scalar_lea.vmem [#allocation5], %s872_s1  ;;  %s872_s1 = sphi %s1206_s1, %s200_s1  }
 0x16c   : > { %v1526_v1 = vld [vmem:[#allocation7_spill] sm:$0xff]  ;;  %853 = vset.pattern.permute.xlu2 %v878_v52  ;;  %852 = vset.pattern.permute.xlu1 %v878_v52  ;;  %vm207_vm4 = vcmp.eq.s32.totalorder %v1043_v24, %v202_v53  ;;  %vm205_vm5 = vcmp.eq.s32.totalorder %v1032_v22, %v202_v53  ;;  %vm203_vm6 = vcmp.eq.s32.totalorder %v1019_v18, %v202_v53  ;;  %s200_s1 = sadd.s32 1, %s872_s1  }
 0x16d   : > { %851 = vset.pattern.permute.xlu0 %v878_v52  ;;  %v223_v54 = vsel %vm207_vm4, 1, %v878_v52  ;;  %v221_v55 = vsel %vm205_vm5, 1, %v878_v52  ;;  %v219_v56 = vsel %vm203_vm6, 1, %v878_v52  ;;  %vm208_vm7 = vcmp.eq.s32.totalorder %v1048_v25, %v202_v53  ;;  %p197_p1 = scmp.ge.s32.totalorder %s200_s1, 16  }
 0x16e   : > { %248 = vperm.xlu2 %853, %v223_v54   ;;  %242 = vperm.xlu1 %852, %v221_v55   ;;  %vm206_vm8 = vcmp.eq.s32.totalorder %v1037_v23, %v202_v53  ;;  %vm204_vm9 = vcmp.eq.s32.totalorder %v1027_v21, %v202_v53  ;;  %v224_v57 = vsel %vm208_vm7, 1, %v878_v52  ;;  %vm211_vm10 = vcmp.eq.s32.totalorder %v1064_v29, %v202_v53 }
 0x16f   : > { %236 = vperm.xlu0 %851, %v219_v56   ;;  %v222_v58 = vsel %vm206_vm8, 1, %v878_v52  ;;  %v220_v59 = vsel %vm204_vm9, 1, %v878_v52  ;;  %vm210_vm11 = vcmp.eq.s32.totalorder %v1059_v28, %v202_v53  ;;  %vm209_vm12 = vcmp.eq.s32.totalorder %v1053_v26, %v202_v53 }
 0x170   : > { %v227_v60 = vsel %vm211_vm10, 1, %v878_v52  ;;  %v226_v61 = vsel %vm210_vm11, 1, %v878_v52  ;;  %v225_v62 = vsel %vm209_vm12, 1, %v878_v52  ;;  %vm214_vm13 = vcmp.eq.s32.totalorder %v1080_v32, %v202_v53 }
 0x171   : > { %vm213_vm14 = vcmp.eq.s32.totalorder %v1075_v31, %v202_v53  ;;  %vm212_vm15 = vcmp.eq.s32.totalorder %v1069_v30, %v202_v53  ;;  %v230_v63 = vsel %vm214_vm13, 1, %v878_v52  ;;  %vm217_vm1 = vcmp.eq.s32.totalorder %v1098_v36, %v202_v53 }
 0x172   : > { %v229_v0 = vsel %vm213_vm14, 1, %v878_v52  ;;  %v228_v7 = vsel %vm212_vm15, 1, %v878_v52  ;;  %vm216_vm2 = vcmp.eq.s32.totalorder %v1093_v35, %v202_v53  ;;  %vm215_vm3 = vcmp.eq.s32.totalorder %v1085_v33, %v202_v53 }
 0x173   : > { %v233_v20 = vsel %vm217_vm1, 1, %v878_v52  ;;  %v232_v27 = vsel %vm216_vm2, 1, %v878_v52  ;;  %v231_v39 = vsel %vm215_vm3, 1, %v878_v52  ;;  %vm218_vm4 = vcmp.eq.s32.totalorder %v1103_v37, %v202_v53 }
 0x174   : > { %v234_v41 = vsel %vm218_vm4, 1, %v878_v52 }
 0x176   : > { %251 = vperm.xlu2 %853, %v224_v57   ;;  %245 = vperm.xlu1 %852, %v222_v58  }
 0x177   : > { %239 = vperm.xlu0 %851, %v220_v59  }
 0x17e   : > { %260 = vperm.xlu2 %853, %v227_v60   ;;  %257 = vperm.xlu1 %852, %v226_v61  }
 0x17f   : > { %254 = vperm.xlu0 %851, %v225_v62  }
 0x186   : > { %269 = vperm.xlu2 %853, %v230_v63   ;;  %266 = vperm.xlu1 %852, %v229_v0  }
 0x187   : > { %263 = vperm.xlu0 %851, %v228_v7  }
 0x18e   : > { %278 = vperm.xlu2 %853, %v233_v20   ;;  %275 = vperm.xlu1 %852, %v232_v27  }
 0x18f   : > { %272 = vperm.xlu0 %851, %v231_v39  }
 0x197   : > { %281 = vperm.xlu0 %851, %v234_v41  }
 0x1c8   : > { %v249_v42 = vpop.permute.xlu2 %248 }
 0x1c9   : > { %vm287_vm5 = vcmp.eq.s32.totalorder %v249_v42, 1 }
 0x1ca   : > { %v303_v40 = vsel %vm287_vm5, %v955_v5, 1e+30  ;;  %v356_v49 = vsel %vm287_vm5, %v955_v5, -1e+30 }
 0x1cb   : > { %v319_v53 = vsel %vm36_vm0, %v303_v40, inf  ;;  %v372_v54 = vsel %vm36_vm0, %v356_v49, -inf }
 0x1d0   : > { %v252_v34 = vpop.permute.xlu2 %251 }
 0x1d1   : > { %vm288_vm6 = vcmp.eq.s32.totalorder %v252_v34, 1 }
 0x1d2   : > { %v304_v50 = vsel %vm288_vm6, %v960_v6, 1e+30  ;;  %v357_v56 = vsel %vm288_vm6, %v960_v6, -1e+30  ;;  %vm408_vm6 = vcmask 516096  }
 0x1d3   : > { %v1236_v55 = vsel %vm36_vm0, %v304_v50, inf  ;;  %v374_v42 = vsel %vm36_vm0, %v357_v56, -inf }
 0x1d8   : > { %v261_v45 = vpop.permute.xlu2 %260 }
 0x1d9   : > { %vm291_vm8 = vcmp.eq.s32.totalorder %v261_v45, 1 }
 0x1da   : > { %v307_v59 = vsel %vm291_vm8, %v976_v10, 1e+30  ;;  %v360_v60 = vsel %vm291_vm8, %v976_v10, -1e+30 }
 0x1db   : > { %v327_v34 = vsel %vm36_vm0, %v307_v59, inf }
 0x1e0   : > { %v243_v43 = vpop.permute.xlu1 %242  ;;  %v270_v48 = vpop.permute.xlu2 %269 }
 0x1e1   : > { %v237_v44 = vpop.permute.xlu0 %236  ;;  %vm294_vm9 = vcmp.eq.s32.totalorder %v270_v48, 1  ;;  %vm285_vm10 = vcmp.eq.s32.totalorder %v243_v43, 1  ;;  %v380_v43 = vsel %vm36_vm0, %v360_v60, -inf }
 0x1e2   : > { %vm283_vm7 = vcmp.eq.s32.totalorder %v237_v44, 1  ;;  %v310_v61 = vsel %vm294_vm9, %v992_v13, 1e+30  ;;  %v363_v63 = vsel %vm294_vm9, %v992_v13, -1e+30 }
 0x1e3   : > { %v299_v51 = vsel %vm283_vm7, %v1526_v1, 1e+30  ;;  %v352_v52 = vsel %vm283_vm7, %v1526_v1, -1e+30  ;;  %v301_v0 = vsel %vm285_vm10, %v1524_v3, 1e+30 }
 0x1e4   : > { %v315_v57 = vsel %vm36_vm0, %v299_v51, inf  ;;  %v368_v58 = vsel %vm36_vm0, %v352_v52, -inf  ;;  %v354_v27 = vsel %vm285_vm10, %v1524_v3, -1e+30  ;;  %v333_v44 = vsel %vm36_vm0, %v310_v61, inf }
 0x1e5   : > { %v320_v39 = vmin.f32 %v315_v57, %v319_v53  ;;  %v373_v41 = vmax.f32 %v368_v58, %v372_v54  ;;  %v386_v45 = vsel %vm36_vm0, %v363_v63, -inf  ;;  %v317_v49 = vsel %vm36_vm0, %v301_v0, inf }
 0x1e6   : > { %v370_v50 = vsel %vm36_vm0, %v354_v27, -inf }
 0x1e7   : > { %v1267_v54 = vmin.f32 %v320_v39, %v327_v34  ;;  %v1269_v56 = vmax.f32 %v373_v41, %v380_v43 }
 0x1e8   : > { %v246_v46 = vpop.permute.xlu1 %245  ;;  %v1246_v7 = vpop.permute.xlu2 %278 }
 0x1e9   : > { %v240_v47 = vpop.permute.xlu0 %239  ;;  %vm286_vm11 = vcmp.eq.s32.totalorder %v246_v46, 1  ;;  %vm297_vm14 = vcmp.eq.s32.totalorder %v1246_v7, 1 }
 0x1ea   : > { %vm284_vm12 = vcmp.eq.s32.totalorder %v240_v47, 1  ;;  %v302_v48 = vsel %vm286_vm11, %v1523_v4, 1e+30  ;;  %v355_v51 = vsel %vm286_vm11, %v1523_v4, -1e+30 }
 0x1eb   : > { %v300_v40 = vsel %vm284_vm12, %v1525_v2, 1e+30  ;;  %v353_v53 = vsel %vm284_vm12, %v1525_v2, -1e+30  ;;  %v313_v57 = vsel %vm297_vm14, %v1008_v16, 1e+30 }
 0x1ec   : > { %v318_v58 = vsel %vm36_vm0, %v302_v48, inf  ;;  %v316_v46 = vsel %vm36_vm0, %v300_v40, inf  ;;  %v371_v59 = vsel %vm36_vm0, %v355_v51, -inf  ;;  %v369_v61 = vsel %vm36_vm0, %v353_v53, -inf }
 0x1ed   : > { %v322_v39 = vmin.f32 %v316_v46, %v1236_v55 }
 0x1f0   : > { %v258_v19 = vpop.permute.xlu1 %257 }
 0x1f1   : > { %v255_v38 = vpop.permute.xlu0 %254  ;;  %vm290_vm13 = vcmp.eq.s32.totalorder %v258_v19, 1 }
 0x1f2   : > { %v306_v52 = vsel %vm290_vm13, %v971_v9, 1e+30  ;;  %vm289_vm15 = vcmp.eq.s32.totalorder %v255_v38, 1  ;;  %v359_v47 = vsel %vm290_vm13, %v971_v9, -1e+30 }
 0x1f3   : > { %v325_v60 = vsel %vm36_vm0, %v306_v52, inf  ;;  %v305_v63 = vsel %vm289_vm15, %v966_v8, 1e+30  ;;  %v358_v0 = vsel %vm289_vm15, %v966_v8, -1e+30  ;;  %v378_v19 = vsel %vm36_vm0, %v359_v47, -inf }
 0x1f4   : > { %v326_v34 = vmin.f32 %v318_v58, %v325_v60  ;;  %v323_v48 = vsel %vm36_vm0, %v305_v63, inf  ;;  %v376_v40 = vsel %vm36_vm0, %v358_v0, -inf  ;;  %v375_v60 = vmax.f32 %v369_v61, %v374_v42 }
 0x1f5   : > { %v379_v47 = vmax.f32 %v371_v59, %v378_v19  ;;  %v377_v0 = vmax.f32 %v370_v50, %v376_v40  ;;  %v366_v42 = vsel %vm297_vm14, %v1008_v16, -1e+30 }
 0x1f6   : > { %v334_v19 = vmin.f32 %v326_v34, %v333_v44  ;;  %v392_v7 = vsel %vm36_vm0, %v366_v42, -inf  ;;  %v406_v42 = vld [vmem:[%s405_s10] sm:$0x1] }
 0x1f8   : > { %v267_v62 = vpop.permute.xlu1 %266 }
 0x1f9   : > { %v264_v20 = vpop.permute.xlu0 %263  ;;  %vm293_vm2 = vcmp.eq.s32.totalorder %v267_v62, 1 }
 0x1fa   : > { %vm292_vm1 = vcmp.eq.s32.totalorder %v264_v20, 1  ;;  %v309_v62 = vsel %vm293_vm2, %v987_v12, 1e+30  ;;  %v362_v43 = vsel %vm293_vm2, %v987_v12, -1e+30 }
 0x1fb   : > { %v308_v20 = vsel %vm292_vm1, %v982_v11, 1e+30  ;;  %v361_v41 = vsel %vm292_vm1, %v982_v11, -1e+30  ;;  %v384_v63 = vsel %vm36_vm0, %v362_v43, -inf  ;;  %v387_v43 = vmax.f32 %v379_v47, %v386_v45 }
 0x1fc   : > { %v329_v52 = vsel %vm36_vm0, %v308_v20, inf  ;;  %v382_v53 = vsel %vm36_vm0, %v361_v41, -inf  ;;  %v385_v61 = vmax.f32 %v377_v0, %v384_v63 }
 0x1fd   : > { %v330_v3 = vmin.f32 %v322_v39, %v329_v52  ;;  %v383_v20 = vmax.f32 %v375_v60, %v382_v53 }
 0x200   : > { %v276_v38 = vpop.permute.xlu1 %275 }
 0x201   : > { %vm296_vm3 = vcmp.eq.s32.totalorder %v276_v38, 1  ;;  %v273_v27 = vpop.permute.xlu0 %272  ;;  %v331_v38 = vsel %vm36_vm0, %v309_v62, inf }
 0x202   : > { %vm295_vm4 = vcmp.eq.s32.totalorder %v273_v27, 1  ;;  %v312_v51 = vsel %vm296_vm3, %v1003_v15, 1e+30  ;;  %v365_v55 = vsel %vm296_vm3, %v1003_v15, -1e+30  ;;  %v324_v27 = vmin.f32 %v317_v49, %v323_v48 }
 0x203   : > { %v311_v58 = vsel %vm295_vm4, %v998_v14, 1e+30  ;;  %v364_v46 = vsel %vm295_vm4, %v998_v14, -1e+30  ;;  %v337_v1 = vsel %vm36_vm0, %v312_v51, inf  ;;  %v390_v2 = vsel %vm36_vm0, %v365_v55, -inf }
 0x204   : > { %v335_v41 = vsel %vm36_vm0, %v311_v58, inf  ;;  %v388_v4 = vsel %vm36_vm0, %v364_v46, -inf  ;;  %v332_v59 = vmin.f32 %v324_v27, %v331_v38  ;;  %v338_v49 = vmin.f32 %v330_v3, %v337_v1 }
 0x205   : > { %v391_v50 = vmax.f32 %v383_v20, %v390_v2  ;;  %v336_v48 = vmin.f32 %v1267_v54, %v335_v41  ;;  %v389_v39 = vmax.f32 %v1269_v56, %v388_v4  ;;  %v339_v55 = vsel %vm36_vm0, %v313_v57, inf }
 0x206   : > { %v340_v1 = vmin.f32 %v332_v59, %v339_v55  ;;  %v393_v2 = vmax.f32 %v385_v61, %v392_v7  ;;  %v411_v59 = vld [vmem:[%s410_s11] sm:$0x1] }
 0x207   : > { %v343_v34 = vmin.f32 %v336_v48, %v338_v49  ;;  %v396_v54 = vmax.f32 %v389_v39, %v391_v50 }
 0x209   : > { %v282_v62 = vpop.permute.xlu0 %281 }
 0x20a   : > { %vm298_vm5 = vcmp.eq.s32.totalorder %v282_v62, 1 }
 0x20b   : > { %v314_v40 = vsel %vm298_vm5, %v1014_v17, 1e+30  ;;  %v367_v51 = vsel %vm298_vm5, %v1014_v17, -1e+30 }
 0x20c   : > { %v341_v52 = vsel %vm36_vm0, %v314_v40, inf  ;;  %v394_v44 = vsel %vm36_vm0, %v367_v51, -inf }
 0x20d   : > { %v342_v3 = vmin.f32 %v334_v19, %v341_v52  ;;  %v395_v45 = vmax.f32 %v387_v43, %v394_v44 }
 0x20f   : > { %v344_v4 = vmin.f32 %v340_v1, %v342_v3  ;;  %v397_v56 = vmax.f32 %v393_v2, %v395_v45 }
 0x211   : > { %v345_v53 = vmin.f32 %v343_v34, %v344_v4  ;;  %v398_v58 = vmax.f32 %v396_v54, %v397_v56 }
 0x213   : > { %v346_v46 = vrot.slane %v345_v53, 4  ;;  %v399_v57 = vrot.slane %v398_v58, 4 }
 0x215   : > { %v347_v60 = vmin.f32 %v345_v53, %v346_v46  ;;  %v400_v47 = vmax.f32 %v398_v58, %v399_v57 }
 0x217   : > { %v348_v38 = vrot.slane %v347_v60, 2  ;;  %v401_v63 = vrot.slane %v400_v47, 2 }
 0x219   : > { %v349_v27 = vmin.f32 %v347_v60, %v348_v38  ;;  %v402_v0 = vmax.f32 %v400_v47, %v401_v63 }
 0x21b   : > { %v350_v20 = vrot.slane %v349_v27, 1  ;;  %v403_v41 = vrot.slane %v402_v0, 1 }
 0x21d   : > { %v351_v61 = vmin.f32 %v349_v27, %v350_v20  ;;  %v404_v19 = vmax.f32 %v402_v0, %v403_v41 }
 0x21e   :  { %199 = sbr.rel (!%p197_p1) target bundleno = 363 (0x16b), region = 77 }
 0x21f   : > { %v407_v62 = vmin.f32 %v406_v42, %v351_v61  ;;  %v412_v49 = vmax.f32 %v411_v59, %v404_v19 }
 0x221   : > { %409 = vst.msk [vmem:[%s405_s10] sm:$0x1] %vm408_vm6, %v407_v62 }
 0x222   : > { %413 = vst.msk [vmem:[%s410_s11] sm:$0x1] %vm408_vm6, %v412_v49 }
 0x223 PF:  { %v417_v50 = vld [vmem:[#allocation6] sm:$0xff]  ;;  %v418_v43 = vld [vmem:[#allocation6 + $0x8] sm:$0xff]  ;;  %v607_v48 = vld [vmem:[%s1503_s4 + $0xb8] sm:$0xff]  ;;  %v879_v39 = vmov 0   ;;  %vm681_vm4 = vcmask 64512  }
 0x224   :  { %855 = vset.pattern.permute.xlu1 %v879_v39  ;;  %vm419_vm7 = vcmp.gt.f32.partialorder %v417_v50, 0.0  ;;  %v421_v40 = vmax.f32 %v417_v50, 1.0  ;;  %854 = vset.pattern.permute.xlu0 %v879_v39  ;;  %v1322_v51 = vmax.f32 %v418_v43, 1.0  ;;  %v606_v55 = vld [vmem:[%s1503_s4 + $0xb0] sm:$0xff]  ;;  %v540_v5 = vld [vmem:[%s1503_s4 + $0x78] sm:$0xff]  ;;  %v605_v10 = vld [vmem:[%s1503_s4 + $0xa8] sm:$0xff] }
 0x225   :  { %v503_v6 = vsel %vm419_vm7, 1, %v879_v39  ;;  %622 = vmatpush.msra.mxu2 %v607_v48  ;;  %556 = vmatpush.msra.mxu0 %v540_v5  ;;  %v532_v8 = vld [vmem:[%s1503_s4 + $0x38] sm:$0xff]  ;;  %v539_v9 = vld [vmem:[%s1503_s4 + $0x70] sm:$0xff]  ;;  %v538_v12 = vld [vmem:[%s1503_s4 + $0x68] sm:$0xff]  ;;  %vm420_vm8 = vcmp.gt.f32.partialorder %v418_v43, 0.0 }
 0x226   :  { %858 = vrcp.f32 %v421_v40  ;;  %506 = vperm.xlu1 %855, %v503_v6   ;;  %585 = vmatpush.msra.mxu1 %v532_v8  ;;  %v531_v11 = vld [vmem:[%s1503_s4 + $0x30] sm:$0xff]  ;;  %v530_v13 = vld [vmem:[%s1503_s4 + $0x28] sm:$0xff]  ;;  %v604_v14 = vld [vmem:[%s1503_s4 + $0xa0] sm:$0xff]  ;;  %v504_v21 = vsel %vm420_vm8, 1, %v879_v39  ;;  %v434_v28 = vand.u32 2147483648, %v421_v40  ;;  %vm428_vm9 = vweird.f32 %v421_v40 }
 0x227   :  { %860 = vrcp.f32 %v1322_v51  ;;  %623 = vmatpush.msra.mxu2 %v606_v55  ;;  %557 = vmatpush.msra.mxu0 %v539_v9  ;;  %v537_v15 = vld [vmem:[%s1503_s4 + $0x60] sm:$0xff]  ;;  %v603_v17 = vld [vmem:[%s1503_s4 + $0x98] sm:$0xff]  ;;  %v602_v24 = vld [vmem:[%s1503_s4 + $0x90] sm:$0xff]  ;;  %v432_v32 = vand.u32 2147483647, %v421_v40  ;;  %vm443_vm13 = vweird.f32 %v1322_v51  ;;  %v449_v52 = vand.u32 2147483648, %v1322_v51 }
 0x228   :  { %586 = vmatpush.msra.mxu1 %v531_v11  ;;  %v529_v16 = vld [vmem:[%s1503_s4 + $0x20] sm:$0xff]  ;;  %v536_v18 = vld [vmem:[%s1503_s4 + $0x58] sm:$0xff]  ;;  %v601_v30 = vld [vmem:[%s1503_s4 + $0x88] sm:$0xff]  ;;  %v435_v36 = vor.u32 1.1754944e-38, %v434_v28  ;;  %v447_v2 = vand.u32 2147483647, %v1322_v51 }
 0x229   :  { %624 = vmatpush.msra.mxu2 %v605_v10  ;;  %558 = vmatpush.msra.mxu0 %v538_v12  ;;  %v528_v22 = vld [vmem:[%s1503_s4 + $0x18] sm:$0xff]  ;;  %vm433_vm12 = vcmp.eq.f32.partialorder %v432_v32, 8.507059e+37  ;;  %v450_v45 = vor.u32 1.1754944e-38, %v449_v52  ;;  %v535_v4 = vld [vmem:[%s1503_s4 + $0x50] sm:$0xff]  ;;  %v600_v53 = vld [vmem:[%s1503_s4 + $0x80] sm:$0xff] }
 0x22a   :  { %587 = vmatpush.msra.mxu1 %v530_v13  ;;  %vm448_vm1 = vcmp.eq.f32.partialorder %v447_v2, 8.507059e+37  ;;  %v527_v56 = vld [vmem:[%s1503_s4 + $0x10] sm:$0xff]  ;;  %v534_v58 = vld [vmem:[%s1503_s4 + $0x48] sm:$0xff]  ;;  %v533_v57 = vld [vmem:[%s1503_s4 + $0x40] sm:$0xff] }
 0x22b   :  { %625 = vmatpush.msra.mxu2 %v604_v14  ;;  %559 = vmatpush.msra.mxu0 %v537_v15  ;;  %v526_v46 = vld [vmem:[%s1503_s4 + $0x8] sm:$0xff]  ;;  %v525_v60 = vld [vmem:[%s1503_s4] sm:$0xff]  ;;  %v521_v47 = vld [vmem:[#allocation5] sm:$0xff] }
 0x22c   :  { %v859_v23 = vpop.eup %858  ;;  %588 = vmatpush.msra.mxu1 %v529_v16  ;;  %v517_v38 = vld [vmem:[#allocation4] sm:$0xff]  ;;  %v646_v20 = vld [vmem:[%s1503_s4 + $0xf8] sm:$0xff]  ;;  %v645_v41 = vld [vmem:[%s1503_s4 + $0xf0] sm:$0xff] }
 0x22d   :  { %v861_v25 = vpop.eup %860  ;;  %v424_v26 = vmul.f32 %v859_v23, %v421_v40  ;;  %626 = vmatpush.msra.mxu2 %v603_v17  ;;  %560 = vmatpush.msra.mxu0 %v536_v18  ;;  %vm429_vm10 = vweird.f32 %v859_v23  ;;  %v680_v42 = vld [vmem:[%s1504_s5] sm:$0xff]  ;;  %v644_v59 = vld [vmem:[%s1503_s4 + $0xe8] sm:$0xff]  ;;  %v522_v61 = vld [vmem:[#allocation5 + $0x8] sm:$0xff] }
 0x22e   :  { %509 = vperm.xlu1 %855, %v504_v21   ;;  %v439_v29 = vmul.f32 %v861_v25, %v1322_v51  ;;  %589 = vmatpush.msra.mxu1 %v528_v22  ;;  %vm430_vm11 = vmor %vm428_vm9, %vm429_vm10  ;;  %vm444_vm14 = vweird.f32 %v861_v25  ;;  %v518_v19 = vld [vmem:[#allocation4 + $0x8] sm:$0xff]  ;;  %v643_v62 = vld [vmem:[%s1503_s4 + $0xe0] sm:$0xff] }
 0x22f   :  { %v425_v31 = vsub.f32 1.0, %v424_v26  ;;  %627 = vmatpush.msra.mxu2 %v602_v24  ;;  %vm445_vm15 = vmor %vm443_vm13, %vm444_vm14  ;;  %561 = vmatpush.msra.mxu0 %v535_v4  ;;  %v642_v50 = vld [vmem:[%s1503_s4 + $0xd8] sm:$0xff]  ;;  %v641_v39 = vld [vmem:[%s1503_s4 + $0xd0] sm:$0xff] }
 0x230   :  { %v440_v33 = vsub.f32 1.0, %v439_v29  ;;  %590 = vmatpush.msra.mxu1 %v527_v56  ;;  %661 = vmatpush.msra.mxu3 %v646_v20  ;;  %v640_v40 = vld [vmem:[%s1503_s4 + $0xc8] sm:$0xff]  ;;  %v453_v51 = vld [vmem:[#allocation2] sm:$0xff]  ;;  %v467_v5 = vld [vmem:[#allocation3] sm:$0xff] }
 0x231   :  { %v426_v35 = vmul.f32 %v859_v23, %v425_v31  ;;  %628 = vmatpush.msra.mxu2 %v601_v30  ;;  %562 = vmatpush.msra.mxu0 %v534_v58  ;;  %v639_v55 = vld [vmem:[%s1503_s4 + $0xc0] sm:$0xff]  ;;  %v454_v13 = vld [vmem:[#allocation2 + $0x8] sm:$0xff]  ;;  %v468_v15 = vld [vmem:[#allocation3 + $0x8] sm:$0xff] }
 0x232   :  { %v441_v37 = vmul.f32 %v861_v25, %v440_v33  ;;  %591 = vmatpush.msra.mxu1 %v526_v46  ;;  %662 = vmatpush.msra.mxu3 %v645_v41  ;;  %v678_v21 = vld [vmem:[%s1502_s3] sm:$0xff]  ;;  %v679_v22 = vld [vmem:[%s1502_s3 + $0x8] sm:$0xff] }
 0x233   :  { %v427_v7 = vadd.f32 %v859_v23, %v426_v35  ;;  %629 = vmatpush.msra.mxu2 %v600_v53  ;;  %563 = vmatpush.msra.mxu0 %v533_v57  ;;  %v722_v20 = vld [vmem:[%s1506_s7 + $0x8] sm:$0xff]  ;;  %v721_v41 = vld [vmem:[%s1506_s7] sm:$0xff] }
 0x234   :  { %v442_v1 = vadd.f32 %v861_v25, %v441_v37  ;;  %592 = vmatpush.msra.mxu1 %v525_v60  ;;  %663 = vmatpush.msra.mxu3 %v644_v59  ;;  %v728_v60 = vld [vmem:[%s1506_s7 + $0x38] sm:$0xff] }
 0x235   :  { %v431_v44 = vsel %vm430_vm11, %v859_v23, %v427_v7  ;;  %825 = vmatpush.msrb.mxu2 %v680_v42  ;;  %703 = vmatpush.msrb.mxu0 %v680_v42 }
 0x236   :  { %v436_v3 = vsel %vm433_vm12, %v435_v36, %v431_v44  ;;  %v446_v34 = vsel %vm445_vm15, %v861_v25, %v442_v1  ;;  %664 = vmatpush.msra.mxu3 %v643_v62  ;;  %747 = vmatpush.msrb.mxu1 %v728_v60 }
 0x237   :  { %457 = vperm.xlu0 %854, %v436_v3   ;;  %v451_v54 = vsel %vm448_vm1, %v450_v45, %v446_v34 }
 0x238   :  { %665 = vmatpush.msra.mxu3 %v642_v50 }
 0x23a   :  { %666 = vmatpush.msra.mxu3 %v641_v39 }
 0x23c   :  { %667 = vmatpush.msra.mxu3 %v640_v40 }
 0x23e   :  { %668 = vmatpush.msra.mxu3 %v639_v55 }
 0x23f   :  { %462 = vperm.xlu0 %854, %v451_v54  }
 0x240   :  { %826 = vmatpush.msrb.mxu3 %v728_v60 }
 0x298   :  { %v1398_v63 = vpop.permute.xlu1 %506 }
 0x299   :  { %vm511_vm2 = vcmp.eq.s32.totalorder %v1398_v63, 1  ;;  %v725_v63 = vld [vmem:[%s1506_s7 + $0x20] sm:$0xff] }
 0x29a   :  { %v523_v27 = vsel %vm511_vm2, %v521_v47, 0.0  ;;  %v519_v0 = vsel %vm511_vm2, %v517_v38, 0.0  ;;  %v727_v47 = vld [vmem:[%s1506_s7 + $0x30] sm:$0xff]  ;;  %v726_v38 = vld [vmem:[%s1506_s7 + $0x28] sm:$0xff] }
 0x29b   :  { %785 = vmatmul.msk.f32.vlgmr.msra.gmra.mxu2 %vm36_vm0, %v523_v27  ;;  %781 = vmatmul.msk.f32.vlgmr.msra.gmra.mxu0 %vm36_vm0, %v519_v0  ;;  %v724_v27 = vld [vmem:[%s1506_s7 + $0x18] sm:$0xff]  ;;  %v723_v0 = vld [vmem:[%s1506_s7 + $0x10] sm:$0xff] }
 0x29c   :  { %748 = vmatpush.msrb.mxu1 %v727_v47  ;;  %827 = vmatpush.msrb.mxu3 %v727_v47 }
 0x29e   :  { %749 = vmatpush.msrb.mxu1 %v726_v38  ;;  %828 = vmatpush.msrb.mxu3 %v726_v38 }
 0x2a0   :  { %v1422_v49 = vpop.permute.xlu1 %509  ;;  %750 = vmatpush.msrb.mxu1 %v725_v63  ;;  %829 = vmatpush.msrb.mxu3 %v725_v63 }
 0x2a1   :  { %vm512_vm3 = vcmp.eq.s32.totalorder %v1422_v49, 1 }
 0x2a2   :  { %v524_v43 = vsel %vm512_vm3, %v522_v61, 0.0  ;;  %v520_v48 = vsel %vm512_vm3, %v518_v19, 0.0  ;;  %751 = vmatpush.msrb.mxu1 %v724_v27  ;;  %830 = vmatpush.msrb.mxu3 %v724_v27 }
 0x2a3   :  { %786 = vmatmul.msk.f32.gmra.mxu2 %vm36_vm0, %v524_v43  ;;  %782 = vmatmul.msk.f32.gmra.mxu0 %vm36_vm0, %v520_v48 }
 0x2a4   :  { %752 = vmatpush.msrb.mxu1 %v723_v0  ;;  %831 = vmatpush.msrb.mxu3 %v723_v0 }
 0x2a6   :  { %753 = vmatpush.msrb.mxu1 %v722_v20  ;;  %832 = vmatpush.msrb.mxu3 %v722_v20 }
 0x2a8   :  { %754 = vmatpush.msrb.mxu1 %v721_v41  ;;  %833 = vmatpush.msrb.mxu3 %v721_v41 }
 0x2a9   :  { %v458_v6 = vpop.permute.xlu0 %457 }
 0x2aa   :  { %v465_v8 = vmul.f32 %v458_v6, %v453_v51  ;;  %v469_v9 = vmul.f32 %v467_v5, %v458_v6  ;;  %v856_v51 = vld [vmem:[%s1505_s6] ss:$0 sm:$0xff] }
 0x2ab   :  { %789 = vmatmul.msk.f32.vlgmr.msrb.gmra.mxu0 %vm681_vm4, %v678_v21  ;;  %790 = vmatmul.msk.f32.vlgmr.msrb.gmra.mxu2 %vm681_vm4, %v679_v22 }
 0x2ac   :  { %v471_v10 = vmul.f32 %v465_v8, %v465_v8  ;;  %v513_v11 = vsel %vm511_vm2, %v465_v8, 0.0 }
 0x2ad   :  { %783 = vmatmul.msk.f32.vlgmr.msra.gmra.mxu1 %vm36_vm0, %v513_v11 }
 0x2ae   :  { %v473_v12 = vsub.f32 %v469_v9, %v471_v10 }
 0x2b0   :  { %v475_v14 = vmax.f32 %v473_v12, 0.0 }
 0x2b1   :  { %v463_v16 = vpop.permute.xlu0 %462 }
 0x2b2   :  { %v477_v17 = vadd.f32 1e-05, %v475_v14  ;;  %v466_v18 = vmul.f32 %v463_v16, %v454_v13  ;;  %v470_v23 = vmul.f32 %v468_v15, %v463_v16  ;;  %v857_v16 = vld [vmem:[%s1507_s8] ss:$0 sm:$0xff] }
 0x2b4   :  { %v472_v24 = vmul.f32 %v466_v18, %v466_v18  ;;  %v514_v25 = vsel %vm512_vm3, %v466_v18, 0.0  ;;  %862 = vrsqrt.f32 %v477_v17  ;;  %vm486_vm5 = vcmp.eq.f32.partialorder %v477_v17, inf }
 0x2b5   :  { %784 = vmatmul.msk.f32.gmra.mxu1 %vm36_vm0, %v514_v25  ;;  %v489_v1 = vand.u32 2147483648, %v477_v17  ;;  %vm488_vm6 = vcmp.eq.f32.partialorder %v477_v17, 0.0 }
 0x2b6   :  { %v474_v26 = vsub.f32 %v470_v23, %v472_v24 }
 0x2b8   :  { %v476_v28 = vmax.f32 %v474_v26, 0.0 }
 0x2ba   :  { %v863_v29 = vpop.eup %862  ;;  %v478_v30 = vadd.f32 1e-05, %v476_v28 }
 0x2bb   :  { %v480_v31 = vmul.f32 %v863_v29, %v477_v17 }
 0x2bc   :  { %864 = vrsqrt.f32 %v478_v30  ;;  %vm498_vm7 = vcmp.eq.f32.partialorder %v478_v30, inf  ;;  %v501_v53 = vand.u32 2147483648, %v478_v30  ;;  %vm500_vm8 = vcmp.eq.f32.partialorder %v478_v30, 0.0 }
 0x2bd   :  { %v481_v32 = vmul.f32 %v863_v29, %v480_v31 }
 0x2bf   :  { %v482_v33 = vmul.f32 0.5, %v481_v32 }
 0x2c1   :  { %v483_v35 = vsub.f32 1.5, %v482_v33 }
 0x2c2   :  { %v865_v36 = vpop.eup %864 }
 0x2c3   :  { %v484_v37 = vmul.f32 %v863_v29, %v483_v35  ;;  %v492_v7 = vmul.f32 %v865_v36, %v478_v30 }
 0x2c5   :  { %v485_v52 = vmul.f32 %v484_v37, %v477_v17  ;;  %v493_v44 = vmul.f32 %v865_v36, %v492_v7 }
 0x2c7   :  { %v487_v2 = vsel %vm486_vm5, %v477_v17, %v485_v52  ;;  %v494_v3 = vmul.f32 0.5, %v493_v44 }
 0x2c8   :  { %v490_v45 = vsel %vm488_vm6, %v489_v1, %v487_v2 }
 0x2c9   :  { %v515_v34 = vsel %vm511_vm2, %v490_v45, 0.0  ;;  %v495_v54 = vsub.f32 1.5, %v494_v3 }
 0x2ca   :  { %787 = vmatmul.msk.f32.vlgmr.msra.gmra.mxu3 %vm36_vm0, %v515_v34 }
 0x2cb   :  { %v496_v4 = vmul.f32 %v865_v36, %v495_v54 }
 0x2cd   :  { %v497_v56 = vmul.f32 %v496_v4, %v478_v30 }
 0x2cf   :  { %v499_v58 = vsel %vm498_vm7, %v478_v30, %v497_v56 }
 0x2d0   :  { %v502_v46 = vsel %vm500_vm8, %v501_v53, %v499_v58 }
 0x2d1   :  { %v516_v57 = vsel %vm512_vm3, %v502_v46, 0.0 }
 0x2d2   :  { %788 = vmatmul.msk.f32.gmra.mxu3 %vm36_vm0, %v516_v57 }
 0x318   :  { %v565_v42 = vpop.f32.mrf.mxu0 }
 0x31e   :  { %v631_v59 = vpop.f32.mrf.mxu2 }
 0x320   :  { %v568_v19 = vpop.f32.mrf.mxu0 }
 0x326   :  { %v634_v50 = vpop.f32.mrf.mxu2 }
 0x328   :  { %v705_v43 = vpop.f32.mrf.mxu0 }
 0x32a   :  { %v594_v61 = vpop.f32.mrf.mxu1 }
 0x32b   :  { %v595_v62 = vadd.f32 %v594_v61, %v565_v42 }
 0x32d   :  { %v637_v49 = vadd.f32 %v631_v59, %v595_v62 }
 0x32e   :  { %v708_v11 = vpop.f32.mrf.mxu2 }
 0x332   :  { %v597_v48 = vpop.f32.mrf.mxu1 }
 0x333   :  { %v598_v55 = vadd.f32 %v597_v48, %v568_v19 }
 0x335   :  { %v638_v8 = vadd.f32 %v634_v50, %v598_v55 }
 0x34d   :  { %v670_v39 = vpop.f32.mrf.mxu3 }
 0x34e   :  { %v676_v40 = vadd.f32 %v670_v39, %v637_v49 }
 0x350   :  { %v711_v5 = vadd.f32 %v705_v43, %v676_v40 }
 0x352   :  { %v717_v6 = vadd.f32 %v856_v51, %v711_v5 }
 0x354   :  { %v719_v9 = vmax.f32 %v717_v6, 0.0 }
 0x355   :  { %v673_v10 = vpop.f32.mrf.mxu3 }
 0x356   :  { %v677_v12 = vadd.f32 %v673_v10, %v638_v8  ;;  %791 = vmatmul.msk.f32.vlgmr.msrb.gmra.mxu1 %vm36_vm0, %v719_v9 }
 0x358   :  { %v712_v13 = vadd.f32 %v708_v11, %v677_v12 }
 0x35a   :  { %v718_v14 = vadd.f32 %v856_v51, %v712_v13 }
 0x35c   :  { %v720_v15 = vmax.f32 %v718_v14, 0.0 }
 0x35e   :  { %792 = vmatmul.msk.f32.vlgmr.msrb.gmra.mxu3 %vm36_vm0, %v720_v15 }
 0x3d3   :  { %v756_v17 = vpop.f32.mrf.mxu1 }
 0x3d4   :  { %v757_v18 = vadd.f32 %v857_v16, %v756_v17 }
 0x3d6   :  { %762 = vst.msk [vmem:[%s1508_s9] sm:$0xff] %vm36_vm0, %v757_v18 }
 0x3e1   :  { %v759_v21 = vpop.f32.mrf.mxu3 }
 0x3e2   :  { %v760_v22 = vadd.f32 %v857_v16, %v759_v21 }
 0x3e4   :  { %763 = vst.msk [vmem:[%s1508_s9 + $0x8] sm:$0xff] %vm36_vm0, %v760_v22 }

// kernel: gnn_forward.14
= control target key start
LH: loop header
LB: loop body
LE: loop exit
PB: predicated region body
PF: predicated region fallthrough
CT: control target
= control target key end

     0   :  { %vm36_vm0 = vcmask 523264   ;;  %v887_v0 = vmov 0.0   ;;  %vm41_vm1 = vcmask 7168   ;;  %v82_v7 = vlaneseq  ;;  %s1537_s2 = inlined_call_operand.vmem [shape: f32[128,64], index: 2, kind: input, shape index: {}]   ;;  %s1538_s3 = inlined_call_operand.vmem [shape: f32[16,64], index: 3, kind: input, shape index: {}]   ;;  %s1539_s4 = inlined_call_operand.vmem [shape: f32[256,64], index: 4, kind: input, shape index: {}]   ;;  %s1540_s5 = inlined_call_operand.vmem [shape: f32[64,64], index: 5, kind: input, shape index: {}]   ;;  %s1541_s6 = inlined_call_operand.vmem [shape: f32[1,64], index: 6, kind: input, shape index: {}]   ;;  %s1542_s7 = inlined_call_operand.vmem [shape: f32[64,64], index: 7, kind: input, shape index: {}]   ;;  %s1543_s8 = inlined_call_operand.vmem [shape: f32[1,64], index: 8, kind: input, shape index: {}]   ;;  %s1544_s9 = inlined_call_operand.vmem [shape: f32[16,64], index: 9, kind: output, shape index: {}]   ;;  %s1545_s1 = inlined_call_operand.vmem [shape: s32[128,1], index: 1, kind: input, shape index: {}]   ;;  %s1546_s0 = inlined_call_operand.vmem [shape: s32[1,128], index: 0, kind: input, shape index: {}]  }
   0x1   :  { %37 = vst.msk [vmem:[#allocation2] sm:$0xff] %vm36_vm0, %v887_v0  ;;  %v947_v1 = vld [vmem:[%s1537_s2] sm:$0xff]  ;;  %v952_v2 = vld [vmem:[%s1537_s2 + $0x8] sm:$0xff]  ;;  %v957_v3 = vld [vmem:[%s1537_s2 + $0x10] sm:$0xff]  ;;  %v888_v20 = vmov 1e+30  }
   0x2   :  { %1555 = vst [vmem:[#allocation7_spill] sm:$0xff] %v947_v1  ;;  %v963_v4 = vld [vmem:[%s1537_s2 + $0x18] sm:$0xff]  ;;  %v968_v5 = vld [vmem:[%s1537_s2 + $0x20] sm:$0xff]  ;;  %v973_v6 = vld [vmem:[%s1537_s2 + $0x28] sm:$0xff]  ;;  %v1034_v19 = vshrl.u32 %v82_v7, 7 }
   0x3   :  { %1556 = vst [vmem:[#allocation8_spill] sm:$0xff] %v952_v2  ;;  %v979_v8 = vld [vmem:[%s1537_s2 + $0x30] sm:$0xff]  ;;  %v984_v9 = vld [vmem:[%s1537_s2 + $0x38] sm:$0xff]  ;;  %v989_v10 = vld [vmem:[%s1537_s2 + $0x40] sm:$0xff]  ;;  %v889_v27 = vmov -1e+30  }
   0x4   :  { %1557 = vst [vmem:[#allocation9_spill] sm:$0xff] %v957_v3  ;;  %v995_v11 = vld [vmem:[%s1537_s2 + $0x48] sm:$0xff]  ;;  %v1000_v12 = vld [vmem:[%s1537_s2 + $0x50] sm:$0xff]  ;;  %v1005_v13 = vld [vmem:[%s1537_s2 + $0x58] sm:$0xff]  ;;  %v1101_v34 = vadd.s32 8, %v1034_v19 }
   0x5   :  { %38 = vst.msk [vmem:[#allocation2 + $0x8] sm:$0xff] %vm36_vm0, %v887_v0  ;;  %v1011_v14 = vld [vmem:[%s1537_s2 + $0x60] sm:$0xff]  ;;  %v1016_v15 = vld [vmem:[%s1537_s2 + $0x68] sm:$0xff]  ;;  %v1021_v16 = vld [vmem:[%s1537_s2 + $0x70] sm:$0xff] }
   0x6   :  { %1558 = vst [vmem:[#allocation10_spill] sm:$0xff] %v963_v4  ;;  %v1027_v17 = vld [vmem:[%s1537_s2 + $0x78] sm:$0xff]  ;;  %v1032_v18 = vld [vmem:[%s1545_s1] sm:$0xff]  ;;  %v1040_v21 = vld [vmem:[%s1545_s1 + $0x8] sm:$0xff] }
   0x7   :  { %39 = vst.msk [vmem:[#allocation3] sm:$0xff] %vm36_vm0, %v887_v0  ;;  %v1045_v22 = vld [vmem:[%s1545_s1 + $0x10] sm:$0xff]  ;;  %v1050_v23 = vld [vmem:[%s1545_s1 + $0x18] sm:$0xff]  ;;  %v1056_v24 = vld [vmem:[%s1545_s1 + $0x20] sm:$0xff] }
   0x8   :  { %40 = vst.msk [vmem:[#allocation3 + $0x8] sm:$0xff] %vm36_vm0, %v887_v0  ;;  %v1061_v25 = vld [vmem:[%s1545_s1 + $0x28] sm:$0xff]  ;;  %v1066_v26 = vld [vmem:[%s1545_s1 + $0x30] sm:$0xff]  ;;  %v1072_v28 = vld [vmem:[%s1545_s1 + $0x38] sm:$0xff] }
   0x9   :  { %42 = vst.msk [vmem:[#allocation6] sm:$0xff] %vm41_vm1, %v887_v0  ;;  %v1077_v29 = vld [vmem:[%s1545_s1 + $0x40] sm:$0xff]  ;;  %v1082_v30 = vld [vmem:[%s1545_s1 + $0x48] sm:$0xff]  ;;  %v1088_v31 = vld [vmem:[%s1545_s1 + $0x50] sm:$0xff] }
   0xa   :  { %43 = vst.msk [vmem:[#allocation6 + $0x8] sm:$0xff] %vm41_vm1, %v887_v0  ;;  %v1093_v32 = vld [vmem:[%s1545_s1 + $0x58] sm:$0xff]  ;;  %v1098_v33 = vld [vmem:[%s1545_s1 + $0x60] sm:$0xff]  ;;  %v1106_v35 = vld [vmem:[%s1545_s1 + $0x68] sm:$0xff] }
   0xb   :  { %44 = vst.msk [vmem:[#allocation4] sm:$0xff] %vm36_vm0, %v888_v20  ;;  %v1111_v36 = vld [vmem:[%s1545_s1 + $0x70] sm:$0xff]  ;;  %v1116_v37 = vld [vmem:[%s1545_s1 + $0x78] sm:$0xff]  ;;  %v1121_v38 = vld [vmem:[%s1546_s0] ss:$0 sm:$0xff] }
   0xc   :  { %45 = vst.msk [vmem:[#allocation4 + $0x8] sm:$0xff] %vm36_vm0, %v888_v20  ;;  %vm89_vm2 = vcmp.eq.s32.totalorder %v1034_v19, %v1121_v38  ;;  %vm90_vm3 = vcmp.eq.s32.totalorder %v1101_v34, %v1121_v38 }
   0xd   :  { %46 = vst.msk [vmem:[#allocation5] sm:$0xff] %vm36_vm0, %v889_v27  ;;  %v781_v39 = vsel %vm89_vm2, 1.0, %v887_v0  ;;  %v1133_v40 = vsel %vm90_vm3, 1.0, %v887_v0 }
   0xe   :  { %47 = vst.msk [vmem:[#allocation5 + $0x8] sm:$0xff] %vm36_vm0, %v889_v27  ;;  %v95_v41 = vadd.f32 %v1133_v40, %v781_v39 }
  0x10   :  { %96 = vadd.xlane.f32.xlu0 %v95_v41 }
  0x83   :  { %v97_v42 = vpop.xlane.xlu0 %96 }
  0x84   :  { %v98_v43 = vrot.slane %v97_v42, 4 }
  0x86   :  { %v99_v44 = vadd.f32 %v98_v43, %v97_v42 }
  0x88   :  { %v100_v45 = vrot.slane %v99_v44, 2 }
  0x8a   :  { %v101_v46 = vadd.f32 %v100_v45, %v99_v44 }
  0x8c   :  { %v102_v47 = vrot.slane %v101_v46, 1 }
  0x8e   :  { %v103_v48 = vadd.f32 %v102_v47, %v101_v46 }
  0x90   :  { %847 = vpush %v103_v48 }
  0xc1   :  { %s848_s0 = spop %847 }
  0xc2   :  { %p105_p0 = scmp.gt.f32.partialorder %s848_s0, 0.0 }
  0xc3   :  { %799 = vmatpush.msra.mxu2 (%p105_p0), %v1027_v17  ;;  %v156_v49 = vmul.f32 (%p105_p0), %v1027_v17, %v1027_v17  ;;  %v155_v50 = vmul.f32 (%p105_p0), %v1021_v16, %v1021_v16  ;;  %111 = vmatpush.msra.mxu0 (%p105_p0), %v1027_v17  ;;  %v154_v51 = vmul.f32 (%p105_p0), %v1016_v15, %v1016_v15  ;;  %v890_v7 = vmov (%p105_p0), 1.0   ;;  %v184_v20 = vld [vmem:[#allocation6] sm:$0xff] (%p105_p0)  ;;  %v185_v41 = vld [vmem:[#allocation6 + $0x8] sm:$0xff] (%p105_p0)  ;;  %v139_v44 = vld [vmem:[#allocation3] sm:$0xff] (%p105_p0)  ;;  %s1219_s1 = smov (%p105_p0), 0  }
  0xc4   :  { %108 = sbr.rel (!%p105_p0) target bundleno = 547 (0x223), region = 45  ;;  %186 = vadd.xlane.f32.xlu0 (%p105_p0), %v781_v39  ;;  %v153_v52 = vmul.f32 (%p105_p0), %v1011_v14, %v1011_v14  ;;  %v152_v53 = vmul.f32 (%p105_p0), %v1005_v13, %v1005_v13  ;;  %v151_v54 = vmul.f32 (%p105_p0), %v1000_v12, %v1000_v12  ;;  %v150_v55 = vmul.f32 (%p105_p0), %v995_v11, %v995_v11  ;;  %v109_v43 = vld [vmem:[#allocation2] sm:$0xff] (%p105_p0)  ;;  %v110_v48 = vld [vmem:[#allocation2 + $0x8] sm:$0xff] (%p105_p0) }
  0xc5   :  { %815 = vmatpush.msra.mxu3 (%p105_p0), %v156_v49  ;;  %800 = vmatpush.msra.mxu2 (%p105_p0), %v1021_v16  ;;  %v149_v56 = vmul.f32 (%p105_p0), %v989_v10, %v989_v10  ;;  %v148_v57 = vmul.f32 (%p105_p0), %v984_v9, %v984_v9  ;;  %v147_v58 = vmul.f32 (%p105_p0), %v979_v8, %v979_v8 }
  0xc6   :  { %157 = vmatpush.msra.mxu1 (%p105_p0), %v156_v49  ;;  %112 = vmatpush.msra.mxu0 (%p105_p0), %v1021_v16  ;;  %v146_v59 = vmul.f32 (%p105_p0), %v973_v6, %v973_v6  ;;  %v145_v60 = vmul.f32 (%p105_p0), %v968_v5, %v968_v5  ;;  %v144_v61 = vmul.f32 (%p105_p0), %v963_v4, %v963_v4 }
  0xc7   :  { %816 = vmatpush.msra.mxu3 (%p105_p0), %v155_v50  ;;  %801 = vmatpush.msra.mxu2 (%p105_p0), %v1016_v15  ;;  %v143_v62 = vmul.f32 (%p105_p0), %v957_v3, %v957_v3  ;;  %v142_v63 = vmul.f32 (%p105_p0), %v952_v2, %v952_v2  ;;  %v141_v0 = vmul.f32 (%p105_p0), %v947_v1, %v947_v1 }
  0xc8   :  { %158 = vmatpush.msra.mxu1 (%p105_p0), %v155_v50  ;;  %113 = vmatpush.msra.mxu0 (%p105_p0), %v1016_v15 }
  0xc9   :  { %817 = vmatpush.msra.mxu3 %v154_v51  ;;  %802 = vmatpush.msra.mxu2 %v1011_v14 }
  0xca   :  { %159 = vmatpush.msra.mxu1 %v154_v51  ;;  %114 = vmatpush.msra.mxu0 %v1011_v14 }
  0xcb   :  { %818 = vmatpush.msra.mxu3 %v153_v52  ;;  %803 = vmatpush.msra.mxu2 %v1005_v13 }
  0xcc   :  { %160 = vmatpush.msra.mxu1 %v153_v52  ;;  %115 = vmatpush.msra.mxu0 %v1005_v13 }
  0xcd   :  { %819 = vmatpush.msra.mxu3 %v152_v53  ;;  %804 = vmatpush.msra.mxu2 %v1000_v12 }
  0xce   :  { %161 = vmatpush.msra.mxu1 %v152_v53  ;;  %116 = vmatpush.msra.mxu0 %v1000_v12 }
  0xcf   :  { %820 = vmatpush.msra.mxu3 %v151_v54  ;;  %805 = vmatpush.msra.mxu2 %v995_v11 }
  0xd0   :  { %162 = vmatpush.msra.mxu1 %v151_v54  ;;  %117 = vmatpush.msra.mxu0 %v995_v11 }
  0xd1   :  { %821 = vmatpush.msra.mxu3 %v150_v55  ;;  %806 = vmatpush.msra.mxu2 %v989_v10 }
  0xd2   :  { %163 = vmatpush.msra.mxu1 %v150_v55  ;;  %118 = vmatpush.msra.mxu0 %v989_v10 }
  0xd3   :  { %822 = vmatpush.msra.mxu3 %v149_v56  ;;  %807 = vmatpush.msra.mxu2 %v984_v9 }
  0xd4   :  { %164 = vmatpush.msra.mxu1 %v149_v56  ;;  %119 = vmatpush.msra.mxu0 %v984_v9 }
  0xd5   :  { %823 = vmatpush.msra.mxu3 %v148_v57  ;;  %808 = vmatpush.msra.mxu2 %v979_v8 }
  0xd6   :  { %165 = vmatpush.msra.mxu1 %v148_v57  ;;  %120 = vmatpush.msra.mxu0 %v979_v8 }
  0xd7   :  { %824 = vmatpush.msra.mxu3 %v147_v58  ;;  %809 = vmatpush.msra.mxu2 %v973_v6 }
  0xd8   :  { %166 = vmatpush.msra.mxu1 %v147_v58  ;;  %121 = vmatpush.msra.mxu0 %v973_v6 }
  0xd9   :  { %825 = vmatpush.msra.mxu3 %v146_v59  ;;  %810 = vmatpush.msra.mxu2 %v968_v5 }
  0xda   :  { %167 = vmatpush.msra.mxu1 %v146_v59  ;;  %122 = vmatpush.msra.mxu0 %v968_v5 }
  0xdb   :  { %826 = vmatpush.msra.mxu3 %v145_v60  ;;  %811 = vmatpush.msra.mxu2 %v963_v4 }
  0xdc   :  { %168 = vmatpush.msra.mxu1 %v145_v60  ;;  %123 = vmatpush.msra.mxu0 %v963_v4 }
  0xdd   :  { %827 = vmatpush.msra.mxu3 %v144_v61  ;;  %812 = vmatpush.msra.mxu2 %v957_v3 }
  0xde   :  { %169 = vmatpush.msra.mxu1 %v144_v61  ;;  %124 = vmatpush.msra.mxu0 %v957_v3 }
  0xdf   :  { %828 = vmatpush.msra.mxu3 %v143_v62  ;;  %813 = vmatpush.msra.mxu2 %v952_v2 }
  0xe0   :  { %170 = vmatpush.msra.mxu1 %v143_v62  ;;  %125 = vmatpush.msra.mxu0 %v952_v2 }
  0xe1   :  { %829 = vmatpush.msra.mxu3 %v142_v63  ;;  %814 = vmatpush.msra.mxu2 %v947_v1 }
  0xe2   :  { %784 = vmatmul.msk.f32.vlgmr.msra.gmra.mxu2 %vm90_vm3, %v890_v7  ;;  %171 = vmatpush.msra.mxu1 %v142_v63 }
  0xe3   :  { %830 = vmatpush.msra.mxu3 %v141_v0  ;;  %126 = vmatpush.msra.mxu0 %v947_v1 }
  0xe4   :  { %786 = vmatmul.msk.f32.vlgmr.msra.gmra.mxu3 %vm90_vm3, %v890_v7  ;;  %172 = vmatpush.msra.mxu1 %v141_v0 }
  0xe5   :  { %783 = vmatmul.msk.f32.vlgmr.msra.gmra.mxu0 %vm89_vm2, %v890_v7  ;;  %785 = vmatmul.msk.f32.vlgmr.msra.gmra.mxu1 %vm89_vm2, %v890_v7 }
  0xe6   :  { %188 = vadd.xlane.f32.xlu0 %v1133_v40  ;;  %v140_v40 = vld [vmem:[#allocation3 + $0x8] sm:$0xff] }
 0x137   :  { %v187_v27 = vpop.xlane.xlu0 %186 }
 0x138   :  { %v190_v39 = vadd.f32 %v187_v27, %v184_v20 }
 0x13a   :  { %193 = vst.msk [vmem:[#allocation6] sm:$0xff] %vm41_vm1, %v190_v39 }
 0x159   :  { %v189_v42 = vpop.xlane.xlu0 %188 }
 0x15a   :  { %v191_v34 = vadd.f32 %v189_v42, %v185_v41 }
 0x15c   :  { %194 = vst.msk [vmem:[#allocation6 + $0x8] sm:$0xff] %vm41_vm1, %v191_v34 }
 0x162   :  { %v128_v45 = vpop.f32.mrf.mxu0  ;;  %v174_v46 = vpop.f32.mrf.mxu1 }
 0x163   :  { %v134_v47 = vadd.f32 %v128_v45, %v109_v43  ;;  %v180_v19 = vadd.f32 %v174_v46, %v139_v44 }
 0x165   :  { %137 = vst.msk [vmem:[#allocation2] sm:$0xff] %vm36_vm0, %v134_v47  ;;  %v131_v38 = vpop.f32.mrf.mxu2 }
 0x166   :  { %v135_v49 = vadd.f32 %v131_v38, %v110_v48  ;;  %182 = vst.msk [vmem:[#allocation3] sm:$0xff] %vm36_vm0, %v180_v19 }
 0x167   :  { %v177_v50 = vpop.f32.mrf.mxu3 }
 0x168   :  { %138 = vst.msk [vmem:[#allocation2 + $0x8] sm:$0xff] %vm36_vm0, %v135_v49  ;;  %v181_v51 = vadd.f32 %v177_v50, %v140_v40 }
 0x16a   :  { %183 = vst.msk [vmem:[#allocation3 + $0x8] sm:$0xff] %vm36_vm0, %v181_v51 }
 0x16b LB: > { %v1559_v4 = vld [vmem:[#allocation10_spill] sm:$0xff]  ;;  %v1560_v3 = vld [vmem:[#allocation9_spill] sm:$0xff]  ;;  %v1561_v2 = vld [vmem:[#allocation8_spill] sm:$0xff]  ;;  %v891_v52 = vmov 0   ;;  %v202_v53 = vstv %s885_s1  ;;  %s405_s10 = scalar_lea.vmem [#allocation4], %s885_s1  ;;  %s410_s11 = scalar_lea.vmem [#allocation5], %s885_s1  ;;  %s885_s1 = sphi %s1219_s1, %s200_s1  }
 0x16c   : > { %v1562_v1 = vld [vmem:[#allocation7_spill] sm:$0xff]  ;;  %866 = vset.pattern.permute.xlu2 %v891_v52  ;;  %865 = vset.pattern.permute.xlu1 %v891_v52  ;;  %vm207_vm4 = vcmp.eq.s32.totalorder %v1056_v24, %v202_v53  ;;  %vm205_vm5 = vcmp.eq.s32.totalorder %v1045_v22, %v202_v53  ;;  %vm203_vm6 = vcmp.eq.s32.totalorder %v1032_v18, %v202_v53  ;;  %s200_s1 = sadd.s32 1, %s885_s1  }
 0x16d   : > { %864 = vset.pattern.permute.xlu0 %v891_v52  ;;  %v223_v54 = vsel %vm207_vm4, 1, %v891_v52  ;;  %v221_v55 = vsel %vm205_vm5, 1, %v891_v52  ;;  %v219_v56 = vsel %vm203_vm6, 1, %v891_v52  ;;  %vm208_vm7 = vcmp.eq.s32.totalorder %v1061_v25, %v202_v53  ;;  %p197_p1 = scmp.ge.s32.totalorder %s200_s1, 16  }
 0x16e   : > { %248 = vperm.xlu2 %866, %v223_v54   ;;  %242 = vperm.xlu1 %865, %v221_v55   ;;  %vm206_vm8 = vcmp.eq.s32.totalorder %v1050_v23, %v202_v53  ;;  %vm204_vm9 = vcmp.eq.s32.totalorder %v1040_v21, %v202_v53  ;;  %v224_v57 = vsel %vm208_vm7, 1, %v891_v52  ;;  %vm211_vm10 = vcmp.eq.s32.totalorder %v1077_v29, %v202_v53 }
 0x16f   : > { %236 = vperm.xlu0 %864, %v219_v56   ;;  %v222_v58 = vsel %vm206_vm8, 1, %v891_v52  ;;  %v220_v59 = vsel %vm204_vm9, 1, %v891_v52  ;;  %vm210_vm11 = vcmp.eq.s32.totalorder %v1072_v28, %v202_v53  ;;  %vm209_vm12 = vcmp.eq.s32.totalorder %v1066_v26, %v202_v53 }
 0x170   : > { %v227_v60 = vsel %vm211_vm10, 1, %v891_v52  ;;  %v226_v61 = vsel %vm210_vm11, 1, %v891_v52  ;;  %v225_v62 = vsel %vm209_vm12, 1, %v891_v52  ;;  %vm214_vm13 = vcmp.eq.s32.totalorder %v1093_v32, %v202_v53 }
 0x171   : > { %vm213_vm14 = vcmp.eq.s32.totalorder %v1088_v31, %v202_v53  ;;  %vm212_vm15 = vcmp.eq.s32.totalorder %v1082_v30, %v202_v53  ;;  %v230_v63 = vsel %vm214_vm13, 1, %v891_v52  ;;  %vm217_vm1 = vcmp.eq.s32.totalorder %v1111_v36, %v202_v53 }
 0x172   : > { %v229_v0 = vsel %vm213_vm14, 1, %v891_v52  ;;  %v228_v7 = vsel %vm212_vm15, 1, %v891_v52  ;;  %vm216_vm2 = vcmp.eq.s32.totalorder %v1106_v35, %v202_v53  ;;  %vm215_vm3 = vcmp.eq.s32.totalorder %v1098_v33, %v202_v53 }
 0x173   : > { %v233_v20 = vsel %vm217_vm1, 1, %v891_v52  ;;  %v232_v27 = vsel %vm216_vm2, 1, %v891_v52  ;;  %v231_v39 = vsel %vm215_vm3, 1, %v891_v52  ;;  %vm218_vm4 = vcmp.eq.s32.totalorder %v1116_v37, %v202_v53 }
 0x174   : > { %v234_v41 = vsel %vm218_vm4, 1, %v891_v52 }
 0x176   : > { %251 = vperm.xlu2 %866, %v224_v57   ;;  %245 = vperm.xlu1 %865, %v222_v58  }
 0x177   : > { %239 = vperm.xlu0 %864, %v220_v59  }
 0x17e   : > { %260 = vperm.xlu2 %866, %v227_v60   ;;  %257 = vperm.xlu1 %865, %v226_v61  }
 0x17f   : > { %254 = vperm.xlu0 %864, %v225_v62  }
 0x186   : > { %269 = vperm.xlu2 %866, %v230_v63   ;;  %266 = vperm.xlu1 %865, %v229_v0  }
 0x187   : > { %263 = vperm.xlu0 %864, %v228_v7  }
 0x18e   : > { %278 = vperm.xlu2 %866, %v233_v20   ;;  %275 = vperm.xlu1 %865, %v232_v27  }
 0x18f   : > { %272 = vperm.xlu0 %864, %v231_v39  }
 0x197   : > { %281 = vperm.xlu0 %864, %v234_v41  }
 0x1c8   : > { %v249_v42 = vpop.permute.xlu2 %248 }
 0x1c9   : > { %vm287_vm5 = vcmp.eq.s32.totalorder %v249_v42, 1 }
 0x1ca   : > { %v303_v40 = vsel %vm287_vm5, %v968_v5, 1e+30  ;;  %v356_v49 = vsel %vm287_vm5, %v968_v5, -1e+30 }
 0x1cb   : > { %v319_v53 = vsel %vm36_vm0, %v303_v40, inf  ;;  %v372_v54 = vsel %vm36_vm0, %v356_v49, -inf }
 0x1d0   : > { %v252_v34 = vpop.permute.xlu2 %251 }
 0x1d1   : > { %vm288_vm6 = vcmp.eq.s32.totalorder %v252_v34, 1 }
 0x1d2   : > { %v304_v50 = vsel %vm288_vm6, %v973_v6, 1e+30  ;;  %v357_v56 = vsel %vm288_vm6, %v973_v6, -1e+30  ;;  %vm408_vm6 = vcmask 516096  }
 0x1d3   : > { %v1249_v55 = vsel %vm36_vm0, %v304_v50, inf  ;;  %v374_v42 = vsel %vm36_vm0, %v357_v56, -inf }
 0x1d8   : > { %v261_v45 = vpop.permute.xlu2 %260 }
 0x1d9   : > { %vm291_vm8 = vcmp.eq.s32.totalorder %v261_v45, 1 }
 0x1da   : > { %v307_v59 = vsel %vm291_vm8, %v989_v10, 1e+30  ;;  %v360_v60 = vsel %vm291_vm8, %v989_v10, -1e+30 }
 0x1db   : > { %v327_v34 = vsel %vm36_vm0, %v307_v59, inf }
 0x1e0   : > { %v243_v43 = vpop.permute.xlu1 %242  ;;  %v270_v48 = vpop.permute.xlu2 %269 }
 0x1e1   : > { %v237_v44 = vpop.permute.xlu0 %236  ;;  %vm294_vm9 = vcmp.eq.s32.totalorder %v270_v48, 1  ;;  %vm285_vm10 = vcmp.eq.s32.totalorder %v243_v43, 1  ;;  %v380_v43 = vsel %vm36_vm0, %v360_v60, -inf }
 0x1e2   : > { %vm283_vm7 = vcmp.eq.s32.totalorder %v237_v44, 1  ;;  %v310_v61 = vsel %vm294_vm9, %v1005_v13, 1e+30  ;;  %v363_v63 = vsel %vm294_vm9, %v1005_v13, -1e+30 }
 0x1e3   : > { %v299_v51 = vsel %vm283_vm7, %v1562_v1, 1e+30  ;;  %v352_v52 = vsel %vm283_vm7, %v1562_v1, -1e+30  ;;  %v301_v0 = vsel %vm285_vm10, %v1560_v3, 1e+30 }
 0x1e4   : > { %v315_v57 = vsel %vm36_vm0, %v299_v51, inf  ;;  %v368_v58 = vsel %vm36_vm0, %v352_v52, -inf  ;;  %v354_v27 = vsel %vm285_vm10, %v1560_v3, -1e+30  ;;  %v333_v44 = vsel %vm36_vm0, %v310_v61, inf }
 0x1e5   : > { %v320_v39 = vmin.f32 %v315_v57, %v319_v53  ;;  %v373_v41 = vmax.f32 %v368_v58, %v372_v54  ;;  %v386_v45 = vsel %vm36_vm0, %v363_v63, -inf  ;;  %v317_v49 = vsel %vm36_vm0, %v301_v0, inf }
 0x1e6   : > { %v370_v50 = vsel %vm36_vm0, %v354_v27, -inf }
 0x1e7   : > { %v1280_v54 = vmin.f32 %v320_v39, %v327_v34  ;;  %v1282_v56 = vmax.f32 %v373_v41, %v380_v43 }
 0x1e8   : > { %v246_v46 = vpop.permute.xlu1 %245  ;;  %v1259_v7 = vpop.permute.xlu2 %278 }
 0x1e9   : > { %v240_v47 = vpop.permute.xlu0 %239  ;;  %vm286_vm11 = vcmp.eq.s32.totalorder %v246_v46, 1  ;;  %vm297_vm14 = vcmp.eq.s32.totalorder %v1259_v7, 1 }
 0x1ea   : > { %vm284_vm12 = vcmp.eq.s32.totalorder %v240_v47, 1  ;;  %v302_v48 = vsel %vm286_vm11, %v1559_v4, 1e+30  ;;  %v355_v51 = vsel %vm286_vm11, %v1559_v4, -1e+30 }
 0x1eb   : > { %v300_v40 = vsel %vm284_vm12, %v1561_v2, 1e+30  ;;  %v353_v53 = vsel %vm284_vm12, %v1561_v2, -1e+30  ;;  %v313_v57 = vsel %vm297_vm14, %v1021_v16, 1e+30 }
 0x1ec   : > { %v318_v58 = vsel %vm36_vm0, %v302_v48, inf  ;;  %v316_v46 = vsel %vm36_vm0, %v300_v40, inf  ;;  %v371_v59 = vsel %vm36_vm0, %v355_v51, -inf  ;;  %v369_v61 = vsel %vm36_vm0, %v353_v53, -inf }
 0x1ed   : > { %v322_v39 = vmin.f32 %v316_v46, %v1249_v55 }
 0x1f0   : > { %v258_v19 = vpop.permute.xlu1 %257 }
 0x1f1   : > { %v255_v38 = vpop.permute.xlu0 %254  ;;  %vm290_vm13 = vcmp.eq.s32.totalorder %v258_v19, 1 }
 0x1f2   : > { %v306_v52 = vsel %vm290_vm13, %v984_v9, 1e+30  ;;  %vm289_vm15 = vcmp.eq.s32.totalorder %v255_v38, 1  ;;  %v359_v47 = vsel %vm290_vm13, %v984_v9, -1e+30 }
 0x1f3   : > { %v325_v60 = vsel %vm36_vm0, %v306_v52, inf  ;;  %v305_v63 = vsel %vm289_vm15, %v979_v8, 1e+30  ;;  %v358_v0 = vsel %vm289_vm15, %v979_v8, -1e+30  ;;  %v378_v19 = vsel %vm36_vm0, %v359_v47, -inf }
 0x1f4   : > { %v326_v34 = vmin.f32 %v318_v58, %v325_v60  ;;  %v323_v48 = vsel %vm36_vm0, %v305_v63, inf  ;;  %v376_v40 = vsel %vm36_vm0, %v358_v0, -inf  ;;  %v375_v60 = vmax.f32 %v369_v61, %v374_v42 }
 0x1f5   : > { %v379_v47 = vmax.f32 %v371_v59, %v378_v19  ;;  %v377_v0 = vmax.f32 %v370_v50, %v376_v40  ;;  %v366_v42 = vsel %vm297_vm14, %v1021_v16, -1e+30 }
 0x1f6   : > { %v334_v19 = vmin.f32 %v326_v34, %v333_v44  ;;  %v392_v7 = vsel %vm36_vm0, %v366_v42, -inf  ;;  %v406_v42 = vld [vmem:[%s405_s10] sm:$0x1] }
 0x1f8   : > { %v267_v62 = vpop.permute.xlu1 %266 }
 0x1f9   : > { %v264_v20 = vpop.permute.xlu0 %263  ;;  %vm293_vm2 = vcmp.eq.s32.totalorder %v267_v62, 1 }
 0x1fa   : > { %vm292_vm1 = vcmp.eq.s32.totalorder %v264_v20, 1  ;;  %v309_v62 = vsel %vm293_vm2, %v1000_v12, 1e+30  ;;  %v362_v43 = vsel %vm293_vm2, %v1000_v12, -1e+30 }
 0x1fb   : > { %v308_v20 = vsel %vm292_vm1, %v995_v11, 1e+30  ;;  %v361_v41 = vsel %vm292_vm1, %v995_v11, -1e+30  ;;  %v384_v63 = vsel %vm36_vm0, %v362_v43, -inf  ;;  %v387_v43 = vmax.f32 %v379_v47, %v386_v45 }
 0x1fc   : > { %v329_v52 = vsel %vm36_vm0, %v308_v20, inf  ;;  %v382_v53 = vsel %vm36_vm0, %v361_v41, -inf  ;;  %v385_v61 = vmax.f32 %v377_v0, %v384_v63 }
 0x1fd   : > { %v330_v3 = vmin.f32 %v322_v39, %v329_v52  ;;  %v383_v20 = vmax.f32 %v375_v60, %v382_v53 }
 0x200   : > { %v276_v38 = vpop.permute.xlu1 %275 }
 0x201   : > { %vm296_vm3 = vcmp.eq.s32.totalorder %v276_v38, 1  ;;  %v273_v27 = vpop.permute.xlu0 %272  ;;  %v331_v38 = vsel %vm36_vm0, %v309_v62, inf }
 0x202   : > { %vm295_vm4 = vcmp.eq.s32.totalorder %v273_v27, 1  ;;  %v312_v51 = vsel %vm296_vm3, %v1016_v15, 1e+30  ;;  %v365_v55 = vsel %vm296_vm3, %v1016_v15, -1e+30  ;;  %v324_v27 = vmin.f32 %v317_v49, %v323_v48 }
 0x203   : > { %v311_v58 = vsel %vm295_vm4, %v1011_v14, 1e+30  ;;  %v364_v46 = vsel %vm295_vm4, %v1011_v14, -1e+30  ;;  %v337_v1 = vsel %vm36_vm0, %v312_v51, inf  ;;  %v390_v2 = vsel %vm36_vm0, %v365_v55, -inf }
 0x204   : > { %v335_v41 = vsel %vm36_vm0, %v311_v58, inf  ;;  %v388_v4 = vsel %vm36_vm0, %v364_v46, -inf  ;;  %v332_v59 = vmin.f32 %v324_v27, %v331_v38  ;;  %v338_v49 = vmin.f32 %v330_v3, %v337_v1 }
 0x205   : > { %v391_v50 = vmax.f32 %v383_v20, %v390_v2  ;;  %v336_v48 = vmin.f32 %v1280_v54, %v335_v41  ;;  %v389_v39 = vmax.f32 %v1282_v56, %v388_v4  ;;  %v339_v55 = vsel %vm36_vm0, %v313_v57, inf }
 0x206   : > { %v340_v1 = vmin.f32 %v332_v59, %v339_v55  ;;  %v393_v2 = vmax.f32 %v385_v61, %v392_v7  ;;  %v411_v59 = vld [vmem:[%s410_s11] sm:$0x1] }
 0x207   : > { %v343_v34 = vmin.f32 %v336_v48, %v338_v49  ;;  %v396_v54 = vmax.f32 %v389_v39, %v391_v50 }
 0x209   : > { %v282_v62 = vpop.permute.xlu0 %281 }
 0x20a   : > { %vm298_vm5 = vcmp.eq.s32.totalorder %v282_v62, 1 }
 0x20b   : > { %v314_v40 = vsel %vm298_vm5, %v1027_v17, 1e+30  ;;  %v367_v51 = vsel %vm298_vm5, %v1027_v17, -1e+30 }
 0x20c   : > { %v341_v52 = vsel %vm36_vm0, %v314_v40, inf  ;;  %v394_v44 = vsel %vm36_vm0, %v367_v51, -inf }
 0x20d   : > { %v342_v3 = vmin.f32 %v334_v19, %v341_v52  ;;  %v395_v45 = vmax.f32 %v387_v43, %v394_v44 }
 0x20f   : > { %v344_v4 = vmin.f32 %v340_v1, %v342_v3  ;;  %v397_v56 = vmax.f32 %v393_v2, %v395_v45 }
 0x211   : > { %v345_v53 = vmin.f32 %v343_v34, %v344_v4  ;;  %v398_v58 = vmax.f32 %v396_v54, %v397_v56 }
 0x213   : > { %v346_v46 = vrot.slane %v345_v53, 4  ;;  %v399_v57 = vrot.slane %v398_v58, 4 }
 0x215   : > { %v347_v60 = vmin.f32 %v345_v53, %v346_v46  ;;  %v400_v47 = vmax.f32 %v398_v58, %v399_v57 }
 0x217   : > { %v348_v38 = vrot.slane %v347_v60, 2  ;;  %v401_v63 = vrot.slane %v400_v47, 2 }
 0x219   : > { %v349_v27 = vmin.f32 %v347_v60, %v348_v38  ;;  %v402_v0 = vmax.f32 %v400_v47, %v401_v63 }
 0x21b   : > { %v350_v20 = vrot.slane %v349_v27, 1  ;;  %v403_v41 = vrot.slane %v402_v0, 1 }
 0x21d   : > { %v351_v61 = vmin.f32 %v349_v27, %v350_v20  ;;  %v404_v19 = vmax.f32 %v402_v0, %v403_v41 }
 0x21e   :  { %199 = sbr.rel (!%p197_p1) target bundleno = 363 (0x16b), region = 77 }
 0x21f   : > { %v407_v62 = vmin.f32 %v406_v42, %v351_v61  ;;  %v412_v49 = vmax.f32 %v411_v59, %v404_v19 }
 0x221   : > { %409 = vst.msk [vmem:[%s405_s10] sm:$0x1] %vm408_vm6, %v407_v62 }
 0x222   : > { %413 = vst.msk [vmem:[%s410_s11] sm:$0x1] %vm408_vm6, %v412_v49 }
 0x223 PF:  { %v417_v50 = vld [vmem:[#allocation6] sm:$0xff]  ;;  %v418_v43 = vld [vmem:[#allocation6 + $0x8] sm:$0xff]  ;;  %v607_v48 = vld [vmem:[%s1539_s4 + $0xb8] sm:$0xff]  ;;  %v892_v39 = vmov 0  }
 0x224   :  { %868 = vset.pattern.permute.xlu1 %v892_v39  ;;  %vm419_vm7 = vcmp.gt.f32.partialorder %v417_v50, 0.0  ;;  %v421_v40 = vmax.f32 %v417_v50, 1.0  ;;  %867 = vset.pattern.permute.xlu0 %v892_v39  ;;  %v1335_v51 = vmax.f32 %v418_v43, 1.0  ;;  %v606_v55 = vld [vmem:[%s1539_s4 + $0xb0] sm:$0xff]  ;;  %v540_v5 = vld [vmem:[%s1539_s4 + $0x78] sm:$0xff]  ;;  %v605_v10 = vld [vmem:[%s1539_s4 + $0xa8] sm:$0xff] }
 0x225   :  { %v503_v6 = vsel %vm419_vm7, 1, %v892_v39  ;;  %622 = vmatpush.msra.mxu2 %v607_v48  ;;  %556 = vmatpush.msra.mxu0 %v540_v5  ;;  %v532_v8 = vld [vmem:[%s1539_s4 + $0x38] sm:$0xff]  ;;  %v539_v9 = vld [vmem:[%s1539_s4 + $0x70] sm:$0xff]  ;;  %v538_v12 = vld [vmem:[%s1539_s4 + $0x68] sm:$0xff]  ;;  %vm420_vm8 = vcmp.gt.f32.partialorder %v418_v43, 0.0 }
 0x226   :  { %871 = vrcp.f32 %v421_v40  ;;  %506 = vperm.xlu1 %868, %v503_v6   ;;  %585 = vmatpush.msra.mxu1 %v532_v8  ;;  %v531_v11 = vld [vmem:[%s1539_s4 + $0x30] sm:$0xff]  ;;  %v530_v13 = vld [vmem:[%s1539_s4 + $0x28] sm:$0xff]  ;;  %v604_v14 = vld [vmem:[%s1539_s4 + $0xa0] sm:$0xff]  ;;  %v504_v21 = vsel %vm420_vm8, 1, %v892_v39  ;;  %v434_v28 = vand.u32 2147483648, %v421_v40  ;;  %vm428_vm9 = vweird.f32 %v421_v40 }
 0x227   :  { %873 = vrcp.f32 %v1335_v51  ;;  %623 = vmatpush.msra.mxu2 %v606_v55  ;;  %557 = vmatpush.msra.mxu0 %v539_v9  ;;  %v537_v15 = vld [vmem:[%s1539_s4 + $0x60] sm:$0xff]  ;;  %v603_v17 = vld [vmem:[%s1539_s4 + $0x98] sm:$0xff]  ;;  %v602_v24 = vld [vmem:[%s1539_s4 + $0x90] sm:$0xff]  ;;  %v432_v32 = vand.u32 2147483647, %v421_v40  ;;  %vm443_vm13 = vweird.f32 %v1335_v51  ;;  %v449_v52 = vand.u32 2147483648, %v1335_v51 }
 0x228   :  { %586 = vmatpush.msra.mxu1 %v531_v11  ;;  %v529_v16 = vld [vmem:[%s1539_s4 + $0x20] sm:$0xff]  ;;  %v536_v18 = vld [vmem:[%s1539_s4 + $0x58] sm:$0xff]  ;;  %v601_v30 = vld [vmem:[%s1539_s4 + $0x88] sm:$0xff]  ;;  %v435_v36 = vor.u32 1.1754944e-38, %v434_v28  ;;  %v447_v2 = vand.u32 2147483647, %v1335_v51 }
 0x229   :  { %624 = vmatpush.msra.mxu2 %v605_v10  ;;  %558 = vmatpush.msra.mxu0 %v538_v12  ;;  %v528_v22 = vld [vmem:[%s1539_s4 + $0x18] sm:$0xff]  ;;  %vm433_vm12 = vcmp.eq.f32.partialorder %v432_v32, 8.507059e+37  ;;  %v450_v45 = vor.u32 1.1754944e-38, %v449_v52  ;;  %v535_v4 = vld [vmem:[%s1539_s4 + $0x50] sm:$0xff]  ;;  %v600_v53 = vld [vmem:[%s1539_s4 + $0x80] sm:$0xff] }
 0x22a   :  { %587 = vmatpush.msra.mxu1 %v530_v13  ;;  %vm448_vm1 = vcmp.eq.f32.partialorder %v447_v2, 8.507059e+37  ;;  %v527_v56 = vld [vmem:[%s1539_s4 + $0x10] sm:$0xff]  ;;  %v534_v58 = vld [vmem:[%s1539_s4 + $0x48] sm:$0xff]  ;;  %v533_v57 = vld [vmem:[%s1539_s4 + $0x40] sm:$0xff] }
 0x22b   :  { %625 = vmatpush.msra.mxu2 %v604_v14  ;;  %559 = vmatpush.msra.mxu0 %v537_v15  ;;  %v526_v46 = vld [vmem:[%s1539_s4 + $0x8] sm:$0xff]  ;;  %v525_v60 = vld [vmem:[%s1539_s4] sm:$0xff]  ;;  %v521_v47 = vld [vmem:[#allocation5] sm:$0xff] }
 0x22c   :  { %v872_v23 = vpop.eup %871  ;;  %588 = vmatpush.msra.mxu1 %v529_v16  ;;  %v517_v38 = vld [vmem:[#allocation4] sm:$0xff]  ;;  %v646_v20 = vld [vmem:[%s1539_s4 + $0xf8] sm:$0xff]  ;;  %v645_v41 = vld [vmem:[%s1539_s4 + $0xf0] sm:$0xff] }
 0x22d   :  { %v874_v25 = vpop.eup %873  ;;  %v424_v26 = vmul.f32 %v872_v23, %v421_v40  ;;  %626 = vmatpush.msra.mxu2 %v603_v17  ;;  %560 = vmatpush.msra.mxu0 %v536_v18  ;;  %vm429_vm10 = vweird.f32 %v872_v23  ;;  %v687_v42 = vld [vmem:[%s1540_s5 + $0x38] sm:$0xff]  ;;  %v686_v59 = vld [vmem:[%s1540_s5 + $0x30] sm:$0xff]  ;;  %v644_v61 = vld [vmem:[%s1539_s4 + $0xe8] sm:$0xff] }
 0x22e   :  { %509 = vperm.xlu1 %868, %v504_v21   ;;  %v439_v29 = vmul.f32 %v874_v25, %v1335_v51  ;;  %589 = vmatpush.msra.mxu1 %v528_v22  ;;  %vm430_vm11 = vmor %vm428_vm9, %vm429_vm10  ;;  %vm444_vm14 = vweird.f32 %v874_v25  ;;  %v685_v19 = vld [vmem:[%s1540_s5 + $0x28] sm:$0xff]  ;;  %v522_v62 = vld [vmem:[#allocation5 + $0x8] sm:$0xff] }
 0x22f   :  { %v425_v31 = vsub.f32 1.0, %v424_v26  ;;  %627 = vmatpush.msra.mxu2 %v602_v24  ;;  %vm445_vm15 = vmor %vm443_vm13, %vm444_vm14  ;;  %561 = vmatpush.msra.mxu0 %v535_v4  ;;  %v518_v49 = vld [vmem:[#allocation4 + $0x8] sm:$0xff]  ;;  %v643_v50 = vld [vmem:[%s1539_s4 + $0xe0] sm:$0xff] }
 0x230   :  { %v440_v33 = vsub.f32 1.0, %v439_v29  ;;  %590 = vmatpush.msra.mxu1 %v527_v56  ;;  %661 = vmatpush.msra.mxu3 %v646_v20  ;;  %v684_v43 = vld [vmem:[%s1540_s5 + $0x20] sm:$0xff]  ;;  %v642_v39 = vld [vmem:[%s1539_s4 + $0xd8] sm:$0xff]  ;;  %v641_v55 = vld [vmem:[%s1539_s4 + $0xd0] sm:$0xff] }
 0x231   :  { %v426_v35 = vmul.f32 %v872_v23, %v425_v31  ;;  %628 = vmatpush.msra.mxu2 %v601_v30  ;;  %562 = vmatpush.msra.mxu0 %v534_v58  ;;  %v640_v5 = vld [vmem:[%s1539_s4 + $0xc8] sm:$0xff]  ;;  %v453_v6 = vld [vmem:[#allocation2] sm:$0xff]  ;;  %v467_v9 = vld [vmem:[#allocation3] sm:$0xff] }
 0x232   :  { %v441_v37 = vmul.f32 %v874_v25, %v440_v33  ;;  %591 = vmatpush.msra.mxu1 %v526_v46  ;;  %662 = vmatpush.msra.mxu3 %v645_v41  ;;  %v639_v8 = vld [vmem:[%s1539_s4 + $0xc0] sm:$0xff]  ;;  %v683_v12 = vld [vmem:[%s1540_s5 + $0x18] sm:$0xff]  ;;  %v682_v13 = vld [vmem:[%s1540_s5 + $0x10] sm:$0xff] }
 0x233   :  { %v427_v7 = vadd.f32 %v872_v23, %v426_v35  ;;  %629 = vmatpush.msra.mxu2 %v600_v53  ;;  %563 = vmatpush.msra.mxu0 %v533_v57  ;;  %v681_v17 = vld [vmem:[%s1540_s5 + $0x8] sm:$0xff]  ;;  %v680_v21 = vld [vmem:[%s1540_s5] sm:$0xff]  ;;  %v468_v24 = vld [vmem:[#allocation3 + $0x8] sm:$0xff] }
 0x234   :  { %v442_v1 = vadd.f32 %v874_v25, %v441_v37  ;;  %592 = vmatpush.msra.mxu1 %v525_v60  ;;  %663 = vmatpush.msra.mxu3 %v644_v61  ;;  %v454_v22 = vld [vmem:[#allocation2 + $0x8] sm:$0xff]  ;;  %v678_v29 = vld [vmem:[%s1538_s3] sm:$0xff] }
 0x235   :  { %v431_v44 = vsel %vm430_vm11, %v872_v23, %v427_v7  ;;  %702 = vmatpush.msrb.mxu0 %v687_v42  ;;  %831 = vmatpush.msrb.mxu2 %v687_v42  ;;  %v679_v30 = vld [vmem:[%s1538_s3 + $0x8] sm:$0xff]  ;;  %v733_v42 = vld [vmem:[%s1542_s7 + $0x30] sm:$0xff]  ;;  %v731_v61 = vld [vmem:[%s1542_s7 + $0x20] sm:$0xff] }
 0x236   :  { %v436_v3 = vsel %vm433_vm12, %v435_v36, %v431_v44  ;;  %v446_v34 = vsel %vm445_vm15, %v874_v25, %v442_v1  ;;  %664 = vmatpush.msra.mxu3 %v643_v50  ;;  %v727_v50 = vld [vmem:[%s1542_s7] sm:$0xff] }
 0x237   :  { %457 = vperm.xlu0 %867, %v436_v3   ;;  %v451_v54 = vsel %vm448_vm1, %v450_v45, %v446_v34  ;;  %703 = vmatpush.msrb.mxu0 %v686_v59 }
 0x238   :  { %832 = vmatpush.msrb.mxu2 %v686_v59  ;;  %665 = vmatpush.msra.mxu3 %v642_v39  ;;  %v732_v59 = vld [vmem:[%s1542_s7 + $0x28] sm:$0xff] }
 0x239   :  { %704 = vmatpush.msrb.mxu0 %v685_v19 }
 0x23a   :  { %833 = vmatpush.msrb.mxu2 %v685_v19  ;;  %666 = vmatpush.msra.mxu3 %v641_v55  ;;  %v730_v19 = vld [vmem:[%s1542_s7 + $0x18] sm:$0xff] }
 0x23b   :  { %705 = vmatpush.msrb.mxu0 %v684_v43 }
 0x23c   :  { %834 = vmatpush.msrb.mxu2 %v684_v43  ;;  %667 = vmatpush.msra.mxu3 %v640_v5 }
 0x23d   :  { %706 = vmatpush.msrb.mxu0 %v683_v12 }
 0x23e   :  { %668 = vmatpush.msra.mxu3 %v639_v8  ;;  %835 = vmatpush.msrb.mxu2 %v683_v12 }
 0x23f   :  { %462 = vperm.xlu0 %867, %v451_v54   ;;  %707 = vmatpush.msrb.mxu0 %v682_v13 }
 0x240   :  { %836 = vmatpush.msrb.mxu2 %v682_v13 }
 0x241   :  { %708 = vmatpush.msrb.mxu0 %v681_v17 }
 0x242   :  { %837 = vmatpush.msrb.mxu2 %v681_v17 }
 0x243   :  { %709 = vmatpush.msrb.mxu0 %v680_v21 }
 0x244   :  { %838 = vmatpush.msrb.mxu2 %v680_v21 }
 0x298   :  { %v1411_v63 = vpop.permute.xlu1 %506 }
 0x299   :  { %vm511_vm2 = vcmp.eq.s32.totalorder %v1411_v63, 1  ;;  %v734_v63 = vld [vmem:[%s1542_s7 + $0x38] sm:$0xff] }
 0x29a   :  { %v523_v27 = vsel %vm511_vm2, %v521_v47, 0.0  ;;  %v519_v0 = vsel %vm511_vm2, %v517_v38, 0.0  ;;  %753 = vmatpush.msrb.mxu1 %v734_v63  ;;  %839 = vmatpush.msrb.mxu3 %v734_v63 }
 0x29b   :  { %791 = vmatmul.msk.f32.vlgmr.msra.gmra.mxu2 %vm36_vm0, %v523_v27  ;;  %787 = vmatmul.msk.f32.vlgmr.msra.gmra.mxu0 %vm36_vm0, %v519_v0 }
 0x29c   :  { %754 = vmatpush.msrb.mxu1 %v733_v42  ;;  %840 = vmatpush.msrb.mxu3 %v733_v42 }
 0x29e   :  { %755 = vmatpush.msrb.mxu1 %v732_v59  ;;  %841 = vmatpush.msrb.mxu3 %v732_v59 }
 0x2a0   :  { %v1444_v48 = vpop.permute.xlu1 %509  ;;  %756 = vmatpush.msrb.mxu1 %v731_v61  ;;  %842 = vmatpush.msrb.mxu3 %v731_v61 }
 0x2a1   :  { %vm512_vm3 = vcmp.eq.s32.totalorder %v1444_v48, 1 }
 0x2a2   :  { %v524_v40 = vsel %vm512_vm3, %v522_v62, 0.0  ;;  %v520_v51 = vsel %vm512_vm3, %v518_v49, 0.0  ;;  %757 = vmatpush.msrb.mxu1 %v730_v19  ;;  %843 = vmatpush.msrb.mxu3 %v730_v19  ;;  %v729_v62 = vld [vmem:[%s1542_s7 + $0x10] sm:$0xff]  ;;  %v728_v49 = vld [vmem:[%s1542_s7 + $0x8] sm:$0xff] }
 0x2a3   :  { %792 = vmatmul.msk.f32.gmra.mxu2 %vm36_vm0, %v524_v40  ;;  %788 = vmatmul.msk.f32.gmra.mxu0 %vm36_vm0, %v520_v51 }
 0x2a4   :  { %758 = vmatpush.msrb.mxu1 %v729_v62  ;;  %844 = vmatpush.msrb.mxu3 %v729_v62 }
 0x2a6   :  { %759 = vmatpush.msrb.mxu1 %v728_v49  ;;  %845 = vmatpush.msrb.mxu3 %v728_v49 }
 0x2a8   :  { %760 = vmatpush.msrb.mxu1 %v727_v50  ;;  %846 = vmatpush.msrb.mxu3 %v727_v50 }
 0x2a9   :  { %v458_v10 = vpop.permute.xlu0 %457 }
 0x2aa   :  { %v465_v11 = vmul.f32 %v458_v10, %v453_v6  ;;  %v469_v14 = vmul.f32 %v467_v9, %v458_v10 }
 0x2ab   :  { %795 = vmatmul.msk.f32.vlgmr.msrb.gmra.mxu0 %vm36_vm0, %v678_v29  ;;  %796 = vmatmul.msk.f32.vlgmr.msrb.gmra.mxu2 %vm36_vm0, %v679_v30 }
 0x2ac   :  { %v471_v15 = vmul.f32 %v465_v11, %v465_v11  ;;  %v513_v16 = vsel %vm511_vm2, %v465_v11, 0.0  ;;  %v869_v11 = vld [vmem:[%s1541_s6] ss:$0 sm:$0xff] }
 0x2ad   :  { %789 = vmatmul.msk.f32.vlgmr.msra.gmra.mxu1 %vm36_vm0, %v513_v16 }
 0x2ae   :  { %v473_v18 = vsub.f32 %v469_v14, %v471_v15 }
 0x2b0   :  { %v475_v23 = vmax.f32 %v473_v18, 0.0 }
 0x2b1   :  { %v463_v25 = vpop.permute.xlu0 %462 }
 0x2b2   :  { %v477_v26 = vadd.f32 1e-05, %v475_v23  ;;  %v466_v28 = vmul.f32 %v463_v25, %v454_v22  ;;  %v470_v31 = vmul.f32 %v468_v24, %v463_v25  ;;  %v870_v25 = vld [vmem:[%s1543_s8] ss:$0 sm:$0xff] }
 0x2b4   :  { %v472_v32 = vmul.f32 %v466_v28, %v466_v28  ;;  %v514_v33 = vsel %vm512_vm3, %v466_v28, 0.0  ;;  %875 = vrsqrt.f32 %v477_v26  ;;  %vm486_vm4 = vcmp.eq.f32.partialorder %v477_v26, inf }
 0x2b5   :  { %790 = vmatmul.msk.f32.gmra.mxu1 %vm36_vm0, %v514_v33  ;;  %v489_v56 = vand.u32 2147483648, %v477_v26  ;;  %vm488_vm5 = vcmp.eq.f32.partialorder %v477_v26, 0.0 }
 0x2b6   :  { %v474_v35 = vsub.f32 %v470_v31, %v472_v32 }
 0x2b8   :  { %v476_v36 = vmax.f32 %v474_v35, 0.0 }
 0x2ba   :  { %v876_v37 = vpop.eup %875  ;;  %v478_v7 = vadd.f32 1e-05, %v476_v36 }
 0x2bb   :  { %v480_v52 = vmul.f32 %v876_v37, %v477_v26 }
 0x2bc   :  { %877 = vrsqrt.f32 %v478_v7  ;;  %vm498_vm6 = vcmp.eq.f32.partialorder %v478_v7, inf  ;;  %v501_v27 = vand.u32 2147483648, %v478_v7  ;;  %vm500_vm7 = vcmp.eq.f32.partialorder %v478_v7, 0.0 }
 0x2bd   :  { %v481_v44 = vmul.f32 %v876_v37, %v480_v52 }
 0x2bf   :  { %v482_v1 = vmul.f32 0.5, %v481_v44 }
 0x2c1   :  { %v483_v2 = vsub.f32 1.5, %v482_v1 }
 0x2c2   :  { %v878_v3 = vpop.eup %877 }
 0x2c3   :  { %v484_v45 = vmul.f32 %v876_v37, %v483_v2  ;;  %v492_v34 = vmul.f32 %v878_v3, %v478_v7 }
 0x2c5   :  { %v485_v54 = vmul.f32 %v484_v45, %v477_v26  ;;  %v493_v4 = vmul.f32 %v878_v3, %v492_v34 }
 0x2c7   :  { %v487_v53 = vsel %vm486_vm4, %v477_v26, %v485_v54  ;;  %v494_v58 = vmul.f32 0.5, %v493_v4 }
 0x2c8   :  { %v490_v46 = vsel %vm488_vm5, %v489_v56, %v487_v53 }
 0x2c9   :  { %v515_v57 = vsel %vm511_vm2, %v490_v46, 0.0  ;;  %v495_v60 = vsub.f32 1.5, %v494_v58 }
 0x2ca   :  { %793 = vmatmul.msk.f32.vlgmr.msra.gmra.mxu3 %vm36_vm0, %v515_v57 }
 0x2cb   :  { %v496_v47 = vmul.f32 %v878_v3, %v495_v60 }
 0x2cd   :  { %v497_v38 = vmul.f32 %v496_v47, %v478_v7 }
 0x2cf   :  { %v499_v0 = vsel %vm498_vm6, %v478_v7, %v497_v38 }
 0x2d0   :  { %v502_v20 = vsel %vm500_vm7, %v501_v27, %v499_v0 }
 0x2d1   :  { %v516_v41 = vsel %vm512_vm3, %v502_v20, 0.0 }
 0x2d2   :  { %794 = vmatmul.msk.f32.gmra.mxu3 %vm36_vm0, %v516_v41 }
 0x318   :  { %v565_v43 = vpop.f32.mrf.mxu0 }
 0x31e   :  { %v631_v48 = vpop.f32.mrf.mxu2 }
 0x320   :  { %v568_v40 = vpop.f32.mrf.mxu0 }
 0x326   :  { %v634_v5 = vpop.f32.mrf.mxu2 }
 0x328   :  { %v711_v6 = vpop.f32.mrf.mxu0 }
 0x32a   :  { %v594_v39 = vpop.f32.mrf.mxu1 }
 0x32b   :  { %v595_v51 = vadd.f32 %v594_v39, %v565_v43 }
 0x32d   :  { %v637_v55 = vadd.f32 %v631_v48, %v595_v51 }
 0x32e   :  { %v714_v18 = vpop.f32.mrf.mxu2 }
 0x332   :  { %v597_v8 = vpop.f32.mrf.mxu1 }
 0x333   :  { %v598_v12 = vadd.f32 %v597_v8, %v568_v40 }
 0x335   :  { %v638_v15 = vadd.f32 %v634_v5, %v598_v12 }
 0x34d   :  { %v670_v9 = vpop.f32.mrf.mxu3 }
 0x34e   :  { %v676_v10 = vadd.f32 %v670_v9, %v637_v55 }
 0x350   :  { %v717_v13 = vadd.f32 %v711_v6, %v676_v10 }
 0x352   :  { %v723_v14 = vadd.f32 %v869_v11, %v717_v13 }
 0x354   :  { %v725_v16 = vmax.f32 %v723_v14, 0.0 }
 0x355   :  { %v673_v17 = vpop.f32.mrf.mxu3 }
 0x356   :  { %v677_v21 = vadd.f32 %v673_v17, %v638_v15  ;;  %797 = vmatmul.msk.f32.vlgmr.msrb.gmra.mxu1 %vm36_vm0, %v725_v16 }
 0x358   :  { %v718_v22 = vadd.f32 %v714_v18, %v677_v21 }
 0x35a   :  { %v724_v23 = vadd.f32 %v869_v11, %v718_v22 }
 0x35c   :  { %v726_v24 = vmax.f32 %v724_v23, 0.0 }
 0x35e   :  { %798 = vmatmul.msk.f32.vlgmr.msrb.gmra.mxu3 %vm36_vm0, %v726_v24 }
 0x3d3   :  { %v762_v26 = vpop.f32.mrf.mxu1 }
 0x3d4   :  { %v763_v28 = vadd.f32 %v870_v25, %v762_v26 }
 0x3d6   :  { %768 = vst.msk [vmem:[%s1544_s9] sm:$0xff] %vm36_vm0, %v763_v28 }
 0x3e1   :  { %v765_v29 = vpop.f32.mrf.mxu3 }
 0x3e2   :  { %v766_v30 = vadd.f32 %v870_v25, %v765_v29 }
 0x3e4   :  { %769 = vst.msk [vmem:[%s1544_s9 + $0x8] sm:$0xff] %vm36_vm0, %v766_v30 }

// kernel: gnn_forward.21
= control target key start
LH: loop header
LB: loop body
LE: loop exit
PB: predicated region body
PF: predicated region fallthrough
CT: control target
= control target key end

     0   :  { %vm52_vm0 = vcmask 1045504   ;;  %vm45_vm1 = vcmask 48128   ;;  %vm79_vm2 = vcmask 523264   ;;  %vm201_vm3 = vcmask 64512   ;;  %s388_s3 = inlined_call_operand.vmem [shape: f32[6,64], index: 3, kind: input, shape index: {}]   ;;  %s389_s2 = inlined_call_operand.vmem [shape: f32[64,64], index: 2, kind: input, shape index: {}]   ;;  %s390_s1 = inlined_call_operand.vmem [shape: f32[16,6], index: 1, kind: input, shape index: {}]   ;;  %s391_s4 = inlined_call_operand.vmem [shape: f32[1,64], index: 4, kind: input, shape index: {}]   ;;  %s392_s0 = inlined_call_operand.vmem [shape: f32[16,64], index: 0, kind: input, shape index: {}]   ;;  %s393_s6 = inlined_call_operand.vmem [shape: f32[1,64], index: 6, kind: input, shape index: {}]   ;;  %s394_s5 = inlined_call_operand.vmem [shape: f32[64,64], index: 5, kind: input, shape index: {}]   ;;  %s395_s7 = inlined_call_operand.vmem [shape: f32[64,8], index: 7, kind: input, shape index: {}]   ;;  %s396_s8 = inlined_call_operand.vmem [shape: f32[1,8], index: 8, kind: input, shape index: {}]   ;;  %s397_s9 = inlined_call_operand.vmem [shape: f32[16,8], index: 9, kind: output, shape index: {}]  }
   0x1   :  { %v44_v0 = vld [vmem:[%s388_s3] sm:$0x3f]  ;;  %v41_v1 = vld [vmem:[%s389_s2 + $0x38] sm:$0xff]  ;;  %v40_v3 = vld [vmem:[%s389_s2 + $0x30] sm:$0xff] }
   0x2   :  { %v42_v2 = vld [vmem:[%s390_s1] sm:$0xff]  ;;  %208 = vmatpush.msk.msra.mxu0 %vm52_vm0, %v44_v0  ;;  %217 = vmatpush.msra.mxu1 %v41_v1  ;;  %v39_v4 = vld [vmem:[%s389_s2 + $0x28] sm:$0xff]  ;;  %v37_v6 = vld [vmem:[%s389_s2 + $0x18] sm:$0xff] }
   0x3   :  { %209 = vmatmul.msk.f32.vlgmr.msra.gmra.mxu0 %vm45_vm1, %v42_v2  ;;  %v38_v5 = vld [vmem:[%s389_s2 + $0x20] sm:$0xff]  ;;  %v43_v7 = vld [vmem:[%s390_s1 + $0x8] sm:$0xff]  ;;  %v36_v8 = vld [vmem:[%s389_s2 + $0x10] sm:$0xff] }
   0x4   :  { %94 = vmatpush.msrb.mxu0 %v41_v1  ;;  %218 = vmatpush.msra.mxu1 %v40_v3  ;;  %v35_v9 = vld [vmem:[%s389_s2 + $0x8] sm:$0xff]  ;;  %v34_v10 = vld [vmem:[%s389_s2] sm:$0xff]  ;;  %v124_v13 = vld [vmem:[%s394_s5 + $0x38] sm:$0xff] }
   0x5   :  { %v33_v11 = vld [vmem:[%s392_s0 + $0x8] sm:$0xff]  ;;  %v32_v12 = vld [vmem:[%s392_s0] sm:$0xff]  ;;  %143 = vmatpush.msra.mxu2 %v124_v13  ;;  %v123_v14 = vld [vmem:[%s394_s5 + $0x30] sm:$0xff] }
   0x6   :  { %95 = vmatpush.msrb.mxu0 %v40_v3  ;;  %219 = vmatpush.msra.mxu1 %v39_v4  ;;  %v122_v15 = vld [vmem:[%s394_s5 + $0x28] sm:$0xff]  ;;  %v121_v16 = vld [vmem:[%s394_s5 + $0x20] sm:$0xff]  ;;  %v120_v17 = vld [vmem:[%s394_s5 + $0x18] sm:$0xff] }
   0x7   :  { %144 = vmatpush.msra.mxu2 %v123_v14  ;;  %v119_v18 = vld [vmem:[%s394_s5 + $0x10] sm:$0xff]  ;;  %v118_v19 = vld [vmem:[%s394_s5 + $0x8] sm:$0xff]  ;;  %v117_v20 = vld [vmem:[%s394_s5] sm:$0xff] }
   0x8   :  { %96 = vmatpush.msrb.mxu0 %v39_v4  ;;  %220 = vmatpush.msra.mxu1 %v38_v5  ;;  %v167_v21 = vld [vmem:[%s395_s7 + $0x38] sm:$0xff]  ;;  %v166_v22 = vld [vmem:[%s395_s7 + $0x30] sm:$0xff]  ;;  %v165_v24 = vld [vmem:[%s395_s7 + $0x28] sm:$0xff] }
   0x9   :  { %145 = vmatpush.msra.mxu2 %v122_v15  ;;  %186 = vmatpush.msra.mxu3 %v167_v21  ;;  %v164_v25 = vld [vmem:[%s395_s7 + $0x20] sm:$0xff]  ;;  %v163_v26 = vld [vmem:[%s395_s7 + $0x18] sm:$0xff]  ;;  %v162_v37 = vld [vmem:[%s395_s7 + $0x10] sm:$0xff] }
   0xa   :  { %97 = vmatpush.msrb.mxu0 %v38_v5  ;;  %221 = vmatpush.msra.mxu1 %v37_v6  ;;  %v225_v29 = vld [vmem:[%s391_s4] ss:$0 sm:$0xff]  ;;  %v161_v38 = vld [vmem:[%s395_s7 + $0x8] sm:$0xff] }
   0xb   :  { %210 = vmatmul.msk.f32.gmra.mxu0 %vm45_vm1, %v43_v7  ;;  %146 = vmatpush.msra.mxu2 %v121_v16  ;;  %v160_v39 = vld [vmem:[%s395_s7] sm:$0xff] }
   0xc   :  { %98 = vmatpush.msrb.mxu0 %v37_v6  ;;  %222 = vmatpush.msra.mxu1 %v36_v8  ;;  %v226_v40 = vld [vmem:[%s393_s6] ss:$0 sm:$0xff] }
   0xd   :  { %147 = vmatpush.msra.mxu2 %v120_v17  ;;  %187 = vmatpush.msra.mxu3 %v166_v22  ;;  %v227_v47 = vld [vmem:[%s396_s8] ss:$0 sm:$0xff] }
   0xe   :  { %99 = vmatpush.msrb.mxu0 %v36_v8  ;;  %223 = vmatpush.msra.mxu1 %v35_v9 }
   0xf   :  { %148 = vmatpush.msra.mxu2 %v119_v18  ;;  %188 = vmatpush.msra.mxu3 %v165_v24 }
  0x10   :  { %100 = vmatpush.msrb.mxu0 %v35_v9  ;;  %224 = vmatpush.msra.mxu1 %v34_v10 }
  0x11   :  { %212 = vmatmul.msk.f32.vlgmr.msra.gmra.mxu1 %vm79_vm2, %v33_v11  ;;  %149 = vmatpush.msra.mxu2 %v118_v19 }
  0x12   :  { %101 = vmatpush.msrb.mxu0 %v34_v10  ;;  %189 = vmatpush.msra.mxu3 %v164_v25 }
  0x13   :  { %211 = vmatmul.msk.f32.vlgmr.msrb.gmra.mxu0 %vm79_vm2, %v32_v12  ;;  %150 = vmatpush.msra.mxu2 %v117_v20 }
  0x14   :  { %190 = vmatpush.msra.mxu3 %v163_v26 }
  0x16   :  { %191 = vmatpush.msra.mxu3 %v162_v37 }
  0x18   :  { %192 = vmatpush.msra.mxu3 %v161_v38 }
  0x1a   :  { %193 = vmatpush.msra.mxu3 %v160_v39 }
  0x80   :  { %v73_v23 = vpop.f32.mrf.mxu0 }
  0x88   :  { %v76_v27 = vpop.f32.mrf.mxu0 }
  0x8e   :  { %v106_v31 = vpop.f32.mrf.mxu1 }
  0x8f   :  { %v107_v33 = vadd.f32 %v106_v31, %v76_v27 }
  0x90   :  { %v103_v28 = vpop.f32.mrf.mxu0 }
  0x91   :  { %v104_v30 = vadd.f32 %v103_v28, %v73_v23  ;;  %v114_v35 = vadd.f32 %v225_v29, %v107_v33 }
  0x93   :  { %v113_v32 = vadd.f32 %v225_v29, %v104_v30  ;;  %v116_v36 = vmax.f32 %v114_v35, 0.0 }
  0x95   :  { %v115_v34 = vmax.f32 %v113_v32, 0.0 }
  0x97   :  { %213 = vmatmul.msk.f32.vlgmr.msra.gmra.mxu2 %vm79_vm2, %v115_v34 }
  0x9f   :  { %214 = vmatmul.msk.f32.gmra.mxu2 %vm79_vm2, %v116_v36 }
 0x11a   :  { %v152_v41 = vpop.f32.mrf.mxu2 }
 0x11b   :  { %v153_v42 = vadd.f32 %v226_v40, %v152_v41 }
 0x11d   :  { %v158_v43 = vmax.f32 %v153_v42, 0.0 }
 0x11f   :  { %215 = vmatmul.msk.f32.vlgmr.msra.gmra.mxu3 %vm79_vm2, %v158_v43 }
 0x122   :  { %v155_v44 = vpop.f32.mrf.mxu2 }
 0x123   :  { %v156_v45 = vadd.f32 %v226_v40, %v155_v44 }
 0x125   :  { %v159_v46 = vmax.f32 %v156_v45, 0.0 }
 0x127   :  { %216 = vmatmul.msk.f32.gmra.mxu3 %vm79_vm2, %v159_v46 }
 0x1a2   :  { %v195_v48 = vpop.f32.mrf.mxu3 }
 0x1a3   :  { %v196_v49 = vadd.f32 %v227_v47, %v195_v48 }
 0x1a5   :  { %202 = vst.msk [vmem:[%s397_s9] sm:$0xff] %vm201_vm3, %v196_v49 }
 0x1aa   :  { %v198_v50 = vpop.f32.mrf.mxu3 }
 0x1ab   :  { %v199_v51 = vadd.f32 %v227_v47, %v198_v50 }
 0x1ad   :  { %203 = vst.msk [vmem:[%s397_s9 + $0x8] sm:$0xff] %vm201_vm3, %v199_v51 }

</bundles_post_ra>
